<compile_context>
chip_gen: v6e
topology: v6e:2x2x1
jax: 0.10.0
libtpu: 0.0.40
codegen_flags: <defaults>
</compile_context>

<pallas_src>
import math

import jax
import jax.numpy as jnp
from jax.experimental import pallas as pl
from jax.experimental.pallas import tpu as pltpu

N_RES_BLOCKS = 5


# ---------------------------------------------------------------------------
# Pallas kernel (BB batch elements per grid step)
# ---------------------------------------------------------------------------
def _disc_kernel(x_ref, w1_ref, b1_ref, resw_ref, resb_ref, wfc_ref, bfc_ref,
                 out_ref, xstk_ref):
    # x_ref    : (BB, T, C)   bf16, BB batch elements, channels-last
    # w1_ref   : (C, H)       bf16, 1x1 conv weight (transposed)
    # b1_ref   : (1, H)       f32
    # resw_ref : (n_res, 2, 3H, H)  bf16 stacked tap matrices [W0.T; W1.T; W2.T]
    # resb_ref : (n_res, 2, 1, H)   f32
    # wfc_ref  : (T, H)       f32, fc weight re-laid into kernel layout
    # bfc_ref  : (1, 1)       f32
    # out_ref  : (BB, 1, 1)   f32
    # xstk_ref : (BB*T, 3H)   bf16 persistent scratch for the stacked conv operand
    n_res = resw_ref.shape[0]
    BB, T, C = x_ref.shape
    H = w1_ref.shape[1]
    total = BB * T
    cdt = xstk_ref.dtype

    # Per-batch boundary masks: realize the conv zero-padding AND stop the sublane
    # rolls from leaking rows across batch elements inside the flattened block.
    row = jax.lax.broadcasted_iota(jnp.int32, (total, H), 0)
    rmod = row % T
    is_first = rmod == 0
    is_last = rmod == T - 1

    def conv3(t_act, r, j):
        # Conv1d(k=3, padding=1): +-1 sublane shifts on the XLU + one fused MXU matmul.
        xm = jnp.where(is_first, 0.0, pltpu.roll(t_act, shift=1, axis=0))        # x[t-1]
        xp = jnp.where(is_last, 0.0, pltpu.roll(t_act, shift=total - 1, axis=0))  # x[t+1]
        xstk_ref[:, 0:H] = xm.astype(cdt)
        xstk_ref[:, H:2 * H] = t_act.astype(cdt)
        xstk_ref[:, 2 * H:3 * H] = xp.astype(cdt)
        y = jnp.dot(xstk_ref[...], resw_ref[r, j],
                    preferred_element_type=jnp.float32)
        return y + resb_ref[r, j]                                                 # (1,H) bcast

    # conv1: 1x1 conv == channel matmul (bf16 operands, f32 accumulate)
    x2 = x_ref[...].reshape(total, C)                                             # bf16
    h = jnp.dot(x2, w1_ref[...], preferred_element_type=jnp.float32) + b1_ref[...]

    for r in range(n_res):
        t = jnp.maximum(h, 0.0)
        t = conv3(t, r, 0)
        t = jnp.maximum(t, 0.0)
        t = conv3(t, r, 1)
        h = h + 0.3 * t

    # fc: per-batch <flatten(h), wfc> + bias (torch flatten order baked into wfc layout)
    wfc = wfc_ref[...]
    bfc = bfc_ref[...]
    for bi in range(BB):
        seg = h[bi * T:(bi + 1) * T, :] * wfc                                     # (T, H)
        v = jnp.sum(jnp.sum(seg, axis=1, keepdims=True), axis=0, keepdims=True)   # (1, 1)
        out_ref[bi] = v + bfc


# ---------------------------------------------------------------------------
# Wrapper
# ---------------------------------------------------------------------------
def _pick_bb(B, T, target_rows=256, max_rows=1024):
    """Largest sensible batch-block: fill the MXU (BB*T >= 256) but keep >=2 grid steps."""
    divs = [d for d in range(1, B + 1) if B % d == 0]
    good = [d for d in divs if target_rows <= d * T <= max_rows and B // d >= 2]
    if good:
        return min(good)
    ok = [d for d in divs if d * T <= max_rows and B // d >= 2]
    if ok:
        return max(ok)
    ok2 = [d for d in divs if d * T <= max_rows]
    return max(ok2) if ok2 else 1


def discriminator_forward(x, params, *, block_batch=None):
    """x: (B, seq_len, n_chars) float32 -> (B, 1) float32."""
    B, T, C = x.shape
    H = params["conv1_w"].shape[0]
    H_pad = ((H + 127) // 128) * 128          # lane-align the hidden dim
    f32, bf16 = jnp.float32, jnp.bfloat16

    BB = block_batch if block_batch is not None else _pick_bb(B, T)
    assert B % BB == 0
    grid = (B // BB,)
    # NOTE: T a multiple of 8 keeps the (BB,T,*)<->(BB*T,*) reshapes layout-free.

    def pad_last(a):                                          # pad last axis H -> H_pad
        return jnp.pad(a, [(0, 0)] * (a.ndim - 1) + [(0, H_pad - H)])

    # --- torch-shaped params -> kernel layout (plain JAX glue) ---
    w1 = pad_last(jnp.transpose(params["conv1_w"][:, :, 0])).astype(bf16)   # (C, H_pad)
    b1 = pad_last(params["conv1_b"].reshape(1, H)).astype(f32)              # (1, H_pad)

    def stack_taps(w):                                        # (H, H, 3) -> (3H_pad, H_pad)
        wp = jnp.pad(w, ((0, H_pad - H), (0, H_pad - H), (0, 0)))
        return jnp.transpose(wp, (2, 1, 0)).reshape(3 * H_pad, H_pad)       # [W0.T; W1.T; W2.T]

    resw = jnp.stack([jnp.stack([stack_taps(blk["w0"]), stack_taps(blk["w1"])])
                      for blk in params["res"]]).astype(bf16)               # (5,2,3H_pad,H_pad)
    resb = jnp.stack([jnp.stack([pad_last(blk["b0"].reshape(1, H)),
                                 pad_last(blk["b1"].reshape(1, H))])
                      for blk in params["res"]]).astype(f32)                # (5,2,1,H_pad)
    # torch flattens (B, H, T) -> index c*T + t ; re-lay into (T, H) kernel layout
    wfc = pad_last(params["fc_w"].reshape(H, T).T).astype(f32)              # (T, H_pad)
    bfc = params["fc_b"].reshape(1, 1).astype(f32)                          # (1, 1)

    weights = (w1, b1, resw, resb, wfc, bfc)

    def resident_spec(a):                                     # same block every grid step
        nd = a.ndim
        return pl.BlockSpec(a.shape, lambda b, _n=nd: (0,) * _n)

    x_in = x.astype(bf16)                                     # halve the input DMA

    # Explicit VMEM budget: resident weights (2x buffering headroom) + pipelined
    # in/out blocks + the stacked-operand scratch + f32 intermediates.
    est = (2 * sum(int(w.size) * w.dtype.itemsize for w in weights)
           + 2 * BB * T * C * 2
           + 2 * BB * 4
           + BB * T * 3 * H_pad * 2
           + 10 * BB * T * H_pad * 4)
    vmem_limit = int(min(100 * 2**20, max(32 * 2**20, 2 * est)))

    out = pl.pallas_call(
        _disc_kernel,
        out_shape=jax.ShapeDtypeStruct((B, 1, 1), jnp.float32),
        grid=grid,
        in_specs=[pl.BlockSpec((BB, T, C), lambda b: (b, 0, 0))]
                 + [resident_spec(w) for w in weights],
        out_specs=pl.BlockSpec((BB, 1, 1), lambda b: (b, 0, 0)),
        scratch_shapes=[pltpu.VMEM((BB * T, 3 * H_pad), bf16)],
        compiler_params=pltpu.CompilerParams(
            dimension_semantics=("parallel",),                # 2x on v7x, free elsewhere
            vmem_limit_bytes=vmem_limit),
    )(x_in, *weights)
    return out.reshape(B, 1)


# ---------------------------------------------------------------------------
# Deterministic synthetic parameters (torch-shaped)
# ---------------------------------------------------------------------------
def init_params(key, hidden, n_chars, seq_len):
    keys = iter(jax.random.split(key, 64))

    def nrm(shape, scale):
        return jax.random.normal(next(keys), shape, jnp.float32) * scale

    p = {
        "conv1_w": nrm((hidden, n_chars, 1), 1.0 / math.sqrt(n_chars)),
        "conv1_b": nrm((hidden,), 0.1),
        "res": [],
        "fc_w": nrm((1, seq_len * hidden), 1.0 / math.sqrt(seq_len * hidden)),
        "fc_b": nrm((1,), 0.1),
    }
    for _ in range(N_RES_BLOCKS):
        p["res"].append({
            "w0": nrm((hidden, hidden, 3), 1.0 / math.sqrt(3 * hidden)),
            "b0": nrm((hidden,), 0.1),
            "w1": nrm((hidden, hidden, 3), 1.0 / math.sqrt(3 * hidden)),
            "b1": nrm((hidden,), 0.1),
        })
    return p


# ---------------------------------------------------------------------------
# Pure-JAX reference (mirrors the PyTorch forward; optional bf16 matmul operands
# to match the kernel's MXU precision exactly)
# ---------------------------------------------------------------------------
def reference_forward(x, p, matmul_dtype=jnp.float32):
    B, T, C = x.shape
    H = p["conv1_w"].shape[0]
    md = matmul_dtype

    def mm(a, w_t):  # a: (B,T,in), w_t: (in,out); bf16/f32 operands, f32 accumulate
        return jnp.einsum("bti,io->bto", a.astype(md), w_t.astype(md),
                          preferred_element_type=jnp.float32)

    def conv1d3(t, w, b):  # t: (B,T,Hin), w: (Hout,Hin,3), torch padding=1
        tp = jnp.pad(t, ((0, 0), (1, 1), (0, 0)))
        y = (mm(tp[:, 0:T], w[:, :, 0].T)
             + mm(tp[:, 1:T + 1], w[:, :, 1].T)
             + mm(tp[:, 2:T + 2], w[:, :, 2].T))
        return y + b

    h = mm(x, p["conv1_w"][:, :, 0].T) + p["conv1_b"]
    for blk in p["res"]:
        t = jax.nn.relu(h)
        t = conv1d3(t, blk["w0"], blk["b0"])
        t = jax.nn.relu(t)
        t = conv1d3(t, blk["w1"], blk["b1"])
        h = h + 0.3 * t
    # torch: (B, hidden, seq_len).view(-1, seq_len*hidden)
    hf = jnp.transpose(h, (0, 2, 1)).reshape(B, H * T)
    return hf @ p["fc_w"].T + p["fc_b"]


if __name__ == "__main__":
    B, hidden, n_chars, seq_len = 8, 32, 4, 16

    key = jax.random.PRNGKey(0)
    pkey, xkey = jax.random.split(key)
    params = init_params(pkey, hidden, n_chars, seq_len)
    x = jax.random.normal(xkey, (B, seq_len, n_chars), jnp.float32)

    out = jax.block_until_ready(discriminator_forward(x, params))
    assert out.shape == (B, 1), out.shape

    # Tight check vs a reference that mirrors the kernel's bf16 MXU operands.
    ref_bf16 = reference_forward(x, params, matmul_dtype=jnp.bfloat16)
    if not jnp.allclose(out, ref_bf16, rtol=2e-2, atol=2e-2):
        raise ValueError(f"mismatch vs bf16 reference:\n{out}\n{ref_bf16}")

    # Loose sanity check vs the exact f32 PyTorch-equivalent forward.
    ref_f32 = reference_forward(x, params, matmul_dtype=jnp.float32)
    if not jnp.allclose(out, ref_f32, rtol=1e-1, atol=3.5e-1):
        raise ValueError(f"mismatch vs f32 reference:\n{out}\n{ref_f32}")

    print("KERNEL_OK")
</pallas_src>

<mosaic_0001>
module attributes {stable_mosaic.version = 11 : i64} {
  func.func @_disc_kernel(%arg0: i32, %arg1: memref<4x16x4xbf16, #tpu.memory_space<vmem>>, %arg2: memref<4x128xbf16, #tpu.memory_space<vmem>>, %arg3: memref<1x128xf32, #tpu.memory_space<vmem>>, %arg4: memref<5x2x384x128xbf16, #tpu.memory_space<vmem>>, %arg5: memref<5x2x1x128xf32, #tpu.memory_space<vmem>>, %arg6: memref<16x128xf32, #tpu.memory_space<vmem>>, %arg7: memref<1x1xf32, #tpu.memory_space<vmem>>, %arg8: memref<4x1x1xf32, #tpu.memory_space<vmem>>, %arg9: memref<64x384xbf16, #tpu.memory_space<vmem>>) attributes {dimension_semantics = [#tpu.dimension_semantics<parallel>], iteration_bounds = array<i64: 2>, scalar_prefetch = 0 : i64, scratch_operands = 1 : i64, tpu.core_type = #tpu.core_type<tc>, window_params = [{transform_indices = @transform_0, window_bounds = array<i64: 4, 16, 4>}, {pipeline_mode = #tpu.pipeline_mode<synchronous>, transform_indices = @transform_1, window_bounds = array<i64: 4, 128>}, {pipeline_mode = #tpu.pipeline_mode<synchronous>, transform_indices = @transform_2, window_bounds = array<i64: 1, 128>}, {pipeline_mode = #tpu.pipeline_mode<synchronous>, transform_indices = @transform_3, window_bounds = array<i64: 5, 2, 384, 128>}, {pipeline_mode = #tpu.pipeline_mode<synchronous>, transform_indices = @transform_4, window_bounds = array<i64: 5, 2, 1, 128>}, {pipeline_mode = #tpu.pipeline_mode<synchronous>, transform_indices = @transform_5, window_bounds = array<i64: 16, 128>}, {pipeline_mode = #tpu.pipeline_mode<synchronous>, transform_indices = @transform_6, window_bounds = array<i64: 1, 1>}, {transform_indices = @transform_7, window_bounds = array<i64: 4, 1, 1>}]} {
    %0 = tpu.iota {dimensions = array<i32: 0>} : vector<64x128xi32>
    %c16_i32 = arith.constant 16 : i32
    %c0_i32 = arith.constant 0 : i32
    %1 = arith.cmpi eq, %c16_i32, %c0_i32 : i32
    %c1_i32 = arith.constant 1 : i32
    %2 = arith.select %1, %c1_i32, %c16_i32 : i32
    %3 = vector.broadcast %2 : i32 to vector<64x128xi32>
    %4 = arith.remsi %0, %3 : vector<64x128xi32>
    %c0_i32_0 = arith.constant 0 : i32
    %5 = vector.broadcast %c0_i32_0 : i32 to vector<64x128xi32>
    %6 = arith.cmpi ne, %4, %5 : vector<64x128xi32>
    %c0_i32_1 = arith.constant 0 : i32
    %7 = vector.broadcast %c0_i32_1 : i32 to vector<64x128xi32>
    %8 = arith.cmpi slt, %4, %7 : vector<64x128xi32>
    %c0_i32_2 = arith.constant 0 : i32
    %9 = arith.cmpi slt, %2, %c0_i32_2 : i32
    %10 = vector.broadcast %9 : i1 to vector<64x128xi1>
    %11 = vector.broadcast %10 : vector<64x128xi1> to vector<64x128xi1>
    %12 = arith.xori %8, %11 : vector<64x128xi1>
    %13 = arith.andi %12, %6 : vector<64x128xi1>
    %14 = vector.broadcast %2 : i32 to vector<64x128xi32>
    %15 = arith.addi %4, %14 : vector<64x128xi32>
    %16 = arith.select %13, %15, %4 : vector<64x128xi1>, vector<64x128xi32>
    %c0_i32_3 = arith.constant 0 : i32
    %17 = vector.broadcast %c0_i32_3 : i32 to vector<64x128xi32>
    %18 = arith.cmpi eq, %16, %17 : vector<64x128xi32>
    %c15_i32 = arith.constant 15 : i32
    %19 = vector.broadcast %c15_i32 : i32 to vector<64x128xi32>
    %20 = arith.cmpi eq, %16, %19 : vector<64x128xi32>
    %c0 = arith.constant 0 : index
    %c0_4 = arith.constant 0 : index
    %c0_5 = arith.constant 0 : index
    %21 = vector.load %arg1[%c0, %c0_4, %c0_5] : memref<4x16x4xbf16, #tpu.memory_space<vmem>>, vector<4x16x4xbf16>
    %22 = vector.shape_cast %21 : vector<4x16x4xbf16> to vector<64x4xbf16>
    %c0_6 = arith.constant 0 : index
    %c0_7 = arith.constant 0 : index
    %23 = vector.load %arg2[%c0_6, %c0_7] : memref<4x128xbf16, #tpu.memory_space<vmem>>, vector<4x128xbf16>
    %cst = arith.constant dense<0.000000e+00> : vector<64x128xf32>
    %24 = tpu.matmul %22, %23, %cst {dimension_numbers = #tpu.dot_dimension_numbers<[1], [0], [0], [1], [0, 0, 1, 1], [], []>} : vector<64x4xbf16>, vector<4x128xbf16>, vector<64x128xf32> -> vector<64x128xf32>
    %c0_8 = arith.constant 0 : index
    %c0_9 = arith.constant 0 : index
    %25 = vector.load %arg3[%c0_8, %c0_9] : memref<1x128xf32, #tpu.memory_space<vmem>>, vector<1x128xf32>
    %26 = vector.broadcast %25 : vector<1x128xf32> to vector<64x128xf32>
    %27 = arith.addf %24, %26 : vector<64x128xf32>
    %cst_10 = arith.constant 0.000000e+00 : f32
    %28 = vector.broadcast %cst_10 : f32 to vector<64x128xf32>
    %29 = arith.maximumf %27, %28 : vector<64x128xf32>
    %c1_i32_11 = arith.constant 1 : i32
    %30 = tpu.dynamic_rotate %29 by %c1_i32_11 dim 0 : vector<64x128xf32>, i32 -> vector<64x128xf32>
    %cst_12 = arith.constant 0.000000e+00 : f32
    %31 = vector.broadcast %cst_12 : f32 to vector<64x128xf32>
    %32 = arith.select %18, %31, %30 : vector<64x128xi1>, vector<64x128xf32>
    %c63_i32 = arith.constant 63 : i32
    %33 = tpu.dynamic_rotate %29 by %c63_i32 dim 0 : vector<64x128xf32>, i32 -> vector<64x128xf32>
    %cst_13 = arith.constant 0.000000e+00 : f32
    %34 = vector.broadcast %cst_13 : f32 to vector<64x128xf32>
    %35 = arith.select %20, %34, %33 : vector<64x128xi1>, vector<64x128xf32>
    %36 = arith.truncf %32 : vector<64x128xf32> to vector<64x128xbf16>
    %c0_14 = arith.constant 0 : index
    %c0_15 = arith.constant 0 : index
    %37 = vector.load %arg9[%c0_14, %c0_15] : memref<64x384xbf16, #tpu.memory_space<vmem>>, vector<64x128xbf16>
    tpu.vector_store %arg9[%c0_14, %c0_15], %36 {strides = array<i32>} : memref<64x384xbf16, #tpu.memory_space<vmem>>, vector<64x128xbf16>,
    %38 = arith.truncf %29 : vector<64x128xf32> to vector<64x128xbf16>
    %c0_16 = arith.constant 0 : index
    %c128 = arith.constant 128 : index
    %39 = vector.load %arg9[%c0_16, %c128] : memref<64x384xbf16, #tpu.memory_space<vmem>>, vector<64x128xbf16>
    tpu.vector_store %arg9[%c0_16, %c128], %38 {strides = array<i32>} : memref<64x384xbf16, #tpu.memory_space<vmem>>, vector<64x128xbf16>,
    %40 = arith.truncf %35 : vector<64x128xf32> to vector<64x128xbf16>
    %c0_17 = arith.constant 0 : index
    %c256 = arith.constant 256 : index
    %41 = vector.load %arg9[%c0_17, %c256] : memref<64x384xbf16, #tpu.memory_space<vmem>>, vector<64x128xbf16>
    tpu.vector_store %arg9[%c0_17, %c256], %40 {strides = array<i32>} : memref<64x384xbf16, #tpu.memory_space<vmem>>, vector<64x128xbf16>,
    %c0_18 = arith.constant 0 : index
    %c0_19 = arith.constant 0 : index
    %42 = vector.load %arg9[%c0_18, %c0_19] : memref<64x384xbf16, #tpu.memory_space<vmem>>, vector<64x384xbf16>
    %c0_20 = arith.constant 0 : index
    %c0_21 = arith.constant 0 : index
    %c0_22 = arith.constant 0 : index
    %c0_23 = arith.constant 0 : index
    %43 = vector.load %arg4[%c0_20, %c0_21, %c0_22, %c0_23] : memref<5x2x384x128xbf16, #tpu.memory_space<vmem>>, vector<1x1x384x128xbf16>
    %44 = vector.shape_cast %43 : vector<1x1x384x128xbf16> to vector<384x128xbf16>
    %cst_24 = arith.constant dense<0.000000e+00> : vector<64x128xf32>
    %45 = tpu.matmul %42, %44, %cst_24 {dimension_numbers = #tpu.dot_dimension_numbers<[1], [0], [0], [1], [0, 0, 1, 1], [], []>} : vector<64x384xbf16>, vector<384x128xbf16>, vector<64x128xf32> -> vector<64x128xf32>
    %c0_25 = arith.constant 0 : index
    %c0_26 = arith.constant 0 : index
    %c0_27 = arith.constant 0 : index
    %c0_28 = arith.constant 0 : index
    %46 = vector.load %arg5[%c0_25, %c0_26, %c0_27, %c0_28] : memref<5x2x1x128xf32, #tpu.memory_space<vmem>>, vector<1x1x1x128xf32>
    %47 = vector.shape_cast %46 : vector<1x1x1x128xf32> to vector<1x128xf32>
    %48 = vector.broadcast %47 : vector<1x128xf32> to vector<64x128xf32>
    %49 = arith.addf %45, %48 : vector<64x128xf32>
    %cst_29 = arith.constant 0.000000e+00 : f32
    %50 = vector.broadcast %cst_29 : f32 to vector<64x128xf32>
    %51 = arith.maximumf %49, %50 : vector<64x128xf32>
    %c1_i32_30 = arith.constant 1 : i32
    %52 = tpu.dynamic_rotate %51 by %c1_i32_30 dim 0 : vector<64x128xf32>, i32 -> vector<64x128xf32>
    %cst_31 = arith.constant 0.000000e+00 : f32
    %53 = vector.broadcast %cst_31 : f32 to vector<64x128xf32>
    %54 = arith.select %18, %53, %52 : vector<64x128xi1>, vector<64x128xf32>
    %c63_i32_32 = arith.constant 63 : i32
    %55 = tpu.dynamic_rotate %51 by %c63_i32_32 dim 0 : vector<64x128xf32>, i32 -> vector<64x128xf32>
    %cst_33 = arith.constant 0.000000e+00 : f32
    %56 = vector.broadcast %cst_33 : f32 to vector<64x128xf32>
    %57 = arith.select %20, %56, %55 : vector<64x128xi1>, vector<64x128xf32>
    %58 = arith.truncf %54 : vector<64x128xf32> to vector<64x128xbf16>
    %c0_34 = arith.constant 0 : index
    %c0_35 = arith.constant 0 : index
    %59 = vector.load %arg9[%c0_34, %c0_35] : memref<64x384xbf16, #tpu.memory_space<vmem>>, vector<64x128xbf16>
    tpu.vector_store %arg9[%c0_34, %c0_35], %58 {strides = array<i32>} : memref<64x384xbf16, #tpu.memory_space<vmem>>, vector<64x128xbf16>,
    %60 = arith.truncf %51 : vector<64x128xf32> to vector<64x128xbf16>
    %c0_36 = arith.constant 0 : index
    %c128_37 = arith.constant 128 : index
    %61 = vector.load %arg9[%c0_36, %c128_37] : memref<64x384xbf16, #tpu.memory_space<vmem>>, vector<64x128xbf16>
    tpu.vector_store %arg9[%c0_36, %c128_37], %60 {strides = array<i32>} : memref<64x384xbf16, #tpu.memory_space<vmem>>, vector<64x128xbf16>,
    %62 = arith.truncf %57 : vector<64x128xf32> to vector<64x128xbf16>
    %c0_38 = arith.constant 0 : index
    %c256_39 = arith.constant 256 : index
    %63 = vector.load %arg9[%c0_38, %c256_39] : memref<64x384xbf16, #tpu.memory_space<vmem>>, vector<64x128xbf16>
    tpu.vector_store %arg9[%c0_38, %c256_39], %62 {strides = array<i32>} : memref<64x384xbf16, #tpu.memory_space<vmem>>, vector<64x128xbf16>,
    %c0_40 = arith.constant 0 : index
    %c0_41 = arith.constant 0 : index
    %64 = vector.load %arg9[%c0_40, %c0_41] : memref<64x384xbf16, #tpu.memory_space<vmem>>, vector<64x384xbf16>
    %c0_42 = arith.constant 0 : index
    %c1 = arith.constant 1 : index
    %c0_43 = arith.constant 0 : index
    %c0_44 = arith.constant 0 : index
    %65 = vector.load %arg4[%c0_42, %c1, %c0_43, %c0_44] : memref<5x2x384x128xbf16, #tpu.memory_space<vmem>>, vector<1x1x384x128xbf16>
    %66 = vector.shape_cast %65 : vector<1x1x384x128xbf16> to vector<384x128xbf16>
    %cst_45 = arith.constant dense<0.000000e+00> : vector<64x128xf32>
    %67 = tpu.matmul %64, %66, %cst_45 {dimension_numbers = #tpu.dot_dimension_numbers<[1], [0], [0], [1], [0, 0, 1, 1], [], []>} : vector<64x384xbf16>, vector<384x128xbf16>, vector<64x128xf32> -> vector<64x128xf32>
    %c0_46 = arith.constant 0 : index
    %c1_47 = arith.constant 1 : index
    %c0_48 = arith.constant 0 : index
    %c0_49 = arith.constant 0 : index
    %68 = vector.load %arg5[%c0_46, %c1_47, %c0_48, %c0_49] : memref<5x2x1x128xf32, #tpu.memory_space<vmem>>, vector<1x1x1x128xf32>
    %69 = vector.shape_cast %68 : vector<1x1x1x128xf32> to vector<1x128xf32>
    %70 = vector.broadcast %69 : vector<1x128xf32> to vector<64x128xf32>
    %71 = arith.addf %67, %70 : vector<64x128xf32>
    %cst_50 = arith.constant 3.000000e-01 : f32
    %72 = vector.broadcast %cst_50 : f32 to vector<64x128xf32>
    %73 = arith.mulf %72, %71 : vector<64x128xf32>
    %74 = arith.addf %27, %73 : vector<64x128xf32>
    %cst_51 = arith.constant 0.000000e+00 : f32
    %75 = vector.broadcast %cst_51 : f32 to vector<64x128xf32>
    %76 = arith.maximumf %74, %75 : vector<64x128xf32>
    %c1_i32_52 = arith.constant 1 : i32
    %77 = tpu.dynamic_rotate %76 by %c1_i32_52 dim 0 : vector<64x128xf32>, i32 -> vector<64x128xf32>
    %cst_53 = arith.constant 0.000000e+00 : f32
    %78 = vector.broadcast %cst_53 : f32 to vector<64x128xf32>
    %79 = arith.select %18, %78, %77 : vector<64x128xi1>, vector<64x128xf32>
    %c63_i32_54 = arith.constant 63 : i32
    %80 = tpu.dynamic_rotate %76 by %c63_i32_54 dim 0 : vector<64x128xf32>, i32 -> vector<64x128xf32>
    %cst_55 = arith.constant 0.000000e+00 : f32
    %81 = vector.broadcast %cst_55 : f32 to vector<64x128xf32>
    %82 = arith.select %20, %81, %80 : vector<64x128xi1>, vector<64x128xf32>
    %83 = arith.truncf %79 : vector<64x128xf32> to vector<64x128xbf16>
    %c0_56 = arith.constant 0 : index
    %c0_57 = arith.constant 0 : index
    %84 = vector.load %arg9[%c0_56, %c0_57] : memref<64x384xbf16, #tpu.memory_space<vmem>>, vector<64x128xbf16>
    tpu.vector_store %arg9[%c0_56, %c0_57], %83 {strides = array<i32>} : memref<64x384xbf16, #tpu.memory_space<vmem>>, vector<64x128xbf16>,
    %85 = arith.truncf %76 : vector<64x128xf32> to vector<64x128xbf16>
    %c0_58 = arith.constant 0 : index
    %c128_59 = arith.constant 128 : index
    %86 = vector.load %arg9[%c0_58, %c128_59] : memref<64x384xbf16, #tpu.memory_space<vmem>>, vector<64x128xbf16>
    tpu.vector_store %arg9[%c0_58, %c128_59], %85 {strides = array<i32>} : memref<64x384xbf16, #tpu.memory_space<vmem>>, vector<64x128xbf16>,
    %87 = arith.truncf %82 : vector<64x128xf32> to vector<64x128xbf16>
    %c0_60 = arith.constant 0 : index
    %c256_61 = arith.constant 256 : index
    %88 = vector.load %arg9[%c0_60, %c256_61] : memref<64x384xbf16, #tpu.memory_space<vmem>>, vector<64x128xbf16>
    tpu.vector_store %arg9[%c0_60, %c256_61], %87 {strides = array<i32>} : memref<64x384xbf16, #tpu.memory_space<vmem>>, vector<64x128xbf16>,
    %c0_62 = arith.constant 0 : index
    %c0_63 = arith.constant 0 : index
    %89 = vector.load %arg9[%c0_62, %c0_63] : memref<64x384xbf16, #tpu.memory_space<vmem>>, vector<64x384xbf16>
    %c1_64 = arith.constant 1 : index
    %c0_65 = arith.constant 0 : index
    %c0_66 = arith.constant 0 : index
    %c0_67 = arith.constant 0 : index
    %90 = vector.load %arg4[%c1_64, %c0_65, %c0_66, %c0_67] : memref<5x2x384x128xbf16, #tpu.memory_space<vmem>>, vector<1x1x384x128xbf16>
    %91 = vector.shape_cast %90 : vector<1x1x384x128xbf16> to vector<384x128xbf16>
    %cst_68 = arith.constant dense<0.000000e+00> : vector<64x128xf32>
    %92 = tpu.matmul %89, %91, %cst_68 {dimension_numbers = #tpu.dot_dimension_numbers<[1], [0], [0], [1], [0, 0, 1, 1], [], []>} : vector<64x384xbf16>, vector<384x128xbf16>, vector<64x128xf32> -> vector<64x128xf32>
    %c1_69 = arith.constant 1 : index
    %c0_70 = arith.constant 0 : index
    %c0_71 = arith.constant 0 : index
    %c0_72 = arith.constant 0 : index
    %93 = vector.load %arg5[%c1_69, %c0_70, %c0_71, %c0_72] : memref<5x2x1x128xf32, #tpu.memory_space<vmem>>, vector<1x1x1x128xf32>
    %94 = vector.shape_cast %93 : vector<1x1x1x128xf32> to vector<1x128xf32>
    %95 = vector.broadcast %94 : vector<1x128xf32> to vector<64x128xf32>
    %96 = arith.addf %92, %95 : vector<64x128xf32>
    %cst_73 = arith.constant 0.000000e+00 : f32
    %97 = vector.broadcast %cst_73 : f32 to vector<64x128xf32>
    %98 = arith.maximumf %96, %97 : vector<64x128xf32>
    %c1_i32_74 = arith.constant 1 : i32
    %99 = tpu.dynamic_rotate %98 by %c1_i32_74 dim 0 : vector<64x128xf32>, i32 -> vector<64x128xf32>
    %cst_75 = arith.constant 0.000000e+00 : f32
    %100 = vector.broadcast %cst_75 : f32 to vector<64x128xf32>
    %101 = arith.select %18, %100, %99 : vector<64x128xi1>, vector<64x128xf32>
    %c63_i32_76 = arith.constant 63 : i32
    %102 = tpu.dynamic_rotate %98 by %c63_i32_76 dim 0 : vector<64x128xf32>, i32 -> vector<64x128xf32>
    %cst_77 = arith.constant 0.000000e+00 : f32
    %103 = vector.broadcast %cst_77 : f32 to vector<64x128xf32>
    %104 = arith.select %20, %103, %102 : vector<64x128xi1>, vector<64x128xf32>
    %105 = arith.truncf %101 : vector<64x128xf32> to vector<64x128xbf16>
    %c0_78 = arith.constant 0 : index
    %c0_79 = arith.constant 0 : index
    %106 = vector.load %arg9[%c0_78, %c0_79] : memref<64x384xbf16, #tpu.memory_space<vmem>>, vector<64x128xbf16>
    tpu.vector_store %arg9[%c0_78, %c0_79], %105 {strides = array<i32>} : memref<64x384xbf16, #tpu.memory_space<vmem>>, vector<64x128xbf16>,
    %107 = arith.truncf %98 : vector<64x128xf32> to vector<64x128xbf16>
    %c0_80 = arith.constant 0 : index
    %c128_81 = arith.constant 128 : index
    %108 = vector.load %arg9[%c0_80, %c128_81] : memref<64x384xbf16, #tpu.memory_space<vmem>>, vector<64x128xbf16>
    tpu.vector_store %arg9[%c0_80, %c128_81], %107 {strides = array<i32>} : memref<64x384xbf16, #tpu.memory_space<vmem>>, vector<64x128xbf16>,
    %109 = arith.truncf %104 : vector<64x128xf32> to vector<64x128xbf16>
    %c0_82 = arith.constant 0 : index
    %c256_83 = arith.constant 256 : index
    %110 = vector.load %arg9[%c0_82, %c256_83] : memref<64x384xbf16, #tpu.memory_space<vmem>>, vector<64x128xbf16>
    tpu.vector_store %arg9[%c0_82, %c256_83], %109 {strides = array<i32>} : memref<64x384xbf16, #tpu.memory_space<vmem>>, vector<64x128xbf16>,
    %c0_84 = arith.constant 0 : index
    %c0_85 = arith.constant 0 : index
    %111 = vector.load %arg9[%c0_84, %c0_85] : memref<64x384xbf16, #tpu.memory_space<vmem>>, vector<64x384xbf16>
    %c1_86 = arith.constant 1 : index
    %c1_87 = arith.constant 1 : index
    %c0_88 = arith.constant 0 : index
    %c0_89 = arith.constant 0 : index
    %112 = vector.load %arg4[%c1_86, %c1_87, %c0_88, %c0_89] : memref<5x2x384x128xbf16, #tpu.memory_space<vmem>>, vector<1x1x384x128xbf16>
    %113 = vector.shape_cast %112 : vector<1x1x384x128xbf16> to vector<384x128xbf16>
    %cst_90 = arith.constant dense<0.000000e+00> : vector<64x128xf32>
    %114 = tpu.matmul %111, %113, %cst_90 {dimension_numbers = #tpu.dot_dimension_numbers<[1], [0], [0], [1], [0, 0, 1, 1], [], []>} : vector<64x384xbf16>, vector<384x128xbf16>, vector<64x128xf32> -> vector<64x128xf32>
    %c1_91 = arith.constant 1 : index
    %c1_92 = arith.constant 1 : index
    %c0_93 = arith.constant 0 : index
    %c0_94 = arith.constant 0 : index
    %115 = vector.load %arg5[%c1_91, %c1_92, %c0_93, %c0_94] : memref<5x2x1x128xf32, #tpu.memory_space<vmem>>, vector<1x1x1x128xf32>
    %116 = vector.shape_cast %115 : vector<1x1x1x128xf32> to vector<1x128xf32>
    %117 = vector.broadcast %116 : vector<1x128xf32> to vector<64x128xf32>
    %118 = arith.addf %114, %117 : vector<64x128xf32>
    %cst_95 = arith.constant 3.000000e-01 : f32
    %119 = vector.broadcast %cst_95 : f32 to vector<64x128xf32>
    %120 = arith.mulf %119, %118 : vector<64x128xf32>
    %121 = arith.addf %74, %120 : vector<64x128xf32>
    %cst_96 = arith.constant 0.000000e+00 : f32
    %122 = vector.broadcast %cst_96 : f32 to vector<64x128xf32>
    %123 = arith.maximumf %121, %122 : vector<64x128xf32>
    %c1_i32_97 = arith.constant 1 : i32
    %124 = tpu.dynamic_rotate %123 by %c1_i32_97 dim 0 : vector<64x128xf32>, i32 -> vector<64x128xf32>
    %cst_98 = arith.constant 0.000000e+00 : f32
    %125 = vector.broadcast %cst_98 : f32 to vector<64x128xf32>
    %126 = arith.select %18, %125, %124 : vector<64x128xi1>, vector<64x128xf32>
    %c63_i32_99 = arith.constant 63 : i32
    %127 = tpu.dynamic_rotate %123 by %c63_i32_99 dim 0 : vector<64x128xf32>, i32 -> vector<64x128xf32>
    %cst_100 = arith.constant 0.000000e+00 : f32
    %128 = vector.broadcast %cst_100 : f32 to vector<64x128xf32>
    %129 = arith.select %20, %128, %127 : vector<64x128xi1>, vector<64x128xf32>
    %130 = arith.truncf %126 : vector<64x128xf32> to vector<64x128xbf16>
    %c0_101 = arith.constant 0 : index
    %c0_102 = arith.constant 0 : index
    %131 = vector.load %arg9[%c0_101, %c0_102] : memref<64x384xbf16, #tpu.memory_space<vmem>>, vector<64x128xbf16>
    tpu.vector_store %arg9[%c0_101, %c0_102], %130 {strides = array<i32>} : memref<64x384xbf16, #tpu.memory_space<vmem>>, vector<64x128xbf16>,
    %132 = arith.truncf %123 : vector<64x128xf32> to vector<64x128xbf16>
    %c0_103 = arith.constant 0 : index
    %c128_104 = arith.constant 128 : index
    %133 = vector.load %arg9[%c0_103, %c128_104] : memref<64x384xbf16, #tpu.memory_space<vmem>>, vector<64x128xbf16>
    tpu.vector_store %arg9[%c0_103, %c128_104], %132 {strides = array<i32>} : memref<64x384xbf16, #tpu.memory_space<vmem>>, vector<64x128xbf16>,
    %134 = arith.truncf %129 : vector<64x128xf32> to vector<64x128xbf16>
    %c0_105 = arith.constant 0 : index
    %c256_106 = arith.constant 256 : index
    %135 = vector.load %arg9[%c0_105, %c256_106] : memref<64x384xbf16, #tpu.memory_space<vmem>>, vector<64x128xbf16>
    tpu.vector_store %arg9[%c0_105, %c256_106], %134 {strides = array<i32>} : memref<64x384xbf16, #tpu.memory_space<vmem>>, vector<64x128xbf16>,
    %c0_107 = arith.constant 0 : index
    %c0_108 = arith.constant 0 : index
    %136 = vector.load %arg9[%c0_107, %c0_108] : memref<64x384xbf16, #tpu.memory_space<vmem>>, vector<64x384xbf16>
    %c2 = arith.constant 2 : index
    %c0_109 = arith.constant 0 : index
    %c0_110 = arith.constant 0 : index
    %c0_111 = arith.constant 0 : index
    %137 = vector.load %arg4[%c2, %c0_109, %c0_110, %c0_111] : memref<5x2x384x128xbf16, #tpu.memory_space<vmem>>, vector<1x1x384x128xbf16>
    %138 = vector.shape_cast %137 : vector<1x1x384x128xbf16> to vector<384x128xbf16>
    %cst_112 = arith.constant dense<0.000000e+00> : vector<64x128xf32>
    %139 = tpu.matmul %136, %138, %cst_112 {dimension_numbers = #tpu.dot_dimension_numbers<[1], [0], [0], [1], [0, 0, 1, 1], [], []>} : vector<64x384xbf16>, vector<384x128xbf16>, vector<64x128xf32> -> vector<64x128xf32>
    %c2_113 = arith.constant 2 : index
    %c0_114 = arith.constant 0 : index
    %c0_115 = arith.constant 0 : index
    %c0_116 = arith.constant 0 : index
    %140 = vector.load %arg5[%c2_113, %c0_114, %c0_115, %c0_116] : memref<5x2x1x128xf32, #tpu.memory_space<vmem>>, vector<1x1x1x128xf32>
    %141 = vector.shape_cast %140 : vector<1x1x1x128xf32> to vector<1x128xf32>
    %142 = vector.broadcast %141 : vector<1x128xf32> to vector<64x128xf32>
    %143 = arith.addf %139, %142 : vector<64x128xf32>
    %cst_117 = arith.constant 0.000000e+00 : f32
    %144 = vector.broadcast %cst_117 : f32 to vector<64x128xf32>
    %145 = arith.maximumf %143, %144 : vector<64x128xf32>
    %c1_i32_118 = arith.constant 1 : i32
    %146 = tpu.dynamic_rotate %145 by %c1_i32_118 dim 0 : vector<64x128xf32>, i32 -> vector<64x128xf32>
    %cst_119 = arith.constant 0.000000e+00 : f32
    %147 = vector.broadcast %cst_119 : f32 to vector<64x128xf32>
    %148 = arith.select %18, %147, %146 : vector<64x128xi1>, vector<64x128xf32>
    %c63_i32_120 = arith.constant 63 : i32
    %149 = tpu.dynamic_rotate %145 by %c63_i32_120 dim 0 : vector<64x128xf32>, i32 -> vector<64x128xf32>
    %cst_121 = arith.constant 0.000000e+00 : f32
    %150 = vector.broadcast %cst_121 : f32 to vector<64x128xf32>
    %151 = arith.select %20, %150, %149 : vector<64x128xi1>, vector<64x128xf32>
    %152 = arith.truncf %148 : vector<64x128xf32> to vector<64x128xbf16>
    %c0_122 = arith.constant 0 : index
    %c0_123 = arith.constant 0 : index
    %153 = vector.load %arg9[%c0_122, %c0_123] : memref<64x384xbf16, #tpu.memory_space<vmem>>, vector<64x128xbf16>
    tpu.vector_store %arg9[%c0_122, %c0_123], %152 {strides = array<i32>} : memref<64x384xbf16, #tpu.memory_space<vmem>>, vector<64x128xbf16>,
    %154 = arith.truncf %145 : vector<64x128xf32> to vector<64x128xbf16>
    %c0_124 = arith.constant 0 : index
    %c128_125 = arith.constant 128 : index
    %155 = vector.load %arg9[%c0_124, %c128_125] : memref<64x384xbf16, #tpu.memory_space<vmem>>, vector<64x128xbf16>
    tpu.vector_store %arg9[%c0_124, %c128_125], %154 {strides = array<i32>} : memref<64x384xbf16, #tpu.memory_space<vmem>>, vector<64x128xbf16>,
    %156 = arith.truncf %151 : vector<64x128xf32> to vector<64x128xbf16>
    %c0_126 = arith.constant 0 : index
    %c256_127 = arith.constant 256 : index
    %157 = vector.load %arg9[%c0_126, %c256_127] : memref<64x384xbf16, #tpu.memory_space<vmem>>, vector<64x128xbf16>
    tpu.vector_store %arg9[%c0_126, %c256_127], %156 {strides = array<i32>} : memref<64x384xbf16, #tpu.memory_space<vmem>>, vector<64x128xbf16>,
    %c0_128 = arith.constant 0 : index
    %c0_129 = arith.constant 0 : index
    %158 = vector.load %arg9[%c0_128, %c0_129] : memref<64x384xbf16, #tpu.memory_space<vmem>>, vector<64x384xbf16>
    %c2_130 = arith.constant 2 : index
    %c1_131 = arith.constant 1 : index
    %c0_132 = arith.constant 0 : index
    %c0_133 = arith.constant 0 : index
    %159 = vector.load %arg4[%c2_130, %c1_131, %c0_132, %c0_133] : memref<5x2x384x128xbf16, #tpu.memory_space<vmem>>, vector<1x1x384x128xbf16>
    %160 = vector.shape_cast %159 : vector<1x1x384x128xbf16> to vector<384x128xbf16>
    %cst_134 = arith.constant dense<0.000000e+00> : vector<64x128xf32>
    %161 = tpu.matmul %158, %160, %cst_134 {dimension_numbers = #tpu.dot_dimension_numbers<[1], [0], [0], [1], [0, 0, 1, 1], [], []>} : vector<64x384xbf16>, vector<384x128xbf16>, vector<64x128xf32> -> vector<64x128xf32>
    %c2_135 = arith.constant 2 : index
    %c1_136 = arith.constant 1 : index
    %c0_137 = arith.constant 0 : index
    %c0_138 = arith.constant 0 : index
    %162 = vector.load %arg5[%c2_135, %c1_136, %c0_137, %c0_138] : memref<5x2x1x128xf32, #tpu.memory_space<vmem>>, vector<1x1x1x128xf32>
    %163 = vector.shape_cast %162 : vector<1x1x1x128xf32> to vector<1x128xf32>
    %164 = vector.broadcast %163 : vector<1x128xf32> to vector<64x128xf32>
    %165 = arith.addf %161, %164 : vector<64x128xf32>
    %cst_139 = arith.constant 3.000000e-01 : f32
    %166 = vector.broadcast %cst_139 : f32 to vector<64x128xf32>
    %167 = arith.mulf %166, %165 : vector<64x128xf32>
    %168 = arith.addf %121, %167 : vector<64x128xf32>
    %cst_140 = arith.constant 0.000000e+00 : f32
    %169 = vector.broadcast %cst_140 : f32 to vector<64x128xf32>
    %170 = arith.maximumf %168, %169 : vector<64x128xf32>
    %c1_i32_141 = arith.constant 1 : i32
    %171 = tpu.dynamic_rotate %170 by %c1_i32_141 dim 0 : vector<64x128xf32>, i32 -> vector<64x128xf32>
    %cst_142 = arith.constant 0.000000e+00 : f32
    %172 = vector.broadcast %cst_142 : f32 to vector<64x128xf32>
    %173 = arith.select %18, %172, %171 : vector<64x128xi1>, vector<64x128xf32>
    %c63_i32_143 = arith.constant 63 : i32
    %174 = tpu.dynamic_rotate %170 by %c63_i32_143 dim 0 : vector<64x128xf32>, i32 -> vector<64x128xf32>
    %cst_144 = arith.constant 0.000000e+00 : f32
    %175 = vector.broadcast %cst_144 : f32 to vector<64x128xf32>
    %176 = arith.select %20, %175, %174 : vector<64x128xi1>, vector<64x128xf32>
    %177 = arith.truncf %173 : vector<64x128xf32> to vector<64x128xbf16>
    %c0_145 = arith.constant 0 : index
    %c0_146 = arith.constant 0 : index
    %178 = vector.load %arg9[%c0_145, %c0_146] : memref<64x384xbf16, #tpu.memory_space<vmem>>, vector<64x128xbf16>
    tpu.vector_store %arg9[%c0_145, %c0_146], %177 {strides = array<i32>} : memref<64x384xbf16, #tpu.memory_space<vmem>>, vector<64x128xbf16>,
    %179 = arith.truncf %170 : vector<64x128xf32> to vector<64x128xbf16>
    %c0_147 = arith.constant 0 : index
    %c128_148 = arith.constant 128 : index
    %180 = vector.load %arg9[%c0_147, %c128_148] : memref<64x384xbf16, #tpu.memory_space<vmem>>, vector<64x128xbf16>
    tpu.vector_store %arg9[%c0_147, %c128_148], %179 {strides = array<i32>} : memref<64x384xbf16, #tpu.memory_space<vmem>>, vector<64x128xbf16>,
    %181 = arith.truncf %176 : vector<64x128xf32> to vector<64x128xbf16>
    %c0_149 = arith.constant 0 : index
    %c256_150 = arith.constant 256 : index
    %182 = vector.load %arg9[%c0_149, %c256_150] : memref<64x384xbf16, #tpu.memory_space<vmem>>, vector<64x128xbf16>
    tpu.vector_store %arg9[%c0_149, %c256_150], %181 {strides = array<i32>} : memref<64x384xbf16, #tpu.memory_space<vmem>>, vector<64x128xbf16>,
    %c0_151 = arith.constant 0 : index
    %c0_152 = arith.constant 0 : index
    %183 = vector.load %arg9[%c0_151, %c0_152] : memref<64x384xbf16, #tpu.memory_space<vmem>>, vector<64x384xbf16>
    %c3 = arith.constant 3 : index
    %c0_153 = arith.constant 0 : index
    %c0_154 = arith.constant 0 : index
    %c0_155 = arith.constant 0 : index
    %184 = vector.load %arg4[%c3, %c0_153, %c0_154, %c0_155] : memref<5x2x384x128xbf16, #tpu.memory_space<vmem>>, vector<1x1x384x128xbf16>
    %185 = vector.shape_cast %184 : vector<1x1x384x128xbf16> to vector<384x128xbf16>
    %cst_156 = arith.constant dense<0.000000e+00> : vector<64x128xf32>
    %186 = tpu.matmul %183, %185, %cst_156 {dimension_numbers = #tpu.dot_dimension_numbers<[1], [0], [0], [1], [0, 0, 1, 1], [], []>} : vector<64x384xbf16>, vector<384x128xbf16>, vector<64x128xf32> -> vector<64x128xf32>
    %c3_157 = arith.constant 3 : index
    %c0_158 = arith.constant 0 : index
    %c0_159 = arith.constant 0 : index
    %c0_160 = arith.constant 0 : index
    %187 = vector.load %arg5[%c3_157, %c0_158, %c0_159, %c0_160] : memref<5x2x1x128xf32, #tpu.memory_space<vmem>>, vector<1x1x1x128xf32>
    %188 = vector.shape_cast %187 : vector<1x1x1x128xf32> to vector<1x128xf32>
    %189 = vector.broadcast %188 : vector<1x128xf32> to vector<64x128xf32>
    %190 = arith.addf %186, %189 : vector<64x128xf32>
    %cst_161 = arith.constant 0.000000e+00 : f32
    %191 = vector.broadcast %cst_161 : f32 to vector<64x128xf32>
    %192 = arith.maximumf %190, %191 : vector<64x128xf32>
    %c1_i32_162 = arith.constant 1 : i32
    %193 = tpu.dynamic_rotate %192 by %c1_i32_162 dim 0 : vector<64x128xf32>, i32 -> vector<64x128xf32>
    %cst_163 = arith.constant 0.000000e+00 : f32
    %194 = vector.broadcast %cst_163 : f32 to vector<64x128xf32>
    %195 = arith.select %18, %194, %193 : vector<64x128xi1>, vector<64x128xf32>
    %c63_i32_164 = arith.constant 63 : i32
    %196 = tpu.dynamic_rotate %192 by %c63_i32_164 dim 0 : vector<64x128xf32>, i32 -> vector<64x128xf32>
    %cst_165 = arith.constant 0.000000e+00 : f32
    %197 = vector.broadcast %cst_165 : f32 to vector<64x128xf32>
    %198 = arith.select %20, %197, %196 : vector<64x128xi1>, vector<64x128xf32>
    %199 = arith.truncf %195 : vector<64x128xf32> to vector<64x128xbf16>
    %c0_166 = arith.constant 0 : index
    %c0_167 = arith.constant 0 : index
    %200 = vector.load %arg9[%c0_166, %c0_167] : memref<64x384xbf16, #tpu.memory_space<vmem>>, vector<64x128xbf16>
    tpu.vector_store %arg9[%c0_166, %c0_167], %199 {strides = array<i32>} : memref<64x384xbf16, #tpu.memory_space<vmem>>, vector<64x128xbf16>,
    %201 = arith.truncf %192 : vector<64x128xf32> to vector<64x128xbf16>
    %c0_168 = arith.constant 0 : index
    %c128_169 = arith.constant 128 : index
    %202 = vector.load %arg9[%c0_168, %c128_169] : memref<64x384xbf16, #tpu.memory_space<vmem>>, vector<64x128xbf16>
    tpu.vector_store %arg9[%c0_168, %c128_169], %201 {strides = array<i32>} : memref<64x384xbf16, #tpu.memory_space<vmem>>, vector<64x128xbf16>,
    %203 = arith.truncf %198 : vector<64x128xf32> to vector<64x128xbf16>
    %c0_170 = arith.constant 0 : index
    %c256_171 = arith.constant 256 : index
    %204 = vector.load %arg9[%c0_170, %c256_171] : memref<64x384xbf16, #tpu.memory_space<vmem>>, vector<64x128xbf16>
    tpu.vector_store %arg9[%c0_170, %c256_171], %203 {strides = array<i32>} : memref<64x384xbf16, #tpu.memory_space<vmem>>, vector<64x128xbf16>,
    %c0_172 = arith.constant 0 : index
    %c0_173 = arith.constant 0 : index
    %205 = vector.load %arg9[%c0_172, %c0_173] : memref<64x384xbf16, #tpu.memory_space<vmem>>, vector<64x384xbf16>
    %c3_174 = arith.constant 3 : index
    %c1_175 = arith.constant 1 : index
    %c0_176 = arith.constant 0 : index
    %c0_177 = arith.constant 0 : index
    %206 = vector.load %arg4[%c3_174, %c1_175, %c0_176, %c0_177] : memref<5x2x384x128xbf16, #tpu.memory_space<vmem>>, vector<1x1x384x128xbf16>
    %207 = vector.shape_cast %206 : vector<1x1x384x128xbf16> to vector<384x128xbf16>
    %cst_178 = arith.constant dense<0.000000e+00> : vector<64x128xf32>
    %208 = tpu.matmul %205, %207, %cst_178 {dimension_numbers = #tpu.dot_dimension_numbers<[1], [0], [0], [1], [0, 0, 1, 1], [], []>} : vector<64x384xbf16>, vector<384x128xbf16>, vector<64x128xf32> -> vector<64x128xf32>
    %c3_179 = arith.constant 3 : index
    %c1_180 = arith.constant 1 : index
    %c0_181 = arith.constant 0 : index
    %c0_182 = arith.constant 0 : index
    %209 = vector.load %arg5[%c3_179, %c1_180, %c0_181, %c0_182] : memref<5x2x1x128xf32, #tpu.memory_space<vmem>>, vector<1x1x1x128xf32>
    %210 = vector.shape_cast %209 : vector<1x1x1x128xf32> to vector<1x128xf32>
    %211 = vector.broadcast %210 : vector<1x128xf32> to vector<64x128xf32>
    %212 = arith.addf %208, %211 : vector<64x128xf32>
    %cst_183 = arith.constant 3.000000e-01 : f32
    %213 = vector.broadcast %cst_183 : f32 to vector<64x128xf32>
    %214 = arith.mulf %213, %212 : vector<64x128xf32>
    %215 = arith.addf %168, %214 : vector<64x128xf32>
    %cst_184 = arith.constant 0.000000e+00 : f32
    %216 = vector.broadcast %cst_184 : f32 to vector<64x128xf32>
    %217 = arith.maximumf %215, %216 : vector<64x128xf32>
    %c1_i32_185 = arith.constant 1 : i32
    %218 = tpu.dynamic_rotate %217 by %c1_i32_185 dim 0 : vector<64x128xf32>, i32 -> vector<64x128xf32>
    %cst_186 = arith.constant 0.000000e+00 : f32
    %219 = vector.broadcast %cst_186 : f32 to vector<64x128xf32>
    %220 = arith.select %18, %219, %218 : vector<64x128xi1>, vector<64x128xf32>
    %c63_i32_187 = arith.constant 63 : i32
    %221 = tpu.dynamic_rotate %217 by %c63_i32_187 dim 0 : vector<64x128xf32>, i32 -> vector<64x128xf32>
    %cst_188 = arith.constant 0.000000e+00 : f32
    %222 = vector.broadcast %cst_188 : f32 to vector<64x128xf32>
    %223 = arith.select %20, %222, %221 : vector<64x128xi1>, vector<64x128xf32>
    %224 = arith.truncf %220 : vector<64x128xf32> to vector<64x128xbf16>
    %c0_189 = arith.constant 0 : index
    %c0_190 = arith.constant 0 : index
    %225 = vector.load %arg9[%c0_189, %c0_190] : memref<64x384xbf16, #tpu.memory_space<vmem>>, vector<64x128xbf16>
    tpu.vector_store %arg9[%c0_189, %c0_190], %224 {strides = array<i32>} : memref<64x384xbf16, #tpu.memory_space<vmem>>, vector<64x128xbf16>,
    %226 = arith.truncf %217 : vector<64x128xf32> to vector<64x128xbf16>
    %c0_191 = arith.constant 0 : index
    %c128_192 = arith.constant 128 : index
    %227 = vector.load %arg9[%c0_191, %c128_192] : memref<64x384xbf16, #tpu.memory_space<vmem>>, vector<64x128xbf16>
    tpu.vector_store %arg9[%c0_191, %c128_192], %226 {strides = array<i32>} : memref<64x384xbf16, #tpu.memory_space<vmem>>, vector<64x128xbf16>,
    %228 = arith.truncf %223 : vector<64x128xf32> to vector<64x128xbf16>
    %c0_193 = arith.constant 0 : index
    %c256_194 = arith.constant 256 : index
    %229 = vector.load %arg9[%c0_193, %c256_194] : memref<64x384xbf16, #tpu.memory_space<vmem>>, vector<64x128xbf16>
    tpu.vector_store %arg9[%c0_193, %c256_194], %228 {strides = array<i32>} : memref<64x384xbf16, #tpu.memory_space<vmem>>, vector<64x128xbf16>,
    %c0_195 = arith.constant 0 : index
    %c0_196 = arith.constant 0 : index
    %230 = vector.load %arg9[%c0_195, %c0_196] : memref<64x384xbf16, #tpu.memory_space<vmem>>, vector<64x384xbf16>
    %c4 = arith.constant 4 : index
    %c0_197 = arith.constant 0 : index
    %c0_198 = arith.constant 0 : index
    %c0_199 = arith.constant 0 : index
    %231 = vector.load %arg4[%c4, %c0_197, %c0_198, %c0_199] : memref<5x2x384x128xbf16, #tpu.memory_space<vmem>>, vector<1x1x384x128xbf16>
    %232 = vector.shape_cast %231 : vector<1x1x384x128xbf16> to vector<384x128xbf16>
    %cst_200 = arith.constant dense<0.000000e+00> : vector<64x128xf32>
    %233 = tpu.matmul %230, %232, %cst_200 {dimension_numbers = #tpu.dot_dimension_numbers<[1], [0], [0], [1], [0, 0, 1, 1], [], []>} : vector<64x384xbf16>, vector<384x128xbf16>, vector<64x128xf32> -> vector<64x128xf32>
    %c4_201 = arith.constant 4 : index
    %c0_202 = arith.constant 0 : index
    %c0_203 = arith.constant 0 : index
    %c0_204 = arith.constant 0 : index
    %234 = vector.load %arg5[%c4_201, %c0_202, %c0_203, %c0_204] : memref<5x2x1x128xf32, #tpu.memory_space<vmem>>, vector<1x1x1x128xf32>
    %235 = vector.shape_cast %234 : vector<1x1x1x128xf32> to vector<1x128xf32>
    %236 = vector.broadcast %235 : vector<1x128xf32> to vector<64x128xf32>
    %237 = arith.addf %233, %236 : vector<64x128xf32>
    %cst_205 = arith.constant 0.000000e+00 : f32
    %238 = vector.broadcast %cst_205 : f32 to vector<64x128xf32>
    %239 = arith.maximumf %237, %238 : vector<64x128xf32>
    %c1_i32_206 = arith.constant 1 : i32
    %240 = tpu.dynamic_rotate %239 by %c1_i32_206 dim 0 : vector<64x128xf32>, i32 -> vector<64x128xf32>
    %cst_207 = arith.constant 0.000000e+00 : f32
    %241 = vector.broadcast %cst_207 : f32 to vector<64x128xf32>
    %242 = arith.select %18, %241, %240 : vector<64x128xi1>, vector<64x128xf32>
    %c63_i32_208 = arith.constant 63 : i32
    %243 = tpu.dynamic_rotate %239 by %c63_i32_208 dim 0 : vector<64x128xf32>, i32 -> vector<64x128xf32>
    %cst_209 = arith.constant 0.000000e+00 : f32
    %244 = vector.broadcast %cst_209 : f32 to vector<64x128xf32>
    %245 = arith.select %20, %244, %243 : vector<64x128xi1>, vector<64x128xf32>
    %246 = arith.truncf %242 : vector<64x128xf32> to vector<64x128xbf16>
    %c0_210 = arith.constant 0 : index
    %c0_211 = arith.constant 0 : index
    %247 = vector.load %arg9[%c0_210, %c0_211] : memref<64x384xbf16, #tpu.memory_space<vmem>>, vector<64x128xbf16>
    tpu.vector_store %arg9[%c0_210, %c0_211], %246 {strides = array<i32>} : memref<64x384xbf16, #tpu.memory_space<vmem>>, vector<64x128xbf16>,
    %248 = arith.truncf %239 : vector<64x128xf32> to vector<64x128xbf16>
    %c0_212 = arith.constant 0 : index
    %c128_213 = arith.constant 128 : index
    %249 = vector.load %arg9[%c0_212, %c128_213] : memref<64x384xbf16, #tpu.memory_space<vmem>>, vector<64x128xbf16>
    tpu.vector_store %arg9[%c0_212, %c128_213], %248 {strides = array<i32>} : memref<64x384xbf16, #tpu.memory_space<vmem>>, vector<64x128xbf16>,
    %250 = arith.truncf %245 : vector<64x128xf32> to vector<64x128xbf16>
    %c0_214 = arith.constant 0 : index
    %c256_215 = arith.constant 256 : index
    %251 = vector.load %arg9[%c0_214, %c256_215] : memref<64x384xbf16, #tpu.memory_space<vmem>>, vector<64x128xbf16>
    tpu.vector_store %arg9[%c0_214, %c256_215], %250 {strides = array<i32>} : memref<64x384xbf16, #tpu.memory_space<vmem>>, vector<64x128xbf16>,
    %c0_216 = arith.constant 0 : index
    %c0_217 = arith.constant 0 : index
    %252 = vector.load %arg9[%c0_216, %c0_217] : memref<64x384xbf16, #tpu.memory_space<vmem>>, vector<64x384xbf16>
    %c4_218 = arith.constant 4 : index
    %c1_219 = arith.constant 1 : index
    %c0_220 = arith.constant 0 : index
    %c0_221 = arith.constant 0 : index
    %253 = vector.load %arg4[%c4_218, %c1_219, %c0_220, %c0_221] : memref<5x2x384x128xbf16, #tpu.memory_space<vmem>>, vector<1x1x384x128xbf16>
    %254 = vector.shape_cast %253 : vector<1x1x384x128xbf16> to vector<384x128xbf16>
    %cst_222 = arith.constant dense<0.000000e+00> : vector<64x128xf32>
    %255 = tpu.matmul %252, %254, %cst_222 {dimension_numbers = #tpu.dot_dimension_numbers<[1], [0], [0], [1], [0, 0, 1, 1], [], []>} : vector<64x384xbf16>, vector<384x128xbf16>, vector<64x128xf32> -> vector<64x128xf32>
    %c4_223 = arith.constant 4 : index
    %c1_224 = arith.constant 1 : index
    %c0_225 = arith.constant 0 : index
    %c0_226 = arith.constant 0 : index
    %256 = vector.load %arg5[%c4_223, %c1_224, %c0_225, %c0_226] : memref<5x2x1x128xf32, #tpu.memory_space<vmem>>, vector<1x1x1x128xf32>
    %257 = vector.shape_cast %256 : vector<1x1x1x128xf32> to vector<1x128xf32>
    %258 = vector.broadcast %257 : vector<1x128xf32> to vector<64x128xf32>
    %259 = arith.addf %255, %258 : vector<64x128xf32>
    %cst_227 = arith.constant 3.000000e-01 : f32
    %260 = vector.broadcast %cst_227 : f32 to vector<64x128xf32>
    %261 = arith.mulf %260, %259 : vector<64x128xf32>
    %262 = arith.addf %215, %261 : vector<64x128xf32>
    %c0_228 = arith.constant 0 : index
    %c0_229 = arith.constant 0 : index
    %263 = vector.load %arg6[%c0_228, %c0_229] : memref<16x128xf32, #tpu.memory_space<vmem>>, vector<16x128xf32>
    %c0_230 = arith.constant 0 : index
    %c0_231 = arith.constant 0 : index
    %264 = vector.load %arg7[%c0_230, %c0_231] : memref<1x1xf32, #tpu.memory_space<vmem>>, vector<1x1xf32>
    %265 = vector.extract_strided_slice %262 {offsets = [0, 0], sizes = [16, 128], strides = [1, 1]} : vector<64x128xf32> to vector<16x128xf32>
    %266 = arith.mulf %265, %263 : vector<16x128xf32>
    %cst_232 = arith.constant dense<0.000000e+00> : vector<16xf32>
    %267 = vector.multi_reduction <add>, %266, %cst_232 [1] : vector<16x128xf32> to vector<16xf32>
    %268 = vector.shape_cast %267 : vector<16xf32> to vector<16x1xf32>
    %cst_233 = arith.constant dense<0.000000e+00> : vector<1xf32>
    %269 = vector.multi_reduction <add>, %268, %cst_233 [0] : vector<16x1xf32> to vector<1xf32>
    %270 = vector.shape_cast %269 : vector<1xf32> to vector<1x1xf32>
    %271 = arith.addf %270, %264 : vector<1x1xf32>
    %c0_234 = arith.constant 0 : index
    %c0_235 = arith.constant 0 : index
    %c0_236 = arith.constant 0 : index
    %272 = vector.load %arg8[%c0_234, %c0_235, %c0_236] : memref<4x1x1xf32, #tpu.memory_space<vmem>>, vector<1x1x1xf32>
    %273 = vector.shape_cast %272 : vector<1x1x1xf32> to vector<1x1xf32>
    %274 = vector.shape_cast %271 : vector<1x1xf32> to vector<1x1x1xf32>
    tpu.vector_store %arg8[%c0_234, %c0_235, %c0_236], %274 {strides = array<i32>} : memref<4x1x1xf32, #tpu.memory_space<vmem>>, vector<1x1x1xf32>,
    %275 = vector.extract_strided_slice %262 {offsets = [16, 0], sizes = [16, 128], strides = [1, 1]} : vector<64x128xf32> to vector<16x128xf32>
    %276 = arith.mulf %275, %263 : vector<16x128xf32>
    %cst_237 = arith.constant dense<0.000000e+00> : vector<16xf32>
    %277 = vector.multi_reduction <add>, %276, %cst_237 [1] : vector<16x128xf32> to vector<16xf32>
    %278 = vector.shape_cast %277 : vector<16xf32> to vector<16x1xf32>
    %cst_238 = arith.constant dense<0.000000e+00> : vector<1xf32>
    %279 = vector.multi_reduction <add>, %278, %cst_238 [0] : vector<16x1xf32> to vector<1xf32>
    %280 = vector.shape_cast %279 : vector<1xf32> to vector<1x1xf32>
    %281 = arith.addf %280, %264 : vector<1x1xf32>
    %c1_239 = arith.constant 1 : index
    %c0_240 = arith.constant 0 : index
    %c0_241 = arith.constant 0 : index
    %282 = vector.load %arg8[%c1_239, %c0_240, %c0_241] : memref<4x1x1xf32, #tpu.memory_space<vmem>>, vector<1x1x1xf32>
    %283 = vector.shape_cast %282 : vector<1x1x1xf32> to vector<1x1xf32>
    %284 = vector.shape_cast %281 : vector<1x1xf32> to vector<1x1x1xf32>
    tpu.vector_store %arg8[%c1_239, %c0_240, %c0_241], %284 {strides = array<i32>} : memref<4x1x1xf32, #tpu.memory_space<vmem>>, vector<1x1x1xf32>,
    %285 = vector.extract_strided_slice %262 {offsets = [32, 0], sizes = [16, 128], strides = [1, 1]} : vector<64x128xf32> to vector<16x128xf32>
    %286 = arith.mulf %285, %263 : vector<16x128xf32>
    %cst_242 = arith.constant dense<0.000000e+00> : vector<16xf32>
    %287 = vector.multi_reduction <add>, %286, %cst_242 [1] : vector<16x128xf32> to vector<16xf32>
    %288 = vector.shape_cast %287 : vector<16xf32> to vector<16x1xf32>
    %cst_243 = arith.constant dense<0.000000e+00> : vector<1xf32>
    %289 = vector.multi_reduction <add>, %288, %cst_243 [0] : vector<16x1xf32> to vector<1xf32>
    %290 = vector.shape_cast %289 : vector<1xf32> to vector<1x1xf32>
    %291 = arith.addf %290, %264 : vector<1x1xf32>
    %c2_244 = arith.constant 2 : index
    %c0_245 = arith.constant 0 : index
    %c0_246 = arith.constant 0 : index
    %292 = vector.load %arg8[%c2_244, %c0_245, %c0_246] : memref<4x1x1xf32, #tpu.memory_space<vmem>>, vector<1x1x1xf32>
    %293 = vector.shape_cast %292 : vector<1x1x1xf32> to vector<1x1xf32>
    %294 = vector.shape_cast %291 : vector<1x1xf32> to vector<1x1x1xf32>
    tpu.vector_store %arg8[%c2_244, %c0_245, %c0_246], %294 {strides = array<i32>} : memref<4x1x1xf32, #tpu.memory_space<vmem>>, vector<1x1x1xf32>,
    %295 = vector.extract_strided_slice %262 {offsets = [48, 0], sizes = [16, 128], strides = [1, 1]} : vector<64x128xf32> to vector<16x128xf32>
    %296 = arith.mulf %295, %263 : vector<16x128xf32>
    %cst_247 = arith.constant dense<0.000000e+00> : vector<16xf32>
    %297 = vector.multi_reduction <add>, %296, %cst_247 [1] : vector<16x128xf32> to vector<16xf32>
    %298 = vector.shape_cast %297 : vector<16xf32> to vector<16x1xf32>
    %cst_248 = arith.constant dense<0.000000e+00> : vector<1xf32>
    %299 = vector.multi_reduction <add>, %298, %cst_248 [0] : vector<16x1xf32> to vector<1xf32>
    %300 = vector.shape_cast %299 : vector<1xf32> to vector<1x1xf32>
    %301 = arith.addf %300, %264 : vector<1x1xf32>
    %c3_249 = arith.constant 3 : index
    %c0_250 = arith.constant 0 : index
    %c0_251 = arith.constant 0 : index
    %302 = vector.load %arg8[%c3_249, %c0_250, %c0_251] : memref<4x1x1xf32, #tpu.memory_space<vmem>>, vector<1x1x1xf32>
    %303 = vector.shape_cast %302 : vector<1x1x1xf32> to vector<1x1xf32>
    %304 = vector.shape_cast %301 : vector<1x1xf32> to vector<1x1x1xf32>
    tpu.vector_store %arg8[%c3_249, %c0_250, %c0_251], %304 {strides = array<i32>} : memref<4x1x1xf32, #tpu.memory_space<vmem>>, vector<1x1x1xf32>,
    return
  }
  func.func @transform_0(%arg0: i32) -> (i32, i32, i32) {
    %c0_i32 = arith.constant 0 : i32
    %c0_i32_0 = arith.constant 0 : i32
    %c0_i32_1 = arith.constant 0 : i32
    return %arg0, %c0_i32, %c0_i32_0 : i32, i32, i32
  }
  func.func @transform_1(%arg0: i32) -> (i32, i32) {
    %c0_i32 = arith.constant 0 : i32
    %c0_i32_0 = arith.constant 0 : i32
    %c0_i32_1 = arith.constant 0 : i32
    return %c0_i32, %c0_i32_0 : i32, i32
  }
  func.func @transform_2(%arg0: i32) -> (i32, i32) {
    %c0_i32 = arith.constant 0 : i32
    %c0_i32_0 = arith.constant 0 : i32
    %c0_i32_1 = arith.constant 0 : i32
    return %c0_i32, %c0_i32_0 : i32, i32
  }
  func.func @transform_3(%arg0: i32) -> (i32, i32, i32, i32) {
    %c0_i32 = arith.constant 0 : i32
    %c0_i32_0 = arith.constant 0 : i32
    %c0_i32_1 = arith.constant 0 : i32
    %c0_i32_2 = arith.constant 0 : i32
    %c0_i32_3 = arith.constant 0 : i32
    return %c0_i32, %c0_i32_0, %c0_i32_1, %c0_i32_2 : i32, i32, i32, i32
  }
  func.func @transform_4(%arg0: i32) -> (i32, i32, i32, i32) {
    %c0_i32 = arith.constant 0 : i32
    %c0_i32_0 = arith.constant 0 : i32
    %c0_i32_1 = arith.constant 0 : i32
    %c0_i32_2 = arith.constant 0 : i32
    %c0_i32_3 = arith.constant 0 : i32
    return %c0_i32, %c0_i32_0, %c0_i32_1, %c0_i32_2 : i32, i32, i32, i32
  }
  func.func @transform_5(%arg0: i32) -> (i32, i32) {
    %c0_i32 = arith.constant 0 : i32
    %c0_i32_0 = arith.constant 0 : i32
    %c0_i32_1 = arith.constant 0 : i32
    return %c0_i32, %c0_i32_0 : i32, i32
  }
  func.func @transform_6(%arg0: i32) -> (i32, i32) {
    %c0_i32 = arith.constant 0 : i32
    %c0_i32_0 = arith.constant 0 : i32
    %c0_i32_1 = arith.constant 0 : i32
    return %c0_i32, %c0_i32_0 : i32, i32
  }
  func.func @transform_7(%arg0: i32) -> (i32, i32, i32) {
    %c0_i32 = arith.constant 0 : i32
    %c0_i32_0 = arith.constant 0 : i32
    %c0_i32_1 = arith.constant 0 : i32
    return %arg0, %c0_i32, %c0_i32_0 : i32, i32, i32
  }
}

</mosaic_0001>

<bundles_post_ra>
// kernel: tpu_custom_call.1
= control target key start
LH: loop header
LB: loop body
LE: loop exit
PB: predicated region body
PF: predicated region fallthrough
CT: control target
= control target key end

     0   :  { %s9841_s0 = inlined_call_operand.vmem [shape: bf16[8,16,4], index: 0, kind: input, shape index: {}]   ;;  %s9842_s1 = inlined_call_operand.vmem [shape: bf16[4,128], index: 1, kind: input, shape index: {}]   ;;  %s9843_s2 = inlined_call_operand.vmem [shape: f32[1,128], index: 2, kind: input, shape index: {}]   ;;  %s9844_s3 = inlined_call_operand.hbm [shape: bf16[5,2,384,128], index: 3, kind: input, shape index: {}]   ;;  %s9845_s4 = inlined_call_operand.vmem [shape: f32[5,2,1,128], index: 4, kind: input, shape index: {}]   ;;  %s9846_s5 = inlined_call_operand.vmem [shape: f32[16,128], index: 5, kind: input, shape index: {}]   ;;  %s9847_s6 = inlined_call_operand.<no memory space> [shape: f32[1,1], index: 6, kind: input, shape index: {}]   ;;  %s9848_s7 = inlined_call_operand.vmem [shape: f32[8,1,1], index: 7, kind: output, shape index: {}]  }
   0x1   :  { %v12_v0 = vstv %s9847_s6 }
   0x2   :  { %13 = vst [vmem:[#allocation3] sm:$0x1] %v12_v0 }
   0x3   :  { %14 = vsyncpa [#allocation5], 0  ;;  %s8753_s26 = smov 0  }
   0x4 LB: > { %s6619_s27 = sadd.s32 4294967295, %s8705_s26   ;;  %p6621_p0 = scmp.ge.s32.totalorder %s8705_s26, 1  ;;  %s8705_s26 = sphi %s8753_s26, %s20_s26  }
   0x5   : > { %p203_p1 = scmp.lt.s32.totalorder %s8705_s26, 3  ;;  %s8707_s28 = smov [#allocation4]  }
   0x6   : > { %s221_s29 = sshll.u32 %s8707_s28, 4  ;;  %p8765_p3 = scmp.eq.s32.totalorder %s6619_s27, 0  ;;  %s222_s29 = int_to_ptr.vmem [resolvable:$true] %s221_s29 }
   0x7   : > { %p8761_p2 = pnand %p6621_p0, %p203_p1  ;;  %s8680_s8 = scalar_lea.vmem %s222_s29, 30720 }
   0x8   : > { %p8681_p7 = scmp.ne.s32.totalorder %s222_s29, %s8680_s8  ;;  %p8688_p10 = scmp.lt.s32.totalorder %s222_s29, %s222_s29 }
   0x9   : > { %p8284_p4 = pneg %p8761_p2  ;;  %p8689_p11 = scmp.lt.s32.totalorder %s8680_s8, %s8680_s8 }
   0xb   : > { %p8285_p5 = pnand %p8765_p3, %p8284_p4  ;;  %p8690_p12 = por %p8689_p11, %p8688_p10 }
   0xd   : > { %p8671_p6 = pneg %p8285_p5 }
   0xf   : > { %p8683_p8 = pnand %p8681_p7, %p8671_p6 }
  0x11   : > { %p8684_p9 = pneg %p8683_p8 }
  0x13   : > { %p8691_p13 = pnand %p8690_p12, %p8684_p9 }
  0x15   : > { %8694 = shalt.err (!%p8691_p13)
}
  0x16   : > { %s8708_s9 = smov 64   ;;  %s8709_s10 = smov 4  }
  0x17   : > { %8287 = dma.hbm_to_vmem [thread:$0]  (!%p8285_p5), %s9844_s3, 30720, %s222_s29, [#allocation5], %s8708_s9, %s8708_s9, %s8709_s10  }
  0x18   : > { %256 = sbr.rel (%p8761_p2) target bundleno = 2903 (0xb57), region = 48 }
  0x1d   : > { %8700 = dma.done.wait (%p8765_p3), [#allocation5], 30720  }
  0x1e   : > { %8702 = vsyncadd (%p8765_p3), [#allocation5], 4294936576  ;;  %s6626_s13 = sshll.u32 %s6619_s27, 2  ;;  %vm471_vm0 = vcmask 1041408   ;;  %vm458_vm1 = vcmask 31744   ;;  %v8305_v6 = vld [vmem:[#allocation4 + $0xb8] sm:$0xff]   ;;  %v301_v31 = vlaneseq }
  0x1f   : > { %p289_p0 = scmp.lt.s32.totalorder %s6626_s13, 7  ;;  %v430_v1 = vld [vmem:[%s9842_s1] sm:$0x3]  ;;  %v8308_v9 = vld [vmem:[#allocation4 + $0xb0] sm:$0xff]   ;;  %v8311_v12 = vld [vmem:[#allocation4 + $0xa8] sm:$0xff]   ;;  %vm6507_vm12 = vcmask 0  }
  0x20   : > { %8279 = vmatprep.subr.msk.bf16.mxu0 %vm471_vm0, %v430_v1  ;;  %v473_v2 = vsel %vm471_vm0, %v430_v1, 0  ;;  %v8306_v8 = vld [vmem:[#allocation4 + $0x78] sm:$0xff]   ;;  %v8309_v11 = vld [vmem:[#allocation4 + $0x70] sm:$0xff]   ;;  %v8312_v14 = vld [vmem:[#allocation4 + $0x68] sm:$0xff]   ;;  %v8791_v32 = vshrl.u32 %v301_v31, 7 }
  0x21   : > { %s9868_s13 = smov (!%p289_p0, %s6626_s13), 7  ;;  %8030 = vmatpush3.bf16.msra.mxu0 %v473_v2  ;;  %v8307_v10 = vld [vmem:[#allocation4 + $0x38] sm:$0xff]   ;;  %7509 = vmatprep.subr.bf16.mxu1 %v8306_v8  ;;  %v8310_v13 = vld [vmem:[#allocation4 + $0x30] sm:$0xff]   ;;  %v8314_v15 = vld [vmem:[#allocation4 + $0xa0] sm:$0xff]  }
  0x22   : > { %s7263_s14 = sshll.u32 %s9868_s13, 3  ;;  %8039 = vmatprep.subr.bf16.mxu0 %v8305_v6  ;;  %7510 = vmatpush3.bf16.msra.mxu1 %v8307_v10  ;;  %v8313_v16 = vld [vmem:[#allocation4 + $0x28] sm:$0xff]   ;;  %v8315_v17 = vld [vmem:[#allocation4 + $0x60] sm:$0xff]   ;;  %v8317_v18 = vld [vmem:[#allocation4 + $0x98] sm:$0xff]   ;;  %v303_v34 = vadd.s32 8, %v8791_v32  ;;  %v304_v35 = vadd.s32 16, %v8791_v32  ;;  %s9828_s27 = scalar_lea.vmem %s9848_s7, %s9868_s13 }
  0x23   : > { %s293_s17 = scalar_lea.vmem %s9841_s0, %s7263_s14  ;;  %7511 = vmatprep.subr.bf16.mxu1 %v8309_v11  ;;  %v8316_v19 = vld [vmem:[#allocation4 + $0x20] sm:$0xff]   ;;  %v8318_v20 = vld [vmem:[#allocation4 + $0x58] sm:$0xff]   ;;  %v8320_v21 = vld [vmem:[#allocation4 + $0x90] sm:$0xff]   ;;  %v8804_v41 = vadd.s32 24, %v8791_v32  ;;  %v306_v44 = vadd.s32 32, %v8791_v32  ;;  %v8812_v46 = vadd.s32 56, %v8791_v32 }
  0x24   : > { %v8301_v3 = vld [vmem:[%s293_s17] sm:$0xff]   ;;  %v8302_v4 = vld [vmem:[%s293_s17 + $0x8] sm:$0xff]   ;;  %v8303_v5 = vld [vmem:[%s293_s17 + $0x10] sm:$0xff]   ;;  %v321_v39 = vand.u32 15, %v303_v34  ;;  %v328_v40 = vand.u32 15, %v304_v35  ;;  %v8815_v47 = vadd.s32 40, %v8791_v32 }
  0x25   : > { %8031 = vmatprep.mubr.msk.bf16.mxu0 %vm458_vm1, %v8301_v3  ;;  %v8304_v7 = vld [vmem:[%s293_s17 + $0x18] sm:$0xff]   ;;  %v8323_v24 = vld [vmem:[#allocation4 + $0x88] sm:$0xff]   ;;  %v8326_v27 = vld [vmem:[#allocation4 + $0x80] sm:$0xff]   ;;  %vm556_vm2 = vcmp.lt.s32.totalorder %v8791_v32, 1  ;;  %vm581_vm3 = vcmp.lt.s32.totalorder %v8791_v32, 7  ;;  %v335_v54 = vand.u32 15, %v8804_v41 }
  0x26   : > { %8032 = vmatmul.mubr.msk.bf16.vlgmr.msra.gmra.mxu0 %vm458_vm1, %v8302_v4  ;;  %7512 = vmatpush3.bf16.msra.mxu1 %v8310_v13  ;;  %v8319_v22 = vld [vmem:[#allocation4 + $0x18] sm:$0xff]   ;;  %v8321_v23 = vld [vmem:[#allocation4 + $0x50] sm:$0xff]   ;;  %v8324_v26 = vld [vmem:[#allocation4 + $0x48] sm:$0xff]   ;;  %vm8825_vm4 = vcmp.eq.s32.totalorder %v328_v40, 0  ;;  %vm8829_vm5 = vcmp.eq.s32.totalorder %v321_v39, 15  ;;  %v342_v57 = vand.u32 15, %v306_v44 }
  0x27   : > { %8035 = vmatprep.mubr.msk.bf16.mxu0 %vm458_vm1, %v8303_v5  ;;  %8040 = vmatpush3.bf16.msra.mxu0 %v8305_v6  ;;  %v8322_v25 = vld [vmem:[#allocation4 + $0x10] sm:$0xff]   ;;  %v8325_v28 = vld [vmem:[#allocation4 + $0x8] sm:$0xff]   ;;  %v8328_v29 = vld [vmem:[#allocation4 + $0x40] sm:$0xff]   ;;  %v314_v58 = vand.u32 15, %v8791_v32  ;;  %v363_v61 = vand.u32 15, %v8812_v46  ;;  %v308_v62 = vadd.s32 48, %v8791_v32 }
  0x28   : > { %8041 = vmatprep.subr.bf16.mxu0 %v8308_v9  ;;  %7513 = vmatprep.subr.bf16.mxu1 %v8312_v14  ;;  %v8329_v30 = vld [vmem:[#allocation4] sm:$0xff]   ;;  %v8796_v33 = vld [vmem:[%s9843_s2] ss:$0 sm:$0xff]  ;;  %v349_v63 = vand.u32 15, %v8815_v47  ;;  %vm8884_vm6 = vcmp.eq.s32.totalorder %v342_v57, 0  ;;  %vm8889_vm7 = vcmp.eq.s32.totalorder %v335_v54, 15 }
  0x29   : > { %vm8893_vm8 = vcmp.eq.s32.totalorder %v314_v58, 0  ;;  %vm8903_vm9 = vcmp.eq.s32.totalorder %v363_v61, 15 }
  0x2a   : > { %7514 = vmatpush3.bf16.msra.mxu1 %v8313_v16  ;;  %vm8912_vm11 = vcmp.eq.s32.totalorder %v349_v63, 15 }
  0x2b   : > { %8042 = vmatpush3.bf16.msra.mxu0 %v8308_v9  ;;  %7515 = vmatprep.subr.bf16.mxu1 %v8315_v17 }
  0x2c   : > { %8043 = vmatprep.subr.bf16.mxu0 %v8311_v12 }
  0x2e   : > { %8036 = vmatmul.mubr.msk.bf16.gmra.mxu0 %vm458_vm1, %v8304_v7  ;;  %7516 = vmatpush3.bf16.msra.mxu1 %v8316_v19 }
  0x2f   : > { %8044 = vmatpush3.bf16.msra.mxu0 %v8311_v12  ;;  %7517 = vmatprep.subr.bf16.mxu1 %v8318_v20 }
  0x30   : > { %8045 = vmatprep.subr.bf16.mxu0 %v8314_v15 }
  0x32   : > { %7518 = vmatpush3.bf16.msra.mxu1 %v8319_v22 }
  0x33   : > { %8046 = vmatpush3.bf16.msra.mxu0 %v8314_v15  ;;  %7519 = vmatprep.subr.bf16.mxu1 %v8321_v23 }
  0x34   : > { %8047 = vmatprep.subr.bf16.mxu0 %v8317_v18 }
  0x36   : > { %7520 = vmatpush3.bf16.msra.mxu1 %v8322_v25 }
  0x37   : > { %8048 = vmatpush3.bf16.msra.mxu0 %v8317_v18  ;;  %7521 = vmatprep.subr.bf16.mxu1 %v8324_v26 }
  0x38   : > { %8049 = vmatprep.subr.bf16.mxu0 %v8320_v21 }
  0x3a   : > { %7522 = vmatpush3.bf16.msra.mxu1 %v8325_v28 }
  0x3b   : > { %8050 = vmatpush3.bf16.msra.mxu0 %v8320_v21  ;;  %7523 = vmatprep.subr.bf16.mxu1 %v8328_v29 }
  0x3c   : > { %8051 = vmatprep.subr.bf16.mxu0 %v8323_v24 }
  0x3e   : > { %7524 = vmatpush3.bf16.msra.mxu1 %v8329_v30  ;;  %v356_v30 = vand.u32 15, %v308_v62 }
  0x3f   : > { %8052 = vmatpush3.bf16.msra.mxu0 %v8323_v24 }
  0x40   : > { %8053 = vmatprep.subr.bf16.mxu0 %v8326_v27  ;;  %vm8908_vm10 = vcmp.eq.s32.totalorder %v356_v30, 0 }
  0x43   : > { %8054 = vmatpush3.bf16.msra.mxu0 %v8326_v27 }
  0xe6   : > { %v8033_v36 = vpop.f32.mrf.mxu0 }
  0xe7   : > { %v8801_v37 = vadd.f32 %v8033_v36, %v8796_v33 }
  0xe8   : > { %v509_v38 = vpop.f32.mrf.mxu0 }
  0xe9   : > { %v542_v42 = vmax.f32 %v8801_v37, 0.0  ;;  %v8808_v43 = vadd.f32 %v8796_v33, %v509_v38 }
  0xea   : > { %v8034_v45 = vpop.f32.mrf.mxu0 }
  0xeb   : > { %v7274_v48 = vpack.c.bf16 %v542_v42, %v542_v42  ;;  %v8818_v49 = vmax.f32 %v8808_v43, 0.0  ;;  %v8823_v50 = vadd.f32 %v8034_v45, %v8796_v33  ;;  %v550_v0 = vrot.slane %v542_v42, 7 }
  0xec   : > { %v512_v53 = vpop.f32.mrf.mxu0  ;;  %v575_v1 = vrot.slane %v542_v42, 1 }
  0xed   : > { %672 = vst [vmem:[#allocation2 + $0x1c] sm:$0xf] %v7274_v48  ;;  %v7272_v55 = vpack.c.bf16 %v8818_v49, %v8818_v49  ;;  %v8837_v56 = vadd.f32 %v8796_v33, %v512_v53  ;;  %v8841_v59 = vmax.f32 %v8823_v50, 0.0  ;;  %v548_v4 = vrot.slane %v8818_v49, 7 }
  0xee   : > { %v8037_v60 = vpop.f32.mrf.mxu0  ;;  %v573_v9 = vrot.slane %v8818_v49, 1 }
  0xef   : > { %670 = vst [vmem:[#allocation2 + $0x4] sm:$0xf] %v7272_v55  ;;  %v541_v2 = vmax.f32 %v8837_v56, 0.0  ;;  %v8848_v3 = vadd.f32 %v8037_v60, %v8796_v33  ;;  %v551_v5 = vrot.slane %v8841_v59, 7  ;;  %v576_v6 = vrot.slane %v8841_v59, 1 }
  0xf0   : > { %v7275_v7 = vpack.c.bf16 %v8841_v59, %v8841_v59  ;;  %v525_v8 = vpop.f32.mrf.mxu0 }
  0xf1   : > { %v549_v10 = vrot.slane %v541_v2, 7  ;;  %v574_v11 = vrot.slane %v541_v2, 1  ;;  %v7273_v12 = vpack.c.bf16 %v541_v2, %v541_v2  ;;  %v561_v13 = vsel %vm556_vm2, %v550_v0, %v551_v5 }
  0xf2   : > { %v586_v14 = vsel %vm581_vm3, %v575_v1, %v576_v6  ;;  %673 = vst [vmem:[#allocation2 + $0x28] sm:$0xf] %v7275_v7  ;;  %v8861_v15 = vmax.f32 %v8848_v3, 0.0  ;;  %v8864_v16 = vadd.f32 %v8796_v33, %v525_v8  ;;  %v8038_v17 = vpop.f32.mrf.mxu0  ;;  %v7267_v18 = vpack.c.bf16 %v561_v13, %v561_v13 }
  0xf3   : > { %v7282_v19 = vpack.c.bf16 %v586_v14, %v586_v14  ;;  %v562_v20 = vsel %vm556_vm2, %v549_v10, %v550_v0  ;;  %v563_v21 = vsel %vm556_vm2, %v548_v4, %v549_v10  ;;  %671 = vst [vmem:[#allocation2 + $0x10] sm:$0xf] %v7273_v12  ;;  %v587_v23 = vsel %vm581_vm3, %v574_v11, %v575_v1 }
  0xf4   : > { %v567_v22 = vsel %vm8825_vm4, 0.0, %v562_v20  ;;  %v588_v24 = vsel %vm581_vm3, %v573_v9, %v574_v11  ;;  %v7265_v25 = vpack.c.bf16 %v563_v21, %v563_v21  ;;  %v528_v26 = vpop.f32.mrf.mxu0  ;;  %633 = vst [vmem:[#allocation2 + $0x24] sm:$0xf] %v7267_v18  ;;  %v591_v27 = vsel %vm8829_vm5, 0.0, %v587_v23 }
  0xf5   : > { %712 = vst [vmem:[#allocation2 + $0x20] sm:$0xf] %v7282_v19  ;;  %v7266_v28 = vpack.c.bf16 %v567_v22, %v567_v22  ;;  %v7280_v29 = vpack.c.bf16 %v588_v24, %v588_v24  ;;  %v7281_v31 = vpack.c.bf16 %v591_v27, %v591_v27  ;;  %v7278_v34 = vpack.c.bf16 %v8861_v15, %v8861_v15 }
  0xf6   : > { %631 = vst [vmem:[#allocation2 + $0xc] sm:$0xf] %v7265_v25  ;;  %v544_v36 = vmax.f32 %v8864_v16, 0.0  ;;  %v8898_v40 = vadd.f32 %v8038_v17, %v8796_v33  ;;  %v8901_v41 = vadd.f32 %v8796_v33, %v528_v26  ;;  %v554_v54 = vrot.slane %v8861_v15, 7 }
  0xf7   : > { %632 = vst [vmem:[#allocation2 + $0x18] sm:$0xf] %v7266_v28  ;;  %710 = vst [vmem:[#allocation2 + $0x8] sm:$0xf] %v7280_v29  ;;  %v579_v55 = vrot.slane %v8861_v15, 1 }
  0xf8   : > { %711 = vst [vmem:[#allocation2 + $0x14] sm:$0xf] %v7281_v31  ;;  %676 = vst [vmem:[#allocation2 + $0x4c] sm:$0xf] %v7278_v34  ;;  %v552_v42 = vrot.slane %v544_v36, 7  ;;  %v577_v44 = vrot.slane %v544_v36, 1  ;;  %v7276_v45 = vpack.c.bf16 %v544_v36, %v544_v36 }
  0xf9   : > { %v547_v47 = vmax.f32 %v8898_v40, 0.0  ;;  %v545_v33 = vmax.f32 %v8901_v41, 0.0 }
  0xfa   : > { %v560_v57 = vsel %vm556_vm2, %v551_v5, %v552_v42  ;;  %v585_v58 = vsel %vm581_vm3, %v576_v6, %v577_v44  ;;  %674 = vst [vmem:[#allocation2 + $0x34] sm:$0xf] %v7276_v45 }
  0xfb   : > { %v569_v59 = vsel %vm8884_vm6, 0.0, %v560_v57  ;;  %v593_v60 = vsel %vm8889_vm7, 0.0, %v585_v58  ;;  %v555_v61 = vrot.slane %v547_v47, 7  ;;  %v580_v62 = vrot.slane %v547_v47, 1  ;;  %v724_v36 = vld [vmem:[#allocation2 + $0x24] sm:$0xff] }
  0xfc   : > { %v7268_v63 = vpack.c.bf16 %v569_v59, %v569_v59  ;;  %v7283_v0 = vpack.c.bf16 %v593_v60, %v593_v60  ;;  %v7279_v1 = vpack.c.bf16 %v547_v47, %v547_v47  ;;  %v553_v2 = vrot.slane %v545_v33, 7 }
  0xfd   : > { %v557_v7 = vsel %vm556_vm2, %v554_v54, %v555_v61  ;;  %v564_v5 = vsel %vm556_vm2, %v555_v61, %v548_v4  ;;  %v582_v6 = vsel %vm581_vm3, %v579_v55, %v580_v62  ;;  %v589_v8 = vsel %vm581_vm3, %v580_v62, %v573_v9  ;;  %v720_v28 = vld [vmem:[#allocation2 + $0xc] sm:$0xff]  ;;  %v8333_v62 = vld [vmem:[#allocation4 + $0x178] sm:$0xff]  }
  0xfe   : > { %634 = vst [vmem:[#allocation2 + $0x30] sm:$0xf] %v7268_v63  ;;  %713 = vst [vmem:[#allocation2 + $0x2c] sm:$0xf] %v7283_v0  ;;  %v565_v10 = vsel %vm8893_vm8, 0.0, %v564_v5  ;;  %v597_v11 = vsel %vm8903_vm9, 0.0, %v589_v8  ;;  %v7271_v12 = vpack.c.bf16 %v557_v7, %v557_v7  ;;  %v7286_v13 = vpack.c.bf16 %v582_v6, %v582_v6  ;;  %8063 = vmatprep.subr.bf16.mxu0 %v8333_v62 }
  0xff   : > { %677 = vst [vmem:[#allocation2 + $0x58] sm:$0xf] %v7279_v1  ;;  %v7264_v4 = vpack.c.bf16 %v565_v10, %v565_v10  ;;  %v7287_v14 = vpack.c.bf16 %v597_v11, %v597_v11  ;;  %v558_v15 = vsel %vm556_vm2, %v553_v2, %v554_v54  ;;  %v559_v49 = vsel %vm556_vm2, %v552_v42, %v553_v2  ;;  %v8327_v9 = vld [vmem:[#allocation2 + $0x8] ss:$12 sps:$4 sm:$0xff]   ;;  %v722_v29 = vld [vmem:[#allocation2 + $0x18] sm:$0xff] }
 0x100   : > { %637 = vst [vmem:[#allocation2 + $0x54] sm:$0xf] %v7271_v12  ;;  %716 = vst [vmem:[#allocation2 + $0x50] sm:$0xf] %v7286_v13  ;;  %v571_v17 = vsel %vm8908_vm10, 0.0, %v558_v15  ;;  %v578_v18 = vrot.slane %v545_v33, 1  ;;  %v7269_v19 = vpack.c.bf16 %v559_v49, %v559_v49  ;;  %v7277_v20 = vpack.c.bf16 %v545_v33, %v545_v33  ;;  %8055 = vmatprep.mubr.bf16.mxu0 %v8327_v9 }
 0x101   : > { %630 = vst [vmem:[#allocation2] sm:$0xf] %v7264_v4  ;;  %717 = vst [vmem:[#allocation2 + $0x5c] sm:$0xf] %v7287_v14  ;;  %v7270_v21 = vpack.c.bf16 %v571_v17, %v571_v17  ;;  %v6668_v42 = vcombine.high %v722_v29, %v724_v36  ;;  %v6667_v54 = vcombine.low %v722_v29, %v724_v36  ;;  %v8334_v63 = vld [vmem:[#allocation4 + $0x170] sm:$0xff]   ;;  %v8335_v0 = vld [vmem:[#allocation4 + $0x168] sm:$0xff]  }
 0x102   : > { %v583_v22 = vsel %vm581_vm3, %v578_v18, %v579_v55  ;;  %v584_v23 = vsel %vm581_vm3, %v577_v44, %v578_v18  ;;  %635 = vst [vmem:[#allocation2 + $0x3c] sm:$0xf] %v7269_v19  ;;  %675 = vst [vmem:[#allocation2 + $0x40] sm:$0xf] %v7277_v20  ;;  %v8337_v1 = vld [vmem:[#allocation4 + $0x160] sm:$0xff]   ;;  %v8336_v2 = vld [vmem:[#allocation4 + $0x138] sm:$0xff]  }
 0x103   : > { %v595_v24 = vsel %vm8912_vm11, 0.0, %v583_v22  ;;  %636 = vst [vmem:[#allocation2 + $0x48] sm:$0xf] %v7270_v21  ;;  %v7284_v25 = vpack.c.bf16 %v584_v23, %v584_v23  ;;  %v8338_v7 = vld [vmem:[#allocation4 + $0xf8] sm:$0xff]   ;;  %7561 = vmatprep.subr.bf16.mxu1 %v8336_v2  ;;  %v8339_v6 = vld [vmem:[#allocation4 + $0x130] sm:$0xff]   ;;  %v8342_v11 = vld [vmem:[#allocation4 + $0x128] sm:$0xff]  }
 0x104   : > { %v7285_v26 = vpack.c.bf16 %v595_v24, %v595_v24  ;;  %v8340_v5 = vld [vmem:[#allocation4 + $0x158] sm:$0xff]   ;;  %v8341_v8 = vld [vmem:[#allocation4 + $0xf0] sm:$0xff]   ;;  %v8344_v12 = vld [vmem:[#allocation4 + $0xe8] sm:$0xff]  }
 0x105   : > { %714 = vst [vmem:[#allocation2 + $0x38] sm:$0xf] %v7284_v25  ;;  %v8330_v27 = vld [vmem:[#allocation2 + $0x20] ss:$12 sps:$4 sm:$0xff]   ;;  %v726_v33 = vld [vmem:[#allocation2 + $0x30] sm:$0xff] }
 0x106   : > { %715 = vst [vmem:[#allocation2 + $0x44] sm:$0xf] %v7285_v26  ;;  %8056 = vmatmul.mubr.bf16.vlgmr.msra.gmra.mxu0 %v8330_v27  ;;  %v8343_v10 = vld [vmem:[#allocation4 + $0x150] sm:$0xff]   ;;  %v8346_v13 = vld [vmem:[#allocation4 + $0x148] sm:$0xff]   ;;  %v8345_v4 = vld [vmem:[#allocation4 + $0x120] sm:$0xff]  }
 0x107   : > { %v732_v58 = vld [vmem:[#allocation2 + $0x54] sm:$0xff]  ;;  %8064 = vmatpush3.bf16.msra.mxu0 %v8333_v62  ;;  %v8348_v14 = vld [vmem:[#allocation4 + $0xe0] sm:$0xff]   ;;  %v8355_v19 = vld [vmem:[#allocation4 + $0x108] sm:$0xff]  }
 0x108   : > { %v718_v30 = vld [vmem:[#allocation2] sm:$0xff]  ;;  %v8332_v45 = vld [vmem:[#allocation2 + $0x50] ss:$12 sps:$4 sm:$0xff]   ;;  %8065 = vmatprep.subr.bf16.mxu0 %v8334_v63 }
 0x109   : > { %v6665_v31 = vcombine.high %v718_v30, %v720_v28  ;;  %v6664_v34 = vcombine.low %v718_v30, %v720_v28  ;;  %v728_v47 = vld [vmem:[#allocation2 + $0x3c] sm:$0xff]  ;;  %v8352_v17 = vld [vmem:[#allocation4 + $0x110] sm:$0xff]   ;;  %v8356_v20 = vld [vmem:[#allocation4 + $0xc8] sm:$0xff]  }
 0x10a   : > { %v6671_v55 = vcombine.high %v726_v33, %v728_v47  ;;  %v730_v57 = vld [vmem:[#allocation2 + $0x48] sm:$0xff]  ;;  %v6670_v59 = vcombine.low %v726_v33, %v728_v47  ;;  %v8349_v49 = vld [vmem:[#allocation4 + $0x118] sm:$0xff]   ;;  %v8354_v18 = vld [vmem:[#allocation4 + $0xd0] sm:$0xff]  }
 0x10b   : > { %1029 = vmatprep.mubr.bf16.mxu1 %v6665_v31  ;;  %v6674_v60 = vcombine.high %v730_v57, %v732_v58  ;;  %v6673_v61 = vcombine.low %v730_v57, %v732_v58  ;;  %8066 = vmatpush3.bf16.msra.mxu0 %v8334_v63  ;;  %v8350_v15 = vld [vmem:[#allocation4 + $0x140] sm:$0xff]   ;;  %v8351_v9 = vld [vmem:[#allocation4 + $0xd8] sm:$0xff]  }
 0x10c   : > { %1030 = vmatmul.mubr.bf16.vlgmr.msra.gmra.mxu1 %v6664_v34  ;;  %8067 = vmatprep.subr.bf16.mxu0 %v8335_v0  ;;  %v8357_v21 = vld [vmem:[#allocation4 + $0x100] sm:$0xff]   ;;  %v8958_v26 = vld [vmem:[%s9845_s4] ss:$0 sm:$0xff] }
 0x10d   : > { %1037 = vmatprep.mubr.bf16.mxu1 %v6668_v42  ;;  %v8331_v44 = vld [vmem:[#allocation2 + $0x38] ss:$12 sps:$4 sm:$0xff]   ;;  %7562 = vmatpush3.bf16.msra.mxu1 %v8338_v7 }
 0x10e   : > { %8059 = vmatprep.mubr.bf16.mxu0 %v8331_v44  ;;  %7563 = vmatprep.subr.bf16.mxu1 %v8339_v6  ;;  %v8359_v22 = vld [vmem:[#allocation4 + $0xc0] sm:$0xff]  }
 0x10f   : > { %8060 = vmatmul.mubr.bf16.gmra.mxu0 %v8332_v45 }
 0x110   : > { %8068 = vmatpush3.bf16.msra.mxu0 %v8335_v0 }
 0x111   : > { %8069 = vmatprep.subr.bf16.mxu0 %v8337_v1  ;;  %7564 = vmatpush3.bf16.msra.mxu1 %v8341_v8 }
 0x112   : > { %7565 = vmatprep.subr.bf16.mxu1 %v8342_v11 }
 0x114   : > { %1038 = vmatmul.mubr.bf16.gmra.mxu1 %v6667_v54  ;;  %8070 = vmatpush3.bf16.msra.mxu0 %v8337_v1 }
 0x115   : > { %1045 = vmatprep.mubr.bf16.mxu1 %v6671_v55  ;;  %8071 = vmatprep.subr.bf16.mxu0 %v8340_v5 }
 0x116   : > { %7566 = vmatpush3.bf16.msra.mxu1 %v8344_v12 }
 0x117   : > { %7567 = vmatprep.subr.bf16.mxu1 %v8345_v4 }
 0x118   : > { %8072 = vmatpush3.bf16.msra.mxu0 %v8340_v5 }
 0x119   : > { %8073 = vmatprep.subr.bf16.mxu0 %v8343_v10 }
 0x11a   : > { %7568 = vmatpush3.bf16.msra.mxu1 %v8348_v14 }
 0x11b   : > { %7569 = vmatprep.subr.bf16.mxu1 %v8349_v49 }
 0x11c   : > { %1046 = vmatmul.mubr.bf16.gmra.mxu1 %v6670_v59  ;;  %8074 = vmatpush3.bf16.msra.mxu0 %v8343_v10 }
 0x11d   : > { %1053 = vmatprep.mubr.bf16.mxu1 %v6674_v60  ;;  %8075 = vmatprep.subr.bf16.mxu0 %v8346_v13 }
 0x11e   : > { %7570 = vmatpush3.bf16.msra.mxu1 %v8351_v9 }
 0x11f   : > { %7571 = vmatprep.subr.bf16.mxu1 %v8352_v17 }
 0x120   : > { %8076 = vmatpush3.bf16.msra.mxu0 %v8346_v13 }
 0x121   : > { %8077 = vmatprep.subr.bf16.mxu0 %v8350_v15 }
 0x122   : > { %7572 = vmatpush3.bf16.msra.mxu1 %v8354_v18 }
 0x123   : > { %7573 = vmatprep.subr.bf16.mxu1 %v8355_v19 }
 0x124   : > { %1054 = vmatmul.mubr.bf16.gmra.mxu1 %v6673_v61  ;;  %8078 = vmatpush3.bf16.msra.mxu0 %v8350_v15 }
 0x126   : > { %7574 = vmatpush3.bf16.msra.mxu1 %v8356_v20 }
 0x127   : > { %7575 = vmatprep.subr.bf16.mxu1 %v8357_v21 }
 0x12a   : > { %7576 = vmatpush3.bf16.msra.mxu1 %v8359_v22 }
 0x1c6   : > { %v8057_v23 = vpop.f32.mrf.mxu0 }
 0x1c8   : > { %v1096_v25 = vpop.f32.mrf.mxu0 }
 0x1ca   : > { %v8058_v31 = vpop.f32.mrf.mxu0 }
 0x1cc   : > { %v7525_v24 = vpop.f32.mrf.mxu1  ;;  %v1099_v33 = vpop.f32.mrf.mxu0 }
 0x1ce   : > { %v7526_v27 = vpop.f32.mrf.mxu1 }
 0x1cf   : > { %v7527_v28 = vadd.f32 %v7526_v27, %v7525_v24  ;;  %v8969_v6 = vpop.f32.mrf.mxu0 }
 0x1d0   : > { %v7528_v29 = vpop.f32.mrf.mxu1 }
 0x1d1   : > { %v1032_v30 = vadd.f32 %v7527_v28, %v8958_v26  ;;  %v1112_v18 = vpop.f32.mrf.mxu0 }
 0x1d2   : > { %v7529_v34 = vpop.f32.mrf.mxu1 }
 0x1d3   : > { %v1097_v36 = vadd.f32 %v1096_v25, %v1032_v30  ;;  %v7530_v42 = vadd.f32 %v7529_v34, %v7528_v29 }
 0x1d4   : > { %v7531_v44 = vpop.f32.mrf.mxu1 }
 0x1d5   : > { %v8961_v45 = vmax.f32 %v1097_v36, 0.0  ;;  %v1035_v47 = vadd.f32 %v7530_v42, %v8958_v26  ;;  %v8062_v36 = vpop.f32.mrf.mxu0 }
 0x1d6   : > { %v7532_v54 = vpop.f32.mrf.mxu1 }
 0x1d7   : > { %v7296_v55 = vpack.c.bf16 %v8961_v45, %v8961_v45  ;;  %v1100_v57 = vadd.f32 %v1099_v33, %v1035_v47  ;;  %v7533_v58 = vadd.f32 %v7532_v54, %v7531_v44  ;;  %v1135_v61 = vrot.slane %v8961_v45, 7 }
 0x1d8   : > { %v7534_v59 = vpop.f32.mrf.mxu1  ;;  %v1159_v62 = vrot.slane %v8961_v45, 1 }
 0x1d9   : > { %1255 = vst [vmem:[#allocation2 + $0x4] sm:$0xf] %v7296_v55  ;;  %v1128_v60 = vmax.f32 %v1100_v57, 0.0  ;;  %v1040_v63 = vadd.f32 %v7533_v58, %v8958_v26 }
 0x1da   : > { %v7535_v0 = vpop.f32.mrf.mxu1 }
 0x1db   : > { %v1136_v1 = vrot.slane %v1128_v60, 7  ;;  %v1160_v2 = vrot.slane %v1128_v60, 1  ;;  %v7297_v7 = vpack.c.bf16 %v1128_v60, %v1128_v60  ;;  %v7536_v5 = vadd.f32 %v7535_v0, %v7534_v59 }
 0x1dc   : > { %v1105_v8 = vadd.f32 %v8057_v23, %v1040_v63  ;;  %v7537_v10 = vpop.f32.mrf.mxu1 }
 0x1dd   : > { %v1149_v11 = vsel %vm556_vm2, %v1135_v61, %v1136_v1  ;;  %v1173_v12 = vsel %vm581_vm3, %v1159_v62, %v1160_v2  ;;  %1256 = vst [vmem:[#allocation2 + $0x10] sm:$0xf] %v7297_v7  ;;  %v1043_v13 = vadd.f32 %v7536_v5, %v8958_v26  ;;  %v1115_v7 = vpop.f32.mrf.mxu0 }
 0x1de   : > { %v7289_v4 = vpack.c.bf16 %v1149_v11, %v1149_v11  ;;  %v7304_v14 = vpack.c.bf16 %v1173_v12, %v1173_v12  ;;  %v1129_v15 = vmax.f32 %v1105_v8, 0.0  ;;  %v7538_v49 = vpop.f32.mrf.mxu1 }
 0x1df   : > { %v1108_v9 = vadd.f32 %v8058_v31, %v1043_v13  ;;  %v7539_v17 = vadd.f32 %v7538_v49, %v7537_v10 }
 0x1e0   : > { %1216 = vst [vmem:[#allocation2 + $0xc] sm:$0xf] %v7289_v4  ;;  %1295 = vst [vmem:[#allocation2 + $0x8] sm:$0xf] %v7304_v14  ;;  %v1137_v19 = vrot.slane %v1129_v15, 7  ;;  %v1161_v20 = vrot.slane %v1129_v15, 1  ;;  %v7298_v21 = vpack.c.bf16 %v1129_v15, %v1129_v15  ;;  %v7540_v22 = vpop.f32.mrf.mxu1 }
 0x1e1   : > { %v1130_v23 = vmax.f32 %v1108_v9, 0.0  ;;  %v1048_v24 = vadd.f32 %v7539_v17, %v8958_v26 }
 0x1e2   : > { %v1148_v25 = vsel %vm556_vm2, %v1136_v1, %v1137_v19  ;;  %v1172_v27 = vsel %vm581_vm3, %v1160_v2, %v1161_v20  ;;  %1257 = vst [vmem:[#allocation2 + $0x1c] sm:$0xf] %v7298_v21  ;;  %v7541_v28 = vpop.f32.mrf.mxu1 }
 0x1e3   : > { %v1153_v29 = vsel %vm8825_vm4, 0.0, %v1148_v25  ;;  %v1176_v30 = vsel %vm8829_vm5, 0.0, %v1172_v27  ;;  %v1138_v31 = vrot.slane %v1130_v23, 7  ;;  %v1162_v34 = vrot.slane %v1130_v23, 1 }
 0x1e4   : > { %v7290_v42 = vpack.c.bf16 %v1153_v29, %v1153_v29  ;;  %v7305_v44 = vpack.c.bf16 %v1176_v30, %v1176_v30  ;;  %v7299_v47 = vpack.c.bf16 %v1130_v23, %v1130_v23  ;;  %v1113_v33 = vadd.f32 %v1112_v18, %v1048_v24  ;;  %v7543_v54 = vpop.f32.mrf.mxu1 }
 0x1e5   : > { %v1147_v55 = vsel %vm556_vm2, %v1137_v19, %v1138_v31  ;;  %v1171_v57 = vsel %vm581_vm3, %v1161_v20, %v1162_v34  ;;  %v7542_v58 = vadd.f32 %v7541_v28, %v7540_v22 }
 0x1e6   : > { %1217 = vst [vmem:[#allocation2 + $0x18] sm:$0xf] %v7290_v42  ;;  %1296 = vst [vmem:[#allocation2 + $0x14] sm:$0xf] %v7305_v44  ;;  %v7291_v59 = vpack.c.bf16 %v1147_v55, %v1147_v55  ;;  %v7306_v60 = vpack.c.bf16 %v1171_v57, %v1171_v57  ;;  %v1131_v63 = vmax.f32 %v1113_v33, 0.0  ;;  %v7544_v0 = vpop.f32.mrf.mxu1 }
 0x1e7   : > { %1258 = vst [vmem:[#allocation2 + $0x28] sm:$0xf] %v7299_v47  ;;  %v1051_v1 = vadd.f32 %v7542_v58, %v8958_v26  ;;  %v7545_v2 = vadd.f32 %v7544_v0, %v7543_v54 }
 0x1e8   : > { %1218 = vst [vmem:[#allocation2 + $0x24] sm:$0xf] %v7291_v59  ;;  %1297 = vst [vmem:[#allocation2 + $0x20] sm:$0xf] %v7306_v60  ;;  %v1139_v5 = vrot.slane %v1131_v63, 7  ;;  %v1163_v8 = vrot.slane %v1131_v63, 1  ;;  %v7300_v10 = vpack.c.bf16 %v1131_v63, %v1131_v63  ;;  %v7546_v11 = vpop.f32.mrf.mxu1 }
 0x1e9   : > { %v1116_v12 = vadd.f32 %v1115_v7, %v1051_v1  ;;  %v1056_v13 = vadd.f32 %v7545_v2, %v8958_v26 }
 0x1ea   : > { %v1146_v4 = vsel %vm556_vm2, %v1138_v31, %v1139_v5  ;;  %v1170_v14 = vsel %vm581_vm3, %v1162_v34, %v1163_v8  ;;  %1259 = vst [vmem:[#allocation2 + $0x34] sm:$0xf] %v7300_v10  ;;  %v7547_v15 = vpop.f32.mrf.mxu1 }
 0x1eb   : > { %v1155_v49 = vsel %vm8884_vm6, 0.0, %v1146_v4  ;;  %v1178_v9 = vsel %vm8889_vm7, 0.0, %v1170_v14  ;;  %v1132_v17 = vmax.f32 %v1116_v12, 0.0  ;;  %v1121_v18 = vadd.f32 %v8969_v6, %v1056_v13  ;;  %v1305_v4 = vld [vmem:[#allocation2 + $0xc] sm:$0xff] }
 0x1ec   : > { %v7292_v19 = vpack.c.bf16 %v1155_v49, %v1155_v49  ;;  %v7307_v20 = vpack.c.bf16 %v1178_v9, %v1178_v9  ;;  %v7548_v21 = vadd.f32 %v7547_v15, %v7546_v11 }
 0x1ed   : > { %v1140_v22 = vrot.slane %v1132_v17, 7  ;;  %v1164_v23 = vrot.slane %v1132_v17, 1  ;;  %v7301_v24 = vpack.c.bf16 %v1132_v17, %v1132_v17  ;;  %v1133_v25 = vmax.f32 %v1121_v18, 0.0  ;;  %v8347_v28 = vld [vmem:[#allocation2 + $0x8] ss:$12 sps:$4 sm:$0xff]   ;;  %v1307_v17 = vld [vmem:[#allocation2 + $0x18] sm:$0xff] }
 0x1ee   : > { %1219 = vst [vmem:[#allocation2 + $0x30] sm:$0xf] %v7292_v19  ;;  %1298 = vst [vmem:[#allocation2 + $0x2c] sm:$0xf] %v7307_v20  ;;  %v1059_v27 = vadd.f32 %v7548_v21, %v8958_v26  ;;  %8079 = vmatprep.mubr.bf16.mxu0 %v8347_v28 }
 0x1ef   : > { %v1145_v29 = vsel %vm556_vm2, %v1139_v5, %v1140_v22  ;;  %v1169_v30 = vsel %vm581_vm3, %v1163_v8, %v1164_v23  ;;  %1260 = vst [vmem:[#allocation2 + $0x40] sm:$0xf] %v7301_v24  ;;  %v1141_v6 = vrot.slane %v1133_v25, 7  ;;  %v1165_v31 = vrot.slane %v1133_v25, 1 }
 0x1f0   : > { %v7293_v34 = vpack.c.bf16 %v1145_v29, %v1145_v29  ;;  %v7308_v42 = vpack.c.bf16 %v1169_v30, %v1169_v30  ;;  %v7302_v44 = vpack.c.bf16 %v1133_v25, %v1133_v25  ;;  %v1124_v47 = vadd.f32 %v8062_v36, %v1059_v27  ;;  %v8361_v29 = vld [vmem:[#allocation4 + $0x238] sm:$0xff]   ;;  %v8362_v30 = vld [vmem:[#allocation4 + $0x230] sm:$0xff]  }
 0x1f1   : > { %v1144_v33 = vsel %vm556_vm2, %v1140_v22, %v1141_v6  ;;  %v1168_v26 = vsel %vm581_vm3, %v1164_v23, %v1165_v31  ;;  %8087 = vmatprep.subr.bf16.mxu0 %v8361_v29 }
 0x1f2   : > { %1220 = vst [vmem:[#allocation2 + $0x3c] sm:$0xf] %v7293_v34  ;;  %1299 = vst [vmem:[#allocation2 + $0x38] sm:$0xf] %v7308_v42  ;;  %v1157_v54 = vsel %vm8908_vm10, 0.0, %v1144_v33  ;;  %v1180_v55 = vsel %vm8912_vm11, 0.0, %v1168_v26 }
 0x1f3   : > { %1261 = vst [vmem:[#allocation2 + $0x4c] sm:$0xf] %v7302_v44  ;;  %v1134_v57 = vmax.f32 %v1124_v47, 0.0  ;;  %v7294_v58 = vpack.c.bf16 %v1157_v54, %v1157_v54  ;;  %v7309_v59 = vpack.c.bf16 %v1180_v55, %v1180_v55  ;;  %v8364_v34 = vld [vmem:[#allocation4 + $0x1f8] sm:$0xff]   ;;  %v8367_v47 = vld [vmem:[#allocation4 + $0x1f0] sm:$0xff]   ;;  %v8370_v54 = vld [vmem:[#allocation4 + $0x1e8] sm:$0xff]  }
 0x1f4   : > { %v8366_v42 = vld [vmem:[#allocation4 + $0x1b8] sm:$0xff]   ;;  %7613 = vmatprep.subr.bf16.mxu1 %v8364_v34  ;;  %v8369_v33 = vld [vmem:[#allocation4 + $0x1b0] sm:$0xff]   ;;  %v8372_v55 = vld [vmem:[#allocation4 + $0x1a8] sm:$0xff]  }
 0x1f5   : > { %v1142_v36 = vrot.slane %v1134_v57, 7  ;;  %v1166_v60 = vrot.slane %v1134_v57, 1  ;;  %v7303_v63 = vpack.c.bf16 %v1134_v57, %v1134_v57  ;;  %1221 = vst [vmem:[#allocation2 + $0x48] sm:$0xf] %v7294_v58  ;;  %1300 = vst [vmem:[#allocation2 + $0x44] sm:$0xf] %v7309_v59 }
 0x1f6   : > { %v8353_v0 = vld [vmem:[#allocation2 + $0x20] ss:$12 sps:$4 sm:$0xff]   ;;  %v1311_v20 = vld [vmem:[#allocation2 + $0x30] sm:$0xff] }
 0x1f7   : > { %v1143_v1 = vsel %vm556_vm2, %v1141_v6, %v1142_v36  ;;  %v1150_v2 = vsel %vm556_vm2, %v1142_v36, %v1135_v61  ;;  %v1167_v7 = vsel %vm581_vm3, %v1165_v31, %v1166_v60  ;;  %v1174_v5 = vsel %vm581_vm3, %v1166_v60, %v1159_v62  ;;  %1262 = vst [vmem:[#allocation2 + $0x58] sm:$0xf] %v7303_v63  ;;  %v1309_v62 = vld [vmem:[#allocation2 + $0x24] sm:$0xff]  ;;  %v8368_v44 = vld [vmem:[#allocation4 + $0x218] sm:$0xff]   ;;  %v8371_v26 = vld [vmem:[#allocation4 + $0x210] sm:$0xff]  }
 0x1f8   : > { %v1151_v8 = vsel %vm8893_vm8, 0.0, %v1150_v2  ;;  %v1182_v10 = vsel %vm8903_vm9, 0.0, %v1174_v5  ;;  %v7295_v11 = vpack.c.bf16 %v1143_v1, %v1143_v1  ;;  %v7310_v12 = vpack.c.bf16 %v1167_v7, %v1167_v7  ;;  %8080 = vmatmul.mubr.bf16.vlgmr.msra.gmra.mxu0 %v8353_v0  ;;  %v8363_v6 = vld [vmem:[#allocation4 + $0x228] sm:$0xff]   ;;  %v8365_v31 = vld [vmem:[#allocation4 + $0x220] sm:$0xff]   ;;  %v8377_v60 = vld [vmem:[#allocation4 + $0x1d8] sm:$0xff]  }
 0x1f9   : > { %v7288_v13 = vpack.c.bf16 %v1151_v8, %v1151_v8  ;;  %v7311_v61 = vpack.c.bf16 %v1182_v10, %v1182_v10  ;;  %v6730_v18 = vcombine.high %v1307_v17, %v1309_v62  ;;  %v1313_v19 = vld [vmem:[#allocation2 + $0x3c] sm:$0xff]  ;;  %v6729_v21 = vcombine.low %v1307_v17, %v1309_v62  ;;  %8088 = vmatpush3.bf16.msra.mxu0 %v8361_v29  ;;  %v8374_v57 = vld [vmem:[#allocation4 + $0x208] sm:$0xff]   ;;  %v8380_v0 = vld [vmem:[#allocation4 + $0x1d0] sm:$0xff]  }
 0x1fa   : > { %1222 = vst [vmem:[#allocation2 + $0x54] sm:$0xf] %v7295_v11  ;;  %1301 = vst [vmem:[#allocation2 + $0x50] sm:$0xf] %v7310_v12  ;;  %v6733_v22 = vcombine.high %v1311_v20, %v1313_v19  ;;  %v6732_v25 = vcombine.low %v1311_v20, %v1313_v19  ;;  %8089 = vmatprep.subr.bf16.mxu0 %v8362_v30  ;;  %v8373_v58 = vld [vmem:[#allocation4 + $0x1e0] sm:$0xff]   ;;  %v8379_v63 = vld [vmem:[#allocation4 + $0x198] sm:$0xff]  }
 0x1fb   : > { %1215 = vst [vmem:[#allocation2] sm:$0xf] %v7288_v13  ;;  %1302 = vst [vmem:[#allocation2 + $0x5c] sm:$0xf] %v7311_v61  ;;  %v8376_v59 = vld [vmem:[#allocation4 + $0x1a0] sm:$0xff]   ;;  %v8382_v1 = vld [vmem:[#allocation4 + $0x190] sm:$0xff]  }
 0x1fc   : > { %v8358_v45 = vld [vmem:[#allocation2 + $0x38] ss:$12 sps:$4 sm:$0xff]   ;;  %v1315_v24 = vld [vmem:[#allocation2 + $0x48] sm:$0xff]  ;;  %v9036_v13 = vld [vmem:[%s9845_s4 + $0x1] ss:$0 sm:$0xff] }
 0x1fd   : > { %8083 = vmatprep.mubr.bf16.mxu0 %v8358_v45  ;;  %8090 = vmatpush3.bf16.msra.mxu0 %v8362_v30  ;;  %v8378_v36 = vld [vmem:[#allocation4 + $0x200] sm:$0xff]   ;;  %v8383_v2 = vld [vmem:[#allocation4 + $0x1c8] sm:$0xff]  }
 0x1fe   : > { %8091 = vmatprep.subr.bf16.mxu0 %v8363_v6  ;;  %v8384_v7 = vld [vmem:[#allocation4 + $0x188] sm:$0xff]   ;;  %v8385_v5 = vld [vmem:[#allocation4 + $0x1c0] sm:$0xff]  }
 0x1ff   : > { %v8387_v8 = vld [vmem:[#allocation4 + $0x180] sm:$0xff]  }
 0x201   : > { %v1317_v23 = vld [vmem:[#allocation2 + $0x54] sm:$0xff]  ;;  %8092 = vmatpush3.bf16.msra.mxu0 %v8363_v6 }
 0x202   : > { %v1303_v14 = vld [vmem:[#allocation2] sm:$0xff]  ;;  %v8360_v15 = vld [vmem:[#allocation2 + $0x50] ss:$12 sps:$4 sm:$0xff]   ;;  %v6736_v27 = vcombine.high %v1315_v24, %v1317_v23  ;;  %v6735_v28 = vcombine.low %v1315_v24, %v1317_v23  ;;  %8093 = vmatprep.subr.bf16.mxu0 %v8365_v31 }
 0x203   : > { %v6727_v49 = vcombine.high %v1303_v14, %v1305_v4  ;;  %v6726_v9 = vcombine.low %v1303_v14, %v1305_v4  ;;  %8084 = vmatmul.mubr.bf16.gmra.mxu0 %v8360_v15 }
 0x205   : > { %1616 = vmatprep.mubr.bf16.mxu1 %v6727_v49  ;;  %8094 = vmatpush3.bf16.msra.mxu0 %v8365_v31 }
 0x206   : > { %1617 = vmatmul.mubr.bf16.vlgmr.msra.gmra.mxu1 %v6726_v9  ;;  %8095 = vmatprep.subr.bf16.mxu0 %v8368_v44 }
 0x207   : > { %1624 = vmatprep.mubr.bf16.mxu1 %v6730_v18  ;;  %7614 = vmatpush3.bf16.msra.mxu1 %v8366_v42 }
 0x208   : > { %7615 = vmatprep.subr.bf16.mxu1 %v8367_v47 }
 0x209   : > { %8096 = vmatpush3.bf16.msra.mxu0 %v8368_v44 }
 0x20a   : > { %8097 = vmatprep.subr.bf16.mxu0 %v8371_v26 }
 0x20b   : > { %7616 = vmatpush3.bf16.msra.mxu1 %v8369_v33 }
 0x20c   : > { %7617 = vmatprep.subr.bf16.mxu1 %v8370_v54 }
 0x20d   : > { %8098 = vmatpush3.bf16.msra.mxu0 %v8371_v26 }
 0x20e   : > { %1625 = vmatmul.mubr.bf16.gmra.mxu1 %v6729_v21  ;;  %8099 = vmatprep.subr.bf16.mxu0 %v8374_v57 }
 0x20f   : > { %1632 = vmatprep.mubr.bf16.mxu1 %v6733_v22  ;;  %7618 = vmatpush3.bf16.msra.mxu1 %v8372_v55 }
 0x210   : > { %7619 = vmatprep.subr.bf16.mxu1 %v8373_v58 }
 0x211   : > { %8100 = vmatpush3.bf16.msra.mxu0 %v8374_v57 }
 0x212   : > { %8101 = vmatprep.subr.bf16.mxu0 %v8378_v36 }
 0x213   : > { %7620 = vmatpush3.bf16.msra.mxu1 %v8376_v59 }
 0x214   : > { %7621 = vmatprep.subr.bf16.mxu1 %v8377_v60 }
 0x215   : > { %8102 = vmatpush3.bf16.msra.mxu0 %v8378_v36 }
 0x216   : > { %1633 = vmatmul.mubr.bf16.gmra.mxu1 %v6732_v25 }
 0x217   : > { %1640 = vmatprep.mubr.bf16.mxu1 %v6736_v27  ;;  %7622 = vmatpush3.bf16.msra.mxu1 %v8379_v63 }
 0x218   : > { %7623 = vmatprep.subr.bf16.mxu1 %v8380_v0 }
 0x21b   : > { %7624 = vmatpush3.bf16.msra.mxu1 %v8382_v1 }
 0x21c   : > { %7625 = vmatprep.subr.bf16.mxu1 %v8383_v2 }
 0x21e   : > { %1641 = vmatmul.mubr.bf16.gmra.mxu1 %v6735_v28 }
 0x21f   : > { %7626 = vmatpush3.bf16.msra.mxu1 %v8384_v7 }
 0x220   : > { %7627 = vmatprep.subr.bf16.mxu1 %v8385_v5 }
 0x223   : > { %7628 = vmatpush3.bf16.msra.mxu1 %v8387_v8 }
 0x2b8   : > { %v8081_v10 = vpop.f32.mrf.mxu0 }
 0x2ba   : > { %v1683_v12 = vpop.f32.mrf.mxu0 }
 0x2bc   : > { %v8082_v14 = vpop.f32.mrf.mxu0 }
 0x2be   : > { %v1686_v20 = vpop.f32.mrf.mxu0 }
 0x2c3   : > { %v9047_v30 = vpop.f32.mrf.mxu0 }
 0x2c5   : > { %v1699_v33 = vpop.f32.mrf.mxu0 }
 0x2c6   : > { %v7577_v11 = vpop.f32.mrf.mxu1 }
 0x2c7   : > { %v9070_v8 = vpop.f32.mrf.mxu0 }
 0x2c8   : > { %v7578_v61 = vpop.f32.mrf.mxu1 }
 0x2c9   : > { %v7579_v45 = vadd.f32 %v7578_v61, %v7577_v11 }
 0x2ca   : > { %v7580_v4 = vpop.f32.mrf.mxu1 }
 0x2cb   : > { %v1619_v62 = vadd.f32 %v7579_v45, %v9036_v13 }
 0x2cc   : > { %v7581_v15 = vpop.f32.mrf.mxu1 }
 0x2cd   : > { %v1684_v49 = vadd.f32 %v1683_v12, %v1619_v62  ;;  %v7582_v9 = vadd.f32 %v7581_v15, %v7580_v4 }
 0x2ce   : > { %v7583_v17 = vpop.f32.mrf.mxu1 }
 0x2cf   : > { %v1714_v18 = vmul.f32 0.3, %v1684_v49  ;;  %v1622_v19 = vadd.f32 %v7582_v9, %v9036_v13 }
 0x2d0   : > { %v7584_v21 = vpop.f32.mrf.mxu1 }
 0x2d1   : > { %v9041_v22 = vadd.f32 %v1714_v18, %v8808_v43  ;;  %v1687_v23 = vadd.f32 %v1686_v20, %v1622_v19  ;;  %v7585_v24 = vadd.f32 %v7584_v21, %v7583_v17  ;;  %v1702_v19 = vpop.f32.mrf.mxu0 }
 0x2d2   : > { %v7586_v25 = vpop.f32.mrf.mxu1 }
 0x2d3   : > { %v9044_v27 = vmax.f32 %v9041_v22, 0.0  ;;  %v1715_v28 = vmul.f32 0.3, %v1687_v23  ;;  %v1627_v29 = vadd.f32 %v7585_v24, %v9036_v13 }
 0x2d4   : > { %v7587_v6 = vpop.f32.mrf.mxu1 }
 0x2d5   : > { %v7320_v31 = vpack.c.bf16 %v9044_v27, %v9044_v27  ;;  %v9052_v34 = vadd.f32 %v1715_v28, %v8837_v56  ;;  %v1692_v43 = vadd.f32 %v8081_v10, %v1627_v29  ;;  %v7588_v42 = vadd.f32 %v7587_v6, %v7586_v25 }
 0x2d6   : > { %v7589_v44 = vpop.f32.mrf.mxu1  ;;  %v1738_v26 = vrot.slane %v9044_v27, 7  ;;  %v1762_v54 = vrot.slane %v9044_v27, 1 }
 0x2d7   : > { %1858 = vst [vmem:[#allocation2 + $0x4] sm:$0xf] %v7320_v31  ;;  %v1731_v47 = vmax.f32 %v9052_v34, 0.0  ;;  %v1716_v55 = vmul.f32 0.3, %v1692_v43  ;;  %v1630_v57 = vadd.f32 %v7588_v42, %v9036_v13 }
 0x2d8   : > { %v7590_v58 = vpop.f32.mrf.mxu1 }
 0x2d9   : > { %v1739_v59 = vrot.slane %v1731_v47, 7  ;;  %v1763_v36 = vrot.slane %v1731_v47, 1  ;;  %v7321_v60 = vpack.c.bf16 %v1731_v47, %v1731_v47  ;;  %v7591_v56 = vadd.f32 %v7590_v58, %v7589_v44 }
 0x2da   : > { %v9059_v63 = vadd.f32 %v1716_v55, %v8801_v37  ;;  %v1695_v0 = vadd.f32 %v8082_v14, %v1630_v57  ;;  %v7592_v1 = vpop.f32.mrf.mxu1 }
 0x2db   : > { %v1752_v2 = vsel %vm556_vm2, %v1738_v26, %v1739_v59  ;;  %v1776_v7 = vsel %vm581_vm3, %v1762_v54, %v1763_v36  ;;  %1859 = vst [vmem:[#allocation2 + $0x10] sm:$0xf] %v7321_v60  ;;  %v1635_v5 = vadd.f32 %v7591_v56, %v9036_v13 }
 0x2dc   : > { %v7313_v10 = vpack.c.bf16 %v1752_v2, %v1752_v2  ;;  %v7328_v37 = vpack.c.bf16 %v1776_v7, %v1776_v7  ;;  %v1732_v11 = vmax.f32 %v9059_v63, 0.0  ;;  %v1717_v12 = vmul.f32 0.3, %v1695_v0  ;;  %v7593_v61 = vpop.f32.mrf.mxu1 }
 0x2dd   : > { %v1700_v45 = vadd.f32 %v1699_v33, %v1635_v5  ;;  %v7594_v4 = vadd.f32 %v7593_v61, %v7592_v1 }
 0x2de   : > { %1819 = vst [vmem:[#allocation2 + $0xc] sm:$0xf] %v7313_v10  ;;  %1898 = vst [vmem:[#allocation2 + $0x8] sm:$0xf] %v7328_v37  ;;  %v1740_v62 = vrot.slane %v1732_v11, 7  ;;  %v1764_v14 = vrot.slane %v1732_v11, 1  ;;  %v7322_v15 = vpack.c.bf16 %v1732_v11, %v1732_v11  ;;  %v9074_v49 = vadd.f32 %v1717_v12, %v8823_v50  ;;  %v7595_v9 = vpop.f32.mrf.mxu1 }
 0x2df   : > { %v1718_v17 = vmul.f32 0.3, %v1700_v45  ;;  %v1638_v18 = vadd.f32 %v7594_v4, %v9036_v13 }
 0x2e0   : > { %v1751_v20 = vsel %vm556_vm2, %v1739_v59, %v1740_v62  ;;  %v1775_v21 = vsel %vm581_vm3, %v1763_v36, %v1764_v14  ;;  %1860 = vst [vmem:[#allocation2 + $0x1c] sm:$0xf] %v7322_v15  ;;  %v1733_v23 = vmax.f32 %v9074_v49, 0.0  ;;  %v7596_v24 = vpop.f32.mrf.mxu1 }
 0x2e1   : > { %v1756_v25 = vsel %vm8825_vm4, 0.0, %v1751_v20  ;;  %v1779_v50 = vsel %vm8829_vm5, 0.0, %v1775_v21  ;;  %v9087_v28 = vadd.f32 %v1718_v17, %v8864_v16  ;;  %v1703_v29 = vadd.f32 %v1702_v19, %v1638_v18 }
 0x2e2   : > { %v7314_v6 = vpack.c.bf16 %v1756_v25, %v1756_v25  ;;  %v7329_v31 = vpack.c.bf16 %v1779_v50, %v1779_v50  ;;  %v1741_v43 = vrot.slane %v1733_v23, 7  ;;  %v1765_v42 = vrot.slane %v1733_v23, 1  ;;  %v7598_v44 = vpop.f32.mrf.mxu1 }
 0x2e3   : > { %v7323_v47 = vpack.c.bf16 %v1733_v23, %v1733_v23  ;;  %v1734_v33 = vmax.f32 %v9087_v28, 0.0  ;;  %v1719_v55 = vmul.f32 0.3, %v1703_v29  ;;  %v7597_v57 = vadd.f32 %v7596_v24, %v7595_v9 }
 0x2e4   : > { %1820 = vst [vmem:[#allocation2 + $0x18] sm:$0xf] %v7314_v6  ;;  %1899 = vst [vmem:[#allocation2 + $0x14] sm:$0xf] %v7329_v31  ;;  %v1750_v58 = vsel %vm556_vm2, %v1740_v62, %v1741_v43  ;;  %v1774_v16 = vsel %vm581_vm3, %v1764_v14, %v1765_v42  ;;  %v7599_v59 = vpop.f32.mrf.mxu1 }
 0x2e5   : > { %v7315_v36 = vpack.c.bf16 %v1750_v58, %v1750_v58  ;;  %1861 = vst [vmem:[#allocation2 + $0x28] sm:$0xf] %v7323_v47  ;;  %v7330_v60 = vpack.c.bf16 %v1774_v16, %v1774_v16  ;;  %v1742_v56 = vrot.slane %v1734_v33, 7  ;;  %v1766_v0 = vrot.slane %v1734_v33, 1 }
 0x2e6   : > { %v7324_v1 = vpack.c.bf16 %v1734_v33, %v1734_v33  ;;  %v9095_v2 = vadd.f32 %v1719_v55, %v8901_v41  ;;  %v1643_v7 = vadd.f32 %v7597_v57, %v9036_v13  ;;  %v7600_v5 = vadd.f32 %v7599_v59, %v7598_v44 }
 0x2e7   : > { %1821 = vst [vmem:[#allocation2 + $0x24] sm:$0xf] %v7315_v36  ;;  %1900 = vst [vmem:[#allocation2 + $0x20] sm:$0xf] %v7330_v60  ;;  %v1749_v10 = vsel %vm556_vm2, %v1741_v43, %v1742_v56  ;;  %v1773_v37 = vsel %vm581_vm3, %v1765_v42, %v1766_v0 }
 0x2e8   : > { %v1758_v11 = vsel %vm8884_vm6, 0.0, %v1749_v10  ;;  %v1781_v12 = vsel %vm8889_vm7, 0.0, %v1773_v37  ;;  %1862 = vst [vmem:[#allocation2 + $0x34] sm:$0xf] %v7324_v1  ;;  %v1735_v41 = vmax.f32 %v9095_v2, 0.0  ;;  %v1708_v61 = vadd.f32 %v9047_v30, %v1643_v7  ;;  %v1908_v10 = vld [vmem:[#allocation2 + $0xc] sm:$0xff] }
 0x2e9   : > { %v7316_v45 = vpack.c.bf16 %v1758_v11, %v1758_v11  ;;  %v7331_v4 = vpack.c.bf16 %v1781_v12, %v1781_v12  ;;  %v1646_v62 = vadd.f32 %v7600_v5, %v9036_v13 }
 0x2ea   : > { %v1743_v14 = vrot.slane %v1735_v41, 7  ;;  %v1767_v15 = vrot.slane %v1735_v41, 1  ;;  %v7325_v9 = vpack.c.bf16 %v1735_v41, %v1735_v41  ;;  %v1720_v17 = vmul.f32 0.3, %v1708_v61 }
 0x2eb   : > { %1822 = vst [vmem:[#allocation2 + $0x30] sm:$0xf] %v7316_v45  ;;  %1901 = vst [vmem:[#allocation2 + $0x2c] sm:$0xf] %v7331_v4  ;;  %v1711_v18 = vadd.f32 %v9070_v8, %v1646_v62  ;;  %v8375_v19 = vld [vmem:[#allocation2 + $0x8] ss:$12 sps:$4 sm:$0xff]  }
 0x2ec   : > { %v1748_v20 = vsel %vm556_vm2, %v1742_v56, %v1743_v14  ;;  %v1772_v21 = vsel %vm581_vm3, %v1766_v0, %v1767_v15  ;;  %1863 = vst [vmem:[#allocation2 + $0x40] sm:$0xf] %v7325_v9  ;;  %v9115_v30 = vadd.f32 %v1720_v17, %v8848_v3  ;;  %8103 = vmatprep.mubr.bf16.mxu0 %v8375_v19  ;;  %v1910_v61 = vld [vmem:[#allocation2 + $0x18] sm:$0xff] }
 0x2ed   : > { %v7317_v13 = vpack.c.bf16 %v1748_v20, %v1748_v20  ;;  %v7332_v23 = vpack.c.bf16 %v1772_v21, %v1772_v21  ;;  %v1721_v24 = vmul.f32 0.3, %v1711_v18  ;;  %v8389_v21 = vld [vmem:[#allocation4 + $0x2f8] sm:$0xff]  }
 0x2ee   : > { %v1736_v25 = vmax.f32 %v9115_v30, 0.0  ;;  %8111 = vmatprep.subr.bf16.mxu0 %v8389_v21 }
 0x2ef   : > { %1823 = vst [vmem:[#allocation2 + $0x3c] sm:$0xf] %v7317_v13  ;;  %1902 = vst [vmem:[#allocation2 + $0x38] sm:$0xf] %v7332_v23  ;;  %v9119_v8 = vadd.f32 %v1721_v24, %v8898_v40  ;;  %v8390_v13 = vld [vmem:[#allocation4 + $0x2f0] sm:$0xff]   ;;  %v8391_v23 = vld [vmem:[#allocation4 + $0x2e8] sm:$0xff]  }
 0x2f0   : > { %v1744_v50 = vrot.slane %v1736_v25, 7  ;;  %v1768_v29 = vrot.slane %v1736_v25, 1  ;;  %v7326_v6 = vpack.c.bf16 %v1736_v25, %v1736_v25  ;;  %v8393_v24 = vld [vmem:[#allocation4 + $0x2e0] sm:$0xff]   ;;  %v8392_v25 = vld [vmem:[#allocation4 + $0x2b8] sm:$0xff]  }
 0x2f1   : > { %v1737_v31 = vmax.f32 %v9119_v8, 0.0  ;;  %7665 = vmatprep.subr.bf16.mxu1 %v8392_v25 }
 0x2f2   : > { %v1747_v3 = vsel %vm556_vm2, %v1743_v14, %v1744_v50  ;;  %v1771_v43 = vsel %vm581_vm3, %v1767_v15, %v1768_v29  ;;  %1864 = vst [vmem:[#allocation2 + $0x4c] sm:$0xf] %v7326_v6  ;;  %v8381_v42 = vld [vmem:[#allocation2 + $0x20] ss:$12 sps:$4 sm:$0xff]   ;;  %v1914_v62 = vld [vmem:[#allocation2 + $0x30] sm:$0xff] }
 0x2f3   : > { %v1760_v44 = vsel %vm8908_vm10, 0.0, %v1747_v3  ;;  %v1783_v40 = vsel %vm8912_vm11, 0.0, %v1771_v43  ;;  %v1745_v47 = vrot.slane %v1737_v31, 7  ;;  %v1769_v33 = vrot.slane %v1737_v31, 1  ;;  %8104 = vmatmul.mubr.bf16.vlgmr.msra.gmra.mxu0 %v8381_v42  ;;  %v8395_v6 = vld [vmem:[#allocation4 + $0x2b0] sm:$0xff]   ;;  %v8398_v43 = vld [vmem:[#allocation4 + $0x2a8] sm:$0xff]  }
 0x2f4   : > { %v7318_v55 = vpack.c.bf16 %v1760_v44, %v1760_v44  ;;  %v7333_v57 = vpack.c.bf16 %v1783_v40, %v1783_v40  ;;  %v7327_v58 = vpack.c.bf16 %v1737_v31, %v1737_v31  ;;  %8112 = vmatpush3.bf16.msra.mxu0 %v8389_v21  ;;  %v8397_v31 = vld [vmem:[#allocation4 + $0x270] sm:$0xff]   ;;  %v8400_v42 = vld [vmem:[#allocation4 + $0x268] sm:$0xff]   ;;  %v8401_v40 = vld [vmem:[#allocation4 + $0x2a0] sm:$0xff]  }
 0x2f5   : > { %v1746_v16 = vsel %vm556_vm2, %v1744_v50, %v1745_v47  ;;  %v1753_v59 = vsel %vm556_vm2, %v1745_v47, %v1738_v26  ;;  %v1770_v36 = vsel %vm581_vm3, %v1768_v29, %v1769_v33  ;;  %v1777_v60 = vsel %vm581_vm3, %v1769_v33, %v1762_v54  ;;  %v1912_v54 = vld [vmem:[#allocation2 + $0x24] sm:$0xff]  ;;  %8113 = vmatprep.subr.bf16.mxu0 %v8390_v13  ;;  %v8394_v50 = vld [vmem:[#allocation4 + $0x278] sm:$0xff]   ;;  %v8399_v3 = vld [vmem:[#allocation4 + $0x2d0] sm:$0xff]  }
 0x2f6   : > { %1824 = vst [vmem:[#allocation2 + $0x48] sm:$0xf] %v7318_v55  ;;  %1903 = vst [vmem:[#allocation2 + $0x44] sm:$0xf] %v7333_v57  ;;  %v1754_v56 = vsel %vm8893_vm8, 0.0, %v1753_v59  ;;  %v1785_v0 = vsel %vm8903_vm9, 0.0, %v1777_v60  ;;  %v7319_v1 = vpack.c.bf16 %v1746_v16, %v1746_v16  ;;  %v7334_v7 = vpack.c.bf16 %v1770_v36, %v1770_v36 }
 0x2f7   : > { %1865 = vst [vmem:[#allocation2 + $0x58] sm:$0xf] %v7327_v58  ;;  %v7312_v26 = vpack.c.bf16 %v1754_v56, %v1754_v56  ;;  %v7335_v5 = vpack.c.bf16 %v1785_v0, %v1785_v0  ;;  %v6792_v45 = vcombine.high %v1910_v61, %v1912_v54  ;;  %v1916_v4 = vld [vmem:[#allocation2 + $0x3c] sm:$0xff]  ;;  %v6791_v14 = vcombine.low %v1910_v61, %v1912_v54  ;;  %v8402_v44 = vld [vmem:[#allocation4 + $0x2c8] sm:$0xff]   ;;  %v8408_v58 = vld [vmem:[#allocation4 + $0x290] sm:$0xff]  }
 0x2f8   : > { %1825 = vst [vmem:[#allocation2 + $0x54] sm:$0xf] %v7319_v1  ;;  %1904 = vst [vmem:[#allocation2 + $0x50] sm:$0xf] %v7334_v7  ;;  %v6795_v15 = vcombine.high %v1914_v62, %v1916_v4  ;;  %v6794_v18 = vcombine.low %v1914_v62, %v1916_v4  ;;  %8114 = vmatpush3.bf16.msra.mxu0 %v8390_v13  ;;  %v8396_v29 = vld [vmem:[#allocation4 + $0x2d8] sm:$0xff]   ;;  %v8404_v47 = vld [vmem:[#allocation4 + $0x260] sm:$0xff]  }
 0x2f9   : > { %1818 = vst [vmem:[#allocation2] sm:$0xf] %v7312_v26  ;;  %1905 = vst [vmem:[#allocation2 + $0x5c] sm:$0xf] %v7335_v5  ;;  %8115 = vmatprep.subr.bf16.mxu0 %v8391_v23  ;;  %v8406_v33 = vld [vmem:[#allocation4 + $0x2c0] sm:$0xff]   ;;  %v8405_v55 = vld [vmem:[#allocation4 + $0x298] sm:$0xff]  }
 0x2fa   : > { %v8407_v57 = vld [vmem:[#allocation4 + $0x258] sm:$0xff]   ;;  %v8410_v16 = vld [vmem:[#allocation4 + $0x250] sm:$0xff]   ;;  %v8411_v59 = vld [vmem:[#allocation4 + $0x288] sm:$0xff]  }
 0x2fb   : > { %v8412_v36 = vld [vmem:[#allocation4 + $0x248] sm:$0xff]   ;;  %v8413_v60 = vld [vmem:[#allocation4 + $0x280] sm:$0xff]  }
 0x2fc   : > { %8116 = vmatpush3.bf16.msra.mxu0 %v8391_v23  ;;  %v8415_v56 = vld [vmem:[#allocation4 + $0x240] sm:$0xff]  }
 0x2fd   : > { %v8386_v27 = vld [vmem:[#allocation2 + $0x38] ss:$12 sps:$4 sm:$0xff]   ;;  %v1918_v17 = vld [vmem:[#allocation2 + $0x48] sm:$0xff]  ;;  %8117 = vmatprep.subr.bf16.mxu0 %v8393_v24  ;;  %v9149_v26 = vld [vmem:[%s9845_s4 + $0x2] ss:$0 sm:$0xff] }
 0x2fe   : > { %8107 = vmatprep.mubr.bf16.mxu0 %v8386_v27 }
 0x2ff   : > { %v1920_v9 = vld [vmem:[#allocation2 + $0x54] sm:$0xff] }
 0x300   : > { %v1906_v37 = vld [vmem:[#allocation2] sm:$0xff]  ;;  %v8388_v11 = vld [vmem:[#allocation2 + $0x50] ss:$12 sps:$4 sm:$0xff]   ;;  %v6798_v19 = vcombine.high %v1918_v17, %v1920_v9  ;;  %v6797_v20 = vcombine.low %v1918_v17, %v1920_v9  ;;  %8118 = vmatpush3.bf16.msra.mxu0 %v8393_v24 }
 0x301   : > { %v6789_v12 = vcombine.high %v1906_v37, %v1908_v10  ;;  %v6788_v41 = vcombine.low %v1906_v37, %v1908_v10  ;;  %8108 = vmatmul.mubr.bf16.gmra.mxu0 %v8388_v11  ;;  %8119 = vmatprep.subr.bf16.mxu0 %v8396_v29 }
 0x303   : > { %2219 = vmatprep.mubr.bf16.mxu1 %v6789_v12 }
 0x304   : > { %2220 = vmatmul.mubr.bf16.vlgmr.msra.gmra.mxu1 %v6788_v41  ;;  %8120 = vmatpush3.bf16.msra.mxu0 %v8396_v29 }
 0x305   : > { %2227 = vmatprep.mubr.bf16.mxu1 %v6792_v45  ;;  %7666 = vmatpush3.bf16.msra.mxu1 %v8394_v50 }
 0x306   : > { %7667 = vmatprep.subr.bf16.mxu1 %v8395_v6  ;;  %8121 = vmatprep.subr.bf16.mxu0 %v8399_v3 }
 0x308   : > { %8122 = vmatpush3.bf16.msra.mxu0 %v8399_v3 }
 0x309   : > { %7668 = vmatpush3.bf16.msra.mxu1 %v8397_v31  ;;  %8123 = vmatprep.subr.bf16.mxu0 %v8402_v44 }
 0x30a   : > { %7669 = vmatprep.subr.bf16.mxu1 %v8398_v43 }
 0x30c   : > { %2228 = vmatmul.mubr.bf16.gmra.mxu1 %v6791_v14  ;;  %8124 = vmatpush3.bf16.msra.mxu0 %v8402_v44 }
 0x30d   : > { %2235 = vmatprep.mubr.bf16.mxu1 %v6795_v15  ;;  %7670 = vmatpush3.bf16.msra.mxu1 %v8400_v42 }
 0x30e   : > { %7671 = vmatprep.subr.bf16.mxu1 %v8401_v40  ;;  %8125 = vmatprep.subr.bf16.mxu0 %v8406_v33 }
 0x310   : > { %8126 = vmatpush3.bf16.msra.mxu0 %v8406_v33 }
 0x311   : > { %7672 = vmatpush3.bf16.msra.mxu1 %v8404_v47 }
 0x312   : > { %7673 = vmatprep.subr.bf16.mxu1 %v8405_v55 }
 0x314   : > { %2236 = vmatmul.mubr.bf16.gmra.mxu1 %v6794_v18 }
 0x315   : > { %2243 = vmatprep.mubr.bf16.mxu1 %v6798_v19  ;;  %7674 = vmatpush3.bf16.msra.mxu1 %v8407_v57 }
 0x316   : > { %7675 = vmatprep.subr.bf16.mxu1 %v8408_v58 }
 0x319   : > { %7676 = vmatpush3.bf16.msra.mxu1 %v8410_v16 }
 0x31a   : > { %7677 = vmatprep.subr.bf16.mxu1 %v8411_v59 }
 0x31c   : > { %2244 = vmatmul.mubr.bf16.gmra.mxu1 %v6797_v20 }
 0x31d   : > { %7678 = vmatpush3.bf16.msra.mxu1 %v8412_v36 }
 0x31e   : > { %7679 = vmatprep.subr.bf16.mxu1 %v8413_v60 }
 0x321   : > { %7680 = vmatpush3.bf16.msra.mxu1 %v8415_v56 }
 0x3b3   : > { %v8105_v0 = vpop.f32.mrf.mxu0 }
 0x3b5   : > { %v2286_v7 = vpop.f32.mrf.mxu0 }
 0x3b7   : > { %v8106_v37 = vpop.f32.mrf.mxu0 }
 0x3b9   : > { %v2289_v62 = vpop.f32.mrf.mxu0 }
 0x3c1   : > { %v9160_v6 = vpop.f32.mrf.mxu0 }
 0x3c3   : > { %v2302_v16 = vpop.f32.mrf.mxu0 }
 0x3c4   : > { %v7629_v1 = vpop.f32.mrf.mxu1 }
 0x3c6   : > { %v7630_v5 = vpop.f32.mrf.mxu1 }
 0x3c7   : > { %v7631_v27 = vadd.f32 %v7630_v5, %v7629_v1 }
 0x3c8   : > { %v7632_v10 = vpop.f32.mrf.mxu1 }
 0x3c9   : > { %v2222_v54 = vadd.f32 %v7631_v27, %v9149_v26 }
 0x3ca   : > { %v7633_v11 = vpop.f32.mrf.mxu1 }
 0x3cb   : > { %v2287_v12 = vadd.f32 %v2286_v7, %v2222_v54  ;;  %v7634_v41 = vadd.f32 %v7633_v11, %v7632_v10 }
 0x3cc   : > { %v7635_v61 = vpop.f32.mrf.mxu1 }
 0x3cd   : > { %v9152_v45 = vmax.f32 %v2287_v12, 0.0  ;;  %v2225_v4 = vadd.f32 %v7634_v41, %v9149_v26  ;;  %v8110_v12 = vpop.f32.mrf.mxu0 }
 0x3ce   : > { %v7636_v14 = vpop.f32.mrf.mxu1 }
 0x3cf   : > { %v7344_v15 = vpack.c.bf16 %v9152_v45, %v9152_v45  ;;  %v2290_v9 = vadd.f32 %v2289_v62, %v2225_v4  ;;  %v7637_v17 = vadd.f32 %v7636_v14, %v7635_v61  ;;  %v2325_v20 = vrot.slane %v9152_v45, 7 }
 0x3d0   : > { %v7638_v18 = vpop.f32.mrf.mxu1  ;;  %v2349_v21 = vrot.slane %v9152_v45, 1 }
 0x3d1   : > { %2445 = vst [vmem:[#allocation2 + $0x4] sm:$0xf] %v7344_v15  ;;  %v2318_v19 = vmax.f32 %v2290_v9, 0.0  ;;  %v2230_v13 = vadd.f32 %v7637_v17, %v9149_v26 }
 0x3d2   : > { %v7639_v23 = vpop.f32.mrf.mxu1 }
 0x3d3   : > { %v2326_v24 = vrot.slane %v2318_v19, 7  ;;  %v2350_v25 = vrot.slane %v2318_v19, 1  ;;  %v7345_v50 = vpack.c.bf16 %v2318_v19, %v2318_v19  ;;  %v7640_v29 = vadd.f32 %v7639_v23, %v7638_v18 }
 0x3d4   : > { %v2295_v31 = vadd.f32 %v8105_v0, %v2230_v13  ;;  %v7641_v3 = vpop.f32.mrf.mxu1 }
 0x3d5   : > { %v2339_v43 = vsel %vm556_vm2, %v2325_v20, %v2326_v24  ;;  %v2363_v42 = vsel %vm581_vm3, %v2349_v21, %v2350_v25  ;;  %2446 = vst [vmem:[#allocation2 + $0x10] sm:$0xf] %v7345_v50  ;;  %v2233_v44 = vadd.f32 %v7640_v29, %v9149_v26  ;;  %v2305_v50 = vpop.f32.mrf.mxu0 }
 0x3d6   : > { %v7337_v40 = vpack.c.bf16 %v2339_v43, %v2339_v43  ;;  %v7352_v47 = vpack.c.bf16 %v2363_v42, %v2363_v42  ;;  %v2319_v33 = vmax.f32 %v2295_v31, 0.0  ;;  %v7642_v55 = vpop.f32.mrf.mxu1 }
 0x3d7   : > { %v2298_v57 = vadd.f32 %v8106_v37, %v2233_v44  ;;  %v7643_v58 = vadd.f32 %v7642_v55, %v7641_v3 }
 0x3d8   : > { %2406 = vst [vmem:[#allocation2 + $0xc] sm:$0xf] %v7337_v40  ;;  %2485 = vst [vmem:[#allocation2 + $0x8] sm:$0xf] %v7352_v47  ;;  %v2327_v59 = vrot.slane %v2319_v33, 7  ;;  %v2351_v36 = vrot.slane %v2319_v33, 1  ;;  %v7346_v60 = vpack.c.bf16 %v2319_v33, %v2319_v33  ;;  %v7644_v56 = vpop.f32.mrf.mxu1 }
 0x3d9   : > { %v2320_v0 = vmax.f32 %v2298_v57, 0.0  ;;  %v2238_v1 = vadd.f32 %v7643_v58, %v9149_v26 }
 0x3da   : > { %v2338_v7 = vsel %vm556_vm2, %v2326_v24, %v2327_v59  ;;  %v2362_v5 = vsel %vm581_vm3, %v2350_v25, %v2351_v36  ;;  %2447 = vst [vmem:[#allocation2 + $0x1c] sm:$0xf] %v7346_v60  ;;  %v7645_v27 = vpop.f32.mrf.mxu1 }
 0x3db   : > { %v2343_v10 = vsel %vm8825_vm4, 0.0, %v2338_v7  ;;  %v2366_v54 = vsel %vm8829_vm5, 0.0, %v2362_v5  ;;  %v2328_v37 = vrot.slane %v2320_v0, 7  ;;  %v2352_v11 = vrot.slane %v2320_v0, 1 }
 0x3dc   : > { %v7338_v41 = vpack.c.bf16 %v2343_v10, %v2343_v10  ;;  %v7353_v61 = vpack.c.bf16 %v2366_v54, %v2366_v54  ;;  %v7347_v4 = vpack.c.bf16 %v2320_v0, %v2320_v0  ;;  %v2303_v62 = vadd.f32 %v2302_v16, %v2238_v1  ;;  %v7647_v14 = vpop.f32.mrf.mxu1 }
 0x3dd   : > { %v2337_v15 = vsel %vm556_vm2, %v2327_v59, %v2328_v37  ;;  %v2361_v9 = vsel %vm581_vm3, %v2351_v36, %v2352_v11  ;;  %v7646_v17 = vadd.f32 %v7645_v27, %v7644_v56 }
 0x3de   : > { %2407 = vst [vmem:[#allocation2 + $0x18] sm:$0xf] %v7338_v41  ;;  %2486 = vst [vmem:[#allocation2 + $0x14] sm:$0xf] %v7353_v61  ;;  %v7339_v18 = vpack.c.bf16 %v2337_v15, %v2337_v15  ;;  %v7354_v19 = vpack.c.bf16 %v2361_v9, %v2361_v9  ;;  %v2321_v13 = vmax.f32 %v2303_v62, 0.0  ;;  %v7648_v23 = vpop.f32.mrf.mxu1 }
 0x3df   : > { %2448 = vst [vmem:[#allocation2 + $0x28] sm:$0xf] %v7347_v4  ;;  %v2241_v24 = vadd.f32 %v7646_v17, %v9149_v26  ;;  %v7649_v25 = vadd.f32 %v7648_v23, %v7647_v14 }
 0x3e0   : > { %2408 = vst [vmem:[#allocation2 + $0x24] sm:$0xf] %v7339_v18  ;;  %2487 = vst [vmem:[#allocation2 + $0x20] sm:$0xf] %v7354_v19  ;;  %v2329_v29 = vrot.slane %v2321_v13, 7  ;;  %v2353_v31 = vrot.slane %v2321_v13, 1  ;;  %v7348_v3 = vpack.c.bf16 %v2321_v13, %v2321_v13  ;;  %v7650_v43 = vpop.f32.mrf.mxu1 }
 0x3e1   : > { %v2306_v42 = vadd.f32 %v2305_v50, %v2241_v24  ;;  %v2246_v44 = vadd.f32 %v7649_v25, %v9149_v26 }
 0x3e2   : > { %v2336_v40 = vsel %vm556_vm2, %v2328_v37, %v2329_v29  ;;  %v2360_v47 = vsel %vm581_vm3, %v2352_v11, %v2353_v31  ;;  %2449 = vst [vmem:[#allocation2 + $0x34] sm:$0xf] %v7348_v3  ;;  %v7651_v33 = vpop.f32.mrf.mxu1 }
 0x3e3   : > { %v2345_v55 = vsel %vm8884_vm6, 0.0, %v2336_v40  ;;  %v2368_v57 = vsel %vm8889_vm7, 0.0, %v2360_v47  ;;  %v2322_v58 = vmax.f32 %v2306_v42, 0.0  ;;  %v2311_v16 = vadd.f32 %v9160_v6, %v2246_v44  ;;  %v8416_v40 = vld [vmem:[#allocation2 + $0x4] ss:$12 sps:$4 sm:$0xff]  }
 0x3e4   : > { %v7340_v59 = vpack.c.bf16 %v2345_v55, %v2345_v55  ;;  %v7355_v36 = vpack.c.bf16 %v2368_v57, %v2368_v57  ;;  %v7652_v60 = vadd.f32 %v7651_v33, %v7650_v43  ;;  %2806 = vmatprep.mubr.bf16.mxu1 %v8416_v40 }
 0x3e5   : > { %v2330_v56 = vrot.slane %v2322_v58, 7  ;;  %v2354_v0 = vrot.slane %v2322_v58, 1  ;;  %v7349_v1 = vpack.c.bf16 %v2322_v58, %v2322_v58  ;;  %v2323_v7 = vmax.f32 %v2311_v16, 0.0  ;;  %v8403_v27 = vld [vmem:[#allocation2 + $0x8] ss:$12 sps:$4 sm:$0xff]  }
 0x3e6   : > { %2409 = vst [vmem:[#allocation2 + $0x30] sm:$0xf] %v7340_v59  ;;  %2488 = vst [vmem:[#allocation2 + $0x2c] sm:$0xf] %v7355_v36  ;;  %v2249_v5 = vadd.f32 %v7652_v60, %v9149_v26  ;;  %8127 = vmatprep.mubr.bf16.mxu0 %v8403_v27  ;;  %v8420_v33 = vld [vmem:[#allocation2 + $0x1c] ss:$12 sps:$4 sm:$0xff]  }
 0x3e7   : > { %v2335_v10 = vsel %vm556_vm2, %v2329_v29, %v2330_v56  ;;  %v2359_v54 = vsel %vm581_vm3, %v2353_v31, %v2354_v0  ;;  %2450 = vst [vmem:[#allocation2 + $0x40] sm:$0xf] %v7349_v1  ;;  %v2331_v6 = vrot.slane %v2323_v7, 7  ;;  %v2355_v37 = vrot.slane %v2323_v7, 1  ;;  %v8422_v55 = vld [vmem:[#allocation2 + $0x18] ss:$12 sps:$4 sm:$0xff]  }
 0x3e8   : > { %v7341_v11 = vpack.c.bf16 %v2335_v10, %v2335_v10  ;;  %v7356_v41 = vpack.c.bf16 %v2359_v54, %v2359_v54  ;;  %v7350_v61 = vpack.c.bf16 %v2323_v7, %v2323_v7  ;;  %v2314_v4 = vadd.f32 %v8110_v12, %v2249_v5  ;;  %v8429_v36 = vld [vmem:[#allocation4 + $0x3b8] sm:$0xff]   ;;  %v8430_v60 = vld [vmem:[#allocation4 + $0x3b0] sm:$0xff]  }
 0x3e9   : > { %v2334_v62 = vsel %vm556_vm2, %v2330_v56, %v2331_v6  ;;  %v2358_v26 = vsel %vm581_vm3, %v2354_v0, %v2355_v37  ;;  %8135 = vmatprep.subr.bf16.mxu0 %v8429_v36  ;;  %v8431_v56 = vld [vmem:[#allocation4 + $0x3a8] sm:$0xff]   ;;  %v8433_v0 = vld [vmem:[#allocation4 + $0x3a0] sm:$0xff]   ;;  %v8432_v1 = vld [vmem:[#allocation4 + $0x378] sm:$0xff]  }
 0x3ea   : > { %2410 = vst [vmem:[#allocation2 + $0x3c] sm:$0xf] %v7341_v11  ;;  %2489 = vst [vmem:[#allocation2 + $0x38] sm:$0xf] %v7356_v41  ;;  %v2347_v14 = vsel %vm8908_vm10, 0.0, %v2334_v62  ;;  %v2370_v15 = vsel %vm8912_vm11, 0.0, %v2358_v26  ;;  %7717 = vmatprep.subr.bf16.mxu1 %v8432_v1 }
 0x3eb   : > { %2451 = vst [vmem:[#allocation2 + $0x4c] sm:$0xf] %v7350_v61  ;;  %v2324_v9 = vmax.f32 %v2314_v4, 0.0  ;;  %v7342_v17 = vpack.c.bf16 %v2347_v14, %v2347_v14  ;;  %v7357_v18 = vpack.c.bf16 %v2370_v15, %v2370_v15  ;;  %v8434_v7 = vld [vmem:[#allocation4 + $0x338] sm:$0xff]   ;;  %v8435_v27 = vld [vmem:[#allocation4 + $0x370] sm:$0xff]   ;;  %v8442_v11 = vld [vmem:[#allocation4 + $0x388] sm:$0xff]  }
 0x3ec   : > { %v8436_v5 = vld [vmem:[#allocation4 + $0x398] sm:$0xff]   ;;  %v8437_v10 = vld [vmem:[#allocation4 + $0x330] sm:$0xff]   ;;  %v8441_v41 = vld [vmem:[#allocation4 + $0x360] sm:$0xff]  }
 0x3ed   : > { %v2332_v12 = vrot.slane %v2324_v9, 7  ;;  %v2356_v19 = vrot.slane %v2324_v9, 1  ;;  %v7351_v13 = vpack.c.bf16 %v2324_v9, %v2324_v9  ;;  %2411 = vst [vmem:[#allocation2 + $0x48] sm:$0xf] %v7342_v17  ;;  %2490 = vst [vmem:[#allocation2 + $0x44] sm:$0xf] %v7357_v18 }
 0x3ee   : > { %v8409_v23 = vld [vmem:[#allocation2 + $0x20] ss:$12 sps:$4 sm:$0xff]   ;;  %v8439_v54 = vld [vmem:[#allocation4 + $0x390] sm:$0xff]  }
 0x3ef   : > { %v2333_v24 = vsel %vm556_vm2, %v2331_v6, %v2332_v12  ;;  %v2340_v25 = vsel %vm556_vm2, %v2332_v12, %v2325_v20  ;;  %v2357_v50 = vsel %vm581_vm3, %v2355_v37, %v2356_v19  ;;  %v2364_v29 = vsel %vm581_vm3, %v2356_v19, %v2349_v21  ;;  %2452 = vst [vmem:[#allocation2 + $0x58] sm:$0xf] %v7351_v13  ;;  %v8423_v57 = vld [vmem:[#allocation2 + $0x34] ss:$12 sps:$4 sm:$0xff]   ;;  %v8438_v6 = vld [vmem:[#allocation4 + $0x368] sm:$0xff]  }
 0x3f0   : > { %v2341_v31 = vsel %vm8893_vm8, 0.0, %v2340_v25  ;;  %v2372_v3 = vsel %vm8903_vm9, 0.0, %v2364_v29  ;;  %v7343_v43 = vpack.c.bf16 %v2333_v24, %v2333_v24  ;;  %v7358_v42 = vpack.c.bf16 %v2357_v50, %v2357_v50  ;;  %8128 = vmatmul.mubr.bf16.vlgmr.msra.gmra.mxu0 %v8409_v23  ;;  %v8440_v37 = vld [vmem:[#allocation4 + $0x328] sm:$0xff]   ;;  %v8444_v61 = vld [vmem:[#allocation4 + $0x320] sm:$0xff]   ;;  %v8445_v62 = vld [vmem:[#allocation4 + $0x358] sm:$0xff]  }
 0x3f1   : > { %v7336_v44 = vpack.c.bf16 %v2341_v31, %v2341_v31  ;;  %v7359_v20 = vpack.c.bf16 %v2372_v3, %v2372_v3  ;;  %v8425_v58 = vld [vmem:[#allocation2 + $0x30] ss:$12 sps:$4 sm:$0xff]   ;;  %8136 = vmatpush3.bf16.msra.mxu0 %v8429_v36  ;;  %v8446_v4 = vld [vmem:[#allocation4 + $0x380] sm:$0xff]  }
 0x3f2   : > { %2412 = vst [vmem:[#allocation2 + $0x54] sm:$0xf] %v7343_v43  ;;  %2491 = vst [vmem:[#allocation2 + $0x50] sm:$0xf] %v7358_v42  ;;  %8137 = vmatprep.subr.bf16.mxu0 %v8430_v60  ;;  %v8447_v26 = vld [vmem:[#allocation4 + $0x318] sm:$0xff]   ;;  %v8448_v14 = vld [vmem:[#allocation4 + $0x350] sm:$0xff]  }
 0x3f3   : > { %2405 = vst [vmem:[#allocation2] sm:$0xf] %v7336_v44  ;;  %2492 = vst [vmem:[#allocation2 + $0x5c] sm:$0xf] %v7359_v20  ;;  %v8450_v15 = vld [vmem:[#allocation4 + $0x310] sm:$0xff]   ;;  %v8451_v9 = vld [vmem:[#allocation4 + $0x348] sm:$0xff]  }
 0x3f4   : > { %v8414_v45 = vld [vmem:[#allocation2 + $0x38] ss:$12 sps:$4 sm:$0xff]   ;;  %v8452_v17 = vld [vmem:[#allocation4 + $0x308] sm:$0xff]   ;;  %v9227_v24 = vld [vmem:[%s9845_s4 + $0x3] ss:$0 sm:$0xff] }
 0x3f5   : > { %8131 = vmatprep.mubr.bf16.mxu0 %v8414_v45  ;;  %8138 = vmatpush3.bf16.msra.mxu0 %v8430_v60  ;;  %v8453_v18 = vld [vmem:[#allocation4 + $0x340] sm:$0xff]  }
 0x3f6   : > { %v8426_v16 = vld [vmem:[#allocation2 + $0x4c] ss:$12 sps:$4 sm:$0xff]   ;;  %8139 = vmatprep.subr.bf16.mxu0 %v8431_v56  ;;  %v8455_v12 = vld [vmem:[#allocation4 + $0x300] sm:$0xff]  }
 0x3f9   : > { %v8428_v59 = vld [vmem:[#allocation2 + $0x48] ss:$12 sps:$4 sm:$0xff]   ;;  %8140 = vmatpush3.bf16.msra.mxu0 %v8431_v56 }
 0x3fa   : > { %v8418_v21 = vld [vmem:[#allocation2 + $0x50] ss:$12 sps:$4 sm:$0xff]   ;;  %v8419_v47 = vld [vmem:[#allocation2] ss:$12 sps:$4 sm:$0xff]   ;;  %8141 = vmatprep.subr.bf16.mxu0 %v8433_v0 }
 0x3fb   : > { %8132 = vmatmul.mubr.bf16.gmra.mxu0 %v8418_v21  ;;  %2807 = vmatmul.mubr.bf16.vlgmr.msra.gmra.mxu1 %v8419_v47 }
 0x3fc   : > { %2814 = vmatprep.mubr.bf16.mxu1 %v8420_v33  ;;  %7718 = vmatpush3.bf16.msra.mxu1 %v8434_v7 }
 0x3fd   : > { %8142 = vmatpush3.bf16.msra.mxu0 %v8433_v0  ;;  %7719 = vmatprep.subr.bf16.mxu1 %v8435_v27 }
 0x3fe   : > { %8143 = vmatprep.subr.bf16.mxu0 %v8436_v5 }
 0x400   : > { %7720 = vmatpush3.bf16.msra.mxu1 %v8437_v10 }
 0x401   : > { %8144 = vmatpush3.bf16.msra.mxu0 %v8436_v5  ;;  %7721 = vmatprep.subr.bf16.mxu1 %v8438_v6 }
 0x402   : > { %8145 = vmatprep.subr.bf16.mxu0 %v8439_v54 }
 0x403   : > { %2815 = vmatmul.mubr.bf16.gmra.mxu1 %v8422_v55 }
 0x404   : > { %2822 = vmatprep.mubr.bf16.mxu1 %v8423_v57  ;;  %7722 = vmatpush3.bf16.msra.mxu1 %v8440_v37 }
 0x405   : > { %8146 = vmatpush3.bf16.msra.mxu0 %v8439_v54  ;;  %7723 = vmatprep.subr.bf16.mxu1 %v8441_v41 }
 0x406   : > { %8147 = vmatprep.subr.bf16.mxu0 %v8442_v11 }
 0x408   : > { %7724 = vmatpush3.bf16.msra.mxu1 %v8444_v61 }
 0x409   : > { %8148 = vmatpush3.bf16.msra.mxu0 %v8442_v11  ;;  %7725 = vmatprep.subr.bf16.mxu1 %v8445_v62 }
 0x40a   : > { %8149 = vmatprep.subr.bf16.mxu0 %v8446_v4 }
 0x40b   : > { %2823 = vmatmul.mubr.bf16.gmra.mxu1 %v8425_v58 }
 0x40c   : > { %2830 = vmatprep.mubr.bf16.mxu1 %v8426_v16  ;;  %7726 = vmatpush3.bf16.msra.mxu1 %v8447_v26 }
 0x40d   : > { %8150 = vmatpush3.bf16.msra.mxu0 %v8446_v4  ;;  %7727 = vmatprep.subr.bf16.mxu1 %v8448_v14 }
 0x410   : > { %7728 = vmatpush3.bf16.msra.mxu1 %v8450_v15 }
 0x411   : > { %7729 = vmatprep.subr.bf16.mxu1 %v8451_v9 }
 0x413   : > { %2831 = vmatmul.mubr.bf16.gmra.mxu1 %v8428_v59 }
 0x414   : > { %7730 = vmatpush3.bf16.msra.mxu1 %v8452_v17 }
 0x415   : > { %7731 = vmatprep.subr.bf16.mxu1 %v8453_v18 }
 0x418   : > { %7732 = vmatpush3.bf16.msra.mxu1 %v8455_v12 }
 0x4b0   : > { %v8129_v19 = vpop.f32.mrf.mxu0 }
 0x4b2   : > { %v2873_v23 = vpop.f32.mrf.mxu0 }
 0x4b4   : > { %v8130_v3 = vpop.f32.mrf.mxu0 }
 0x4b6   : > { %v2876_v21 = vpop.f32.mrf.mxu0 }
 0x4bb   : > { %v7681_v13 = vpop.f32.mrf.mxu1  ;;  %v9238_v60 = vpop.f32.mrf.mxu0 }
 0x4bd   : > { %v7682_v25 = vpop.f32.mrf.mxu1  ;;  %v2889_v10 = vpop.f32.mrf.mxu0 }
 0x4be   : > { %v7683_v50 = vadd.f32 %v7682_v25, %v7681_v13 }
 0x4bf   : > { %v7684_v29 = vpop.f32.mrf.mxu1  ;;  %v9261_v12 = vpop.f32.mrf.mxu0 }
 0x4c0   : > { %v2809_v31 = vadd.f32 %v7683_v50, %v9227_v24 }
 0x4c1   : > { %v7685_v43 = vpop.f32.mrf.mxu1 }
 0x4c2   : > { %v2874_v42 = vadd.f32 %v2873_v23, %v2809_v31  ;;  %v7686_v44 = vadd.f32 %v7685_v43, %v7684_v29 }
 0x4c3   : > { %v7687_v20 = vpop.f32.mrf.mxu1 }
 0x4c4   : > { %v2904_v45 = vmul.f32 0.3, %v2874_v42  ;;  %v2812_v40 = vadd.f32 %v7686_v44, %v9227_v24 }
 0x4c5   : > { %v7688_v47 = vpop.f32.mrf.mxu1 }
 0x4c6   : > { %v9232_v33 = vadd.f32 %v2904_v45, %v9041_v22  ;;  %v2877_v55 = vadd.f32 %v2876_v21, %v2812_v40  ;;  %v7689_v57 = vadd.f32 %v7688_v47, %v7687_v20  ;;  %v2892_v40 = vpop.f32.mrf.mxu0 }
 0x4c7   : > { %v7690_v58 = vpop.f32.mrf.mxu1 }
 0x4c8   : > { %v9235_v16 = vmax.f32 %v9232_v33, 0.0  ;;  %v2905_v59 = vmul.f32 0.3, %v2877_v55  ;;  %v2817_v36 = vadd.f32 %v7689_v57, %v9227_v24 }
 0x4c9   : > { %v7691_v56 = vpop.f32.mrf.mxu1 }
 0x4ca   : > { %v7368_v0 = vpack.c.bf16 %v9235_v16, %v9235_v16  ;;  %v9243_v1 = vadd.f32 %v2905_v59, %v9052_v34  ;;  %v2882_v22 = vadd.f32 %v8129_v19, %v2817_v36  ;;  %v7692_v7 = vadd.f32 %v7691_v56, %v7690_v58 }
 0x4cb   : > { %v7693_v5 = vpop.f32.mrf.mxu1  ;;  %v2928_v54 = vrot.slane %v9235_v16, 7  ;;  %v2952_v6 = vrot.slane %v9235_v16, 1 }
 0x4cc   : > { %3048 = vst [vmem:[#allocation2 + $0x4] sm:$0xf] %v7368_v0  ;;  %v2921_v27 = vmax.f32 %v9243_v1, 0.0  ;;  %v2906_v37 = vmul.f32 0.3, %v2882_v22  ;;  %v2820_v11 = vadd.f32 %v7692_v7, %v9227_v24 }
 0x4cd   : > { %v7694_v41 = vpop.f32.mrf.mxu1 }
 0x4ce   : > { %v2929_v61 = vrot.slane %v2921_v27, 7  ;;  %v2953_v4 = vrot.slane %v2921_v27, 1  ;;  %v7369_v62 = vpack.c.bf16 %v2921_v27, %v2921_v27  ;;  %v7695_v34 = vadd.f32 %v7694_v41, %v7693_v5 }
 0x4cf   : > { %v9250_v26 = vadd.f32 %v2906_v37, %v9059_v63  ;;  %v2885_v14 = vadd.f32 %v8130_v3, %v2820_v11  ;;  %v7696_v15 = vpop.f32.mrf.mxu1 }
 0x4d0   : > { %v2942_v9 = vsel %vm556_vm2, %v2928_v54, %v2929_v61  ;;  %v2966_v17 = vsel %vm581_vm3, %v2952_v6, %v2953_v4  ;;  %3049 = vst [vmem:[#allocation2 + $0x10] sm:$0xf] %v7369_v62  ;;  %v2825_v18 = vadd.f32 %v7695_v34, %v9227_v24 }
 0x4d1   : > { %v7361_v19 = vpack.c.bf16 %v2942_v9, %v2942_v9  ;;  %v7376_v63 = vpack.c.bf16 %v2966_v17, %v2966_v17  ;;  %v2922_v13 = vmax.f32 %v9250_v26, 0.0  ;;  %v2907_v23 = vmul.f32 0.3, %v2885_v14  ;;  %v7697_v25 = vpop.f32.mrf.mxu1 }
 0x4d2   : > { %v2890_v50 = vadd.f32 %v2889_v10, %v2825_v18  ;;  %v7698_v29 = vadd.f32 %v7697_v25, %v7696_v15 }
 0x4d3   : > { %3009 = vst [vmem:[#allocation2 + $0xc] sm:$0xf] %v7361_v19  ;;  %3088 = vst [vmem:[#allocation2 + $0x8] sm:$0xf] %v7376_v63  ;;  %v2930_v31 = vrot.slane %v2922_v13, 7  ;;  %v2954_v3 = vrot.slane %v2922_v13, 1  ;;  %v7370_v43 = vpack.c.bf16 %v2922_v13, %v2922_v13  ;;  %v9265_v42 = vadd.f32 %v2907_v23, %v9074_v49  ;;  %v7699_v44 = vpop.f32.mrf.mxu1 }
 0x4d4   : > { %v2908_v20 = vmul.f32 0.3, %v2890_v50  ;;  %v2828_v45 = vadd.f32 %v7698_v29, %v9227_v24 }
 0x4d5   : > { %v2941_v21 = vsel %vm556_vm2, %v2929_v61, %v2930_v31  ;;  %v2965_v47 = vsel %vm581_vm3, %v2953_v4, %v2954_v3  ;;  %3050 = vst [vmem:[#allocation2 + $0x1c] sm:$0xf] %v7370_v43  ;;  %v2923_v55 = vmax.f32 %v9265_v42, 0.0  ;;  %v7700_v57 = vpop.f32.mrf.mxu1 }
 0x4d6   : > { %v2946_v58 = vsel %vm8825_vm4, 0.0, %v2941_v21  ;;  %v2969_v49 = vsel %vm8829_vm5, 0.0, %v2965_v47  ;;  %v9278_v59 = vadd.f32 %v2908_v20, %v9087_v28  ;;  %v2893_v36 = vadd.f32 %v2892_v40, %v2828_v45 }
 0x4d7   : > { %v7362_v56 = vpack.c.bf16 %v2946_v58, %v2946_v58  ;;  %v7377_v0 = vpack.c.bf16 %v2969_v49, %v2969_v49  ;;  %v2931_v22 = vrot.slane %v2923_v55, 7  ;;  %v2955_v7 = vrot.slane %v2923_v55, 1  ;;  %v7702_v5 = vpop.f32.mrf.mxu1 }
 0x4d8   : > { %v7371_v27 = vpack.c.bf16 %v2923_v55, %v2923_v55  ;;  %v2924_v10 = vmax.f32 %v9278_v59, 0.0  ;;  %v2909_v37 = vmul.f32 0.3, %v2893_v36  ;;  %v7701_v11 = vadd.f32 %v7700_v57, %v7699_v44 }
 0x4d9   : > { %3010 = vst [vmem:[#allocation2 + $0x18] sm:$0xf] %v7362_v56  ;;  %3089 = vst [vmem:[#allocation2 + $0x14] sm:$0xf] %v7377_v0  ;;  %v2940_v41 = vsel %vm556_vm2, %v2930_v31, %v2931_v22  ;;  %v2964_v28 = vsel %vm581_vm3, %v2954_v3, %v2955_v7  ;;  %v7703_v61 = vpop.f32.mrf.mxu1 }
 0x4da   : > { %v7363_v4 = vpack.c.bf16 %v2940_v41, %v2940_v41  ;;  %3051 = vst [vmem:[#allocation2 + $0x28] sm:$0xf] %v7371_v27  ;;  %v7378_v62 = vpack.c.bf16 %v2964_v28, %v2964_v28  ;;  %v2932_v34 = vrot.slane %v2924_v10, 7  ;;  %v2956_v14 = vrot.slane %v2924_v10, 1 }
 0x4db   : > { %v7372_v15 = vpack.c.bf16 %v2924_v10, %v2924_v10  ;;  %v9286_v9 = vadd.f32 %v2909_v37, %v9095_v2  ;;  %v2833_v17 = vadd.f32 %v7701_v11, %v9227_v24  ;;  %v7704_v18 = vadd.f32 %v7703_v61, %v7702_v5 }
 0x4dc   : > { %3011 = vst [vmem:[#allocation2 + $0x24] sm:$0xf] %v7363_v4  ;;  %3090 = vst [vmem:[#allocation2 + $0x20] sm:$0xf] %v7378_v62  ;;  %v2939_v19 = vsel %vm556_vm2, %v2931_v22, %v2932_v34  ;;  %v2963_v63 = vsel %vm581_vm3, %v2955_v7, %v2956_v14 }
 0x4dd   : > { %v2948_v13 = vsel %vm8884_vm6, 0.0, %v2939_v19  ;;  %v2971_v23 = vsel %vm8889_vm7, 0.0, %v2963_v63  ;;  %3052 = vst [vmem:[#allocation2 + $0x34] sm:$0xf] %v7372_v15  ;;  %v2925_v2 = vmax.f32 %v9286_v9, 0.0  ;;  %v2898_v25 = vadd.f32 %v9238_v60, %v2833_v17 }
 0x4de   : > { %v7364_v50 = vpack.c.bf16 %v2948_v13, %v2948_v13  ;;  %v7379_v29 = vpack.c.bf16 %v2971_v23, %v2971_v23  ;;  %v2836_v31 = vadd.f32 %v7704_v18, %v9227_v24 }
 0x4df   : > { %v2933_v3 = vrot.slane %v2925_v2, 7  ;;  %v2957_v43 = vrot.slane %v2925_v2, 1  ;;  %v7373_v44 = vpack.c.bf16 %v2925_v2, %v2925_v2  ;;  %v2910_v20 = vmul.f32 0.3, %v2898_v25 }
 0x4e0   : > { %3012 = vst [vmem:[#allocation2 + $0x30] sm:$0xf] %v7364_v50  ;;  %3091 = vst [vmem:[#allocation2 + $0x2c] sm:$0xf] %v7379_v29  ;;  %v2901_v45 = vadd.f32 %v9261_v12, %v2836_v31  ;;  %v8443_v40 = vld [vmem:[#allocation2 + $0x8] ss:$12 sps:$4 sm:$0xff]  }
 0x4e1   : > { %v2938_v21 = vsel %vm556_vm2, %v2932_v34, %v2933_v3  ;;  %v2962_v47 = vsel %vm581_vm3, %v2956_v14, %v2957_v43  ;;  %3053 = vst [vmem:[#allocation2 + $0x40] sm:$0xf] %v7373_v44  ;;  %v9306_v60 = vadd.f32 %v2910_v20, %v9115_v30  ;;  %8151 = vmatprep.mubr.bf16.mxu0 %v8443_v40  ;;  %v8460_v13 = vld [vmem:[#allocation2 + $0x1c] ss:$12 sps:$4 sm:$0xff]  }
 0x4e2   : > { %v7365_v24 = vpack.c.bf16 %v2938_v21, %v2938_v21  ;;  %v7380_v55 = vpack.c.bf16 %v2962_v47, %v2962_v47  ;;  %v2911_v57 = vmul.f32 0.3, %v2901_v45  ;;  %v8469_v31 = vld [vmem:[#allocation4 + $0x478] sm:$0xff]   ;;  %v8473_v44 = vld [vmem:[#allocation4 + $0x460] sm:$0xff]   ;;  %v8475_v21 = vld [vmem:[#allocation4 + $0x430] sm:$0xff]  }
 0x4e3   : > { %v2926_v58 = vmax.f32 %v9306_v60, 0.0  ;;  %v8462_v23 = vld [vmem:[#allocation2 + $0x18] ss:$12 sps:$4 sm:$0xff]   ;;  %8159 = vmatprep.subr.bf16.mxu0 %v8469_v31 }
 0x4e4   : > { %3013 = vst [vmem:[#allocation2 + $0x3c] sm:$0xf] %v7365_v24  ;;  %3092 = vst [vmem:[#allocation2 + $0x38] sm:$0xf] %v7380_v55  ;;  %v9310_v12 = vadd.f32 %v2911_v57, %v9119_v8  ;;  %v8472_v20 = vld [vmem:[#allocation4 + $0x438] sm:$0xff]   ;;  %v8477_v47 = vld [vmem:[#allocation4 + $0x3f0] sm:$0xff]  }
 0x4e5   : > { %v2934_v49 = vrot.slane %v2926_v58, 7  ;;  %v2958_v36 = vrot.slane %v2926_v58, 1  ;;  %v7374_v56 = vpack.c.bf16 %v2926_v58, %v2926_v58  ;;  %v8474_v45 = vld [vmem:[#allocation4 + $0x3f8] sm:$0xff]   ;;  %7769 = vmatprep.subr.bf16.mxu1 %v8472_v20  ;;  %v8479_v24 = vld [vmem:[#allocation4 + $0x450] sm:$0xff]   ;;  %v8478_v55 = vld [vmem:[#allocation4 + $0x428] sm:$0xff]  }
 0x4e6   : > { %v2927_v0 = vmax.f32 %v9310_v12, 0.0  ;;  %v8476_v40 = vld [vmem:[#allocation4 + $0x458] sm:$0xff]   ;;  %v8480_v57 = vld [vmem:[#allocation4 + $0x3e8] sm:$0xff]  }
 0x4e7   : > { %v2937_v30 = vsel %vm556_vm2, %v2933_v3, %v2934_v49  ;;  %v2961_v22 = vsel %vm581_vm3, %v2957_v43, %v2958_v36  ;;  %3054 = vst [vmem:[#allocation2 + $0x4c] sm:$0xf] %v7374_v56  ;;  %v8449_v7 = vld [vmem:[#allocation2 + $0x20] ss:$12 sps:$4 sm:$0xff]   ;;  %v8470_v3 = vld [vmem:[#allocation4 + $0x470] sm:$0xff]  }
 0x4e8   : > { %v2950_v5 = vsel %vm8908_vm10, 0.0, %v2937_v30  ;;  %v2973_v8 = vsel %vm8912_vm11, 0.0, %v2961_v22  ;;  %v2935_v27 = vrot.slane %v2927_v0, 7  ;;  %v2959_v10 = vrot.slane %v2927_v0, 1  ;;  %8152 = vmatmul.mubr.bf16.vlgmr.msra.gmra.mxu0 %v8449_v7  ;;  %v8463_v2 = vld [vmem:[#allocation2 + $0x34] ss:$12 sps:$4 sm:$0xff]  }
 0x4e9   : > { %v7366_v37 = vpack.c.bf16 %v2950_v5, %v2950_v5  ;;  %v7381_v11 = vpack.c.bf16 %v2973_v8, %v2973_v8  ;;  %v7375_v41 = vpack.c.bf16 %v2927_v0, %v2927_v0  ;;  %8160 = vmatpush3.bf16.msra.mxu0 %v8469_v31  ;;  %v8471_v43 = vld [vmem:[#allocation4 + $0x468] sm:$0xff]   ;;  %v8486_v56 = vld [vmem:[#allocation4 + $0x440] sm:$0xff]   ;;  %v8485_v0 = vld [vmem:[#allocation4 + $0x418] sm:$0xff]  }
 0x4ea   : > { %v2936_v28 = vsel %vm556_vm2, %v2934_v49, %v2935_v27  ;;  %v2943_v61 = vsel %vm556_vm2, %v2935_v27, %v2928_v54  ;;  %v2960_v4 = vsel %vm581_vm3, %v2958_v36, %v2959_v10  ;;  %v2967_v62 = vsel %vm581_vm3, %v2959_v10, %v2952_v6  ;;  %v8456_v6 = vld [vmem:[#allocation2 + $0x4] ss:$12 sps:$4 sm:$0xff]   ;;  %8161 = vmatprep.subr.bf16.mxu0 %v8470_v3  ;;  %v8487_v30 = vld [vmem:[#allocation4 + $0x3d8] sm:$0xff]  }
 0x4eb   : > { %3014 = vst [vmem:[#allocation2 + $0x48] sm:$0xf] %v7366_v37  ;;  %3093 = vst [vmem:[#allocation2 + $0x44] sm:$0xf] %v7381_v11  ;;  %v2944_v34 = vsel %vm8893_vm8, 0.0, %v2943_v61  ;;  %v2975_v14 = vsel %vm8903_vm9, 0.0, %v2967_v62  ;;  %v7367_v15 = vpack.c.bf16 %v2936_v28, %v2936_v28  ;;  %v7382_v17 = vpack.c.bf16 %v2960_v4, %v2960_v4  ;;  %3409 = vmatprep.mubr.bf16.mxu1 %v8456_v6 }
 0x4ec   : > { %3055 = vst [vmem:[#allocation2 + $0x58] sm:$0xf] %v7375_v41  ;;  %v7360_v54 = vpack.c.bf16 %v2944_v34, %v2944_v34  ;;  %v7383_v18 = vpack.c.bf16 %v2975_v14, %v2975_v14  ;;  %v8465_v25 = vld [vmem:[#allocation2 + $0x30] ss:$12 sps:$4 sm:$0xff]   ;;  %v8481_v49 = vld [vmem:[#allocation4 + $0x420] sm:$0xff]  }
 0x4ed   : > { %3015 = vst [vmem:[#allocation2 + $0x54] sm:$0xf] %v7367_v15  ;;  %3094 = vst [vmem:[#allocation2 + $0x50] sm:$0xf] %v7382_v17  ;;  %8162 = vmatpush3.bf16.msra.mxu0 %v8470_v3  ;;  %v8482_v58 = vld [vmem:[#allocation4 + $0x448] sm:$0xff]   ;;  %v8484_v36 = vld [vmem:[#allocation4 + $0x3e0] sm:$0xff]  }
 0x4ee   : > { %3008 = vst [vmem:[#allocation2] sm:$0xf] %v7360_v54  ;;  %3095 = vst [vmem:[#allocation2 + $0x5c] sm:$0xf] %v7383_v18  ;;  %8163 = vmatprep.subr.bf16.mxu0 %v8471_v43  ;;  %v8488_v22 = vld [vmem:[#allocation4 + $0x410] sm:$0xff]   ;;  %v8491_v5 = vld [vmem:[#allocation4 + $0x408] sm:$0xff]  }
 0x4ef   : > { %v8490_v7 = vld [vmem:[#allocation4 + $0x3d0] sm:$0xff]   ;;  %v8492_v8 = vld [vmem:[#allocation4 + $0x3c8] sm:$0xff]   ;;  %v8493_v27 = vld [vmem:[#allocation4 + $0x400] sm:$0xff]  }
 0x4f0   : > { %v8495_v10 = vld [vmem:[#allocation4 + $0x3c0] sm:$0xff]  }
 0x4f1   : > { %8164 = vmatpush3.bf16.msra.mxu0 %v8471_v43  ;;  %v9340_v28 = vld [vmem:[%s9845_s4 + $0x4] ss:$0 sm:$0xff] }
 0x4f2   : > { %v8454_v16 = vld [vmem:[#allocation2 + $0x38] ss:$12 sps:$4 sm:$0xff]   ;;  %8165 = vmatprep.subr.bf16.mxu0 %v8473_v44 }
 0x4f3   : > { %8155 = vmatprep.mubr.bf16.mxu0 %v8454_v16  ;;  %v8466_v50 = vld [vmem:[#allocation2 + $0x4c] ss:$12 sps:$4 sm:$0xff]  }
 0x4f4   : > { %v8468_v29 = vld [vmem:[#allocation2 + $0x48] ss:$12 sps:$4 sm:$0xff]  }
 0x4f5   : > { %v8458_v19 = vld [vmem:[#allocation2 + $0x50] ss:$12 sps:$4 sm:$0xff]   ;;  %v8459_v63 = vld [vmem:[#allocation2] ss:$12 sps:$4 sm:$0xff]   ;;  %8166 = vmatpush3.bf16.msra.mxu0 %v8473_v44 }
 0x4f6   : > { %8156 = vmatmul.mubr.bf16.gmra.mxu0 %v8458_v19  ;;  %3410 = vmatmul.mubr.bf16.vlgmr.msra.gmra.mxu1 %v8459_v63 }
 0x4f7   : > { %3417 = vmatprep.mubr.bf16.mxu1 %v8460_v13  ;;  %7770 = vmatpush3.bf16.msra.mxu1 %v8474_v45 }
 0x4f8   : > { %8167 = vmatprep.subr.bf16.mxu0 %v8476_v40  ;;  %7771 = vmatprep.subr.bf16.mxu1 %v8475_v21 }
 0x4f9   : > { %8168 = vmatpush3.bf16.msra.mxu0 %v8476_v40 }
 0x4fa   : > { %8169 = vmatprep.subr.bf16.mxu0 %v8479_v24 }
 0x4fb   : > { %7772 = vmatpush3.bf16.msra.mxu1 %v8477_v47 }
 0x4fc   : > { %7773 = vmatprep.subr.bf16.mxu1 %v8478_v55 }
 0x4fd   : > { %8170 = vmatpush3.bf16.msra.mxu0 %v8479_v24 }
 0x4fe   : > { %3418 = vmatmul.mubr.bf16.gmra.mxu1 %v8462_v23  ;;  %8171 = vmatprep.subr.bf16.mxu0 %v8482_v58 }
 0x4ff   : > { %3425 = vmatprep.mubr.bf16.mxu1 %v8463_v2  ;;  %7774 = vmatpush3.bf16.msra.mxu1 %v8480_v57 }
 0x500   : > { %7775 = vmatprep.subr.bf16.mxu1 %v8481_v49 }
 0x501   : > { %8172 = vmatpush3.bf16.msra.mxu0 %v8482_v58 }
 0x502   : > { %8173 = vmatprep.subr.bf16.mxu0 %v8486_v56 }
 0x503   : > { %7776 = vmatpush3.bf16.msra.mxu1 %v8484_v36 }
 0x504   : > { %7777 = vmatprep.subr.bf16.mxu1 %v8485_v0 }
 0x505   : > { %8174 = vmatpush3.bf16.msra.mxu0 %v8486_v56 }
 0x506   : > { %3426 = vmatmul.mubr.bf16.gmra.mxu1 %v8465_v25 }
 0x507   : > { %3433 = vmatprep.mubr.bf16.mxu1 %v8466_v50  ;;  %7778 = vmatpush3.bf16.msra.mxu1 %v8487_v30 }
 0x508   : > { %7779 = vmatprep.subr.bf16.mxu1 %v8488_v22 }
 0x50b   : > { %7780 = vmatpush3.bf16.msra.mxu1 %v8490_v7 }
 0x50c   : > { %7781 = vmatprep.subr.bf16.mxu1 %v8491_v5 }
 0x50e   : > { %3434 = vmatmul.mubr.bf16.gmra.mxu1 %v8468_v29 }
 0x50f   : > { %7782 = vmatpush3.bf16.msra.mxu1 %v8492_v8 }
 0x510   : > { %7783 = vmatprep.subr.bf16.mxu1 %v8493_v27 }
 0x513   : > { %7784 = vmatpush3.bf16.msra.mxu1 %v8495_v10 }
 0x5a8   : > { %v8153_v37 = vpop.f32.mrf.mxu0 }
 0x5aa   : > { %v3476_v41 = vpop.f32.mrf.mxu0 }
 0x5ac   : > { %v8154_v14 = vpop.f32.mrf.mxu0 }
 0x5ae   : > { %v3479_v19 = vpop.f32.mrf.mxu0 }
 0x5b6   : > { %v7733_v11 = vpop.f32.mrf.mxu1  ;;  %v9351_v21 = vpop.f32.mrf.mxu0 }
 0x5b8   : > { %v7734_v61 = vpop.f32.mrf.mxu1  ;;  %v3492_v7 = vpop.f32.mrf.mxu0 }
 0x5b9   : > { %v7735_v4 = vadd.f32 %v7734_v61, %v7733_v11 }
 0x5ba   : > { %v7736_v62 = vpop.f32.mrf.mxu1 }
 0x5bb   : > { %v3412_v34 = vadd.f32 %v7735_v4, %v9340_v28 }
 0x5bc   : > { %v7737_v15 = vpop.f32.mrf.mxu1 }
 0x5bd   : > { %v3477_v17 = vadd.f32 %v3476_v41, %v3412_v34  ;;  %v7738_v54 = vadd.f32 %v7737_v15, %v7736_v62 }
 0x5be   : > { %v7739_v18 = vpop.f32.mrf.mxu1 }
 0x5bf   : > { %v9343_v16 = vmax.f32 %v3477_v17, 0.0  ;;  %v3415_v6 = vadd.f32 %v7738_v54, %v9340_v28  ;;  %v8158_v17 = vpop.f32.mrf.mxu0 }
 0x5c0   : > { %v7740_v63 = vpop.f32.mrf.mxu1 }
 0x5c1   : > { %v7392_v13 = vpack.c.bf16 %v9343_v16, %v9343_v16  ;;  %v3480_v23 = vadd.f32 %v3479_v19, %v3415_v6  ;;  %v7741_v2 = vadd.f32 %v7740_v63, %v7739_v18  ;;  %v3515_v29 = vrot.slane %v9343_v16, 7 }
 0x5c2   : > { %v7742_v25 = vpop.f32.mrf.mxu1  ;;  %v3539_v31 = vrot.slane %v9343_v16, 1 }
 0x5c3   : > { %3635 = vst [vmem:[#allocation2 + $0x4] sm:$0xf] %v7392_v13  ;;  %v3508_v50 = vmax.f32 %v3480_v23, 0.0  ;;  %v3420_v3 = vadd.f32 %v7741_v2, %v9340_v28 }
 0x5c4   : > { %v7743_v43 = vpop.f32.mrf.mxu1 }
 0x5c5   : > { %v3516_v44 = vrot.slane %v3508_v50, 7  ;;  %v3540_v20 = vrot.slane %v3508_v50, 1  ;;  %v7393_v45 = vpack.c.bf16 %v3508_v50, %v3508_v50  ;;  %v7744_v40 = vadd.f32 %v7743_v43, %v7742_v25 }
 0x5c6   : > { %v3485_v47 = vadd.f32 %v8153_v37, %v3420_v3  ;;  %v7745_v24 = vpop.f32.mrf.mxu1 }
 0x5c7   : > { %v3529_v55 = vsel %vm556_vm2, %v3515_v29, %v3516_v44  ;;  %v3553_v57 = vsel %vm581_vm3, %v3539_v31, %v3540_v20  ;;  %3636 = vst [vmem:[#allocation2 + $0x10] sm:$0xf] %v7393_v45  ;;  %v3423_v58 = vadd.f32 %v7744_v40, %v9340_v28  ;;  %v3495_v45 = vpop.f32.mrf.mxu0 }
 0x5c8   : > { %v7385_v49 = vpack.c.bf16 %v3529_v55, %v3529_v55  ;;  %v7400_v36 = vpack.c.bf16 %v3553_v57, %v3553_v57  ;;  %v3509_v56 = vmax.f32 %v3485_v47, 0.0  ;;  %v7746_v0 = vpop.f32.mrf.mxu1 }
 0x5c9   : > { %v3488_v30 = vadd.f32 %v8154_v14, %v3423_v58  ;;  %v7747_v22 = vadd.f32 %v7746_v0, %v7745_v24 }
 0x5ca   : > { %3596 = vst [vmem:[#allocation2 + $0xc] sm:$0xf] %v7385_v49  ;;  %3675 = vst [vmem:[#allocation2 + $0x8] sm:$0xf] %v7400_v36  ;;  %v3517_v5 = vrot.slane %v3509_v56, 7  ;;  %v3541_v8 = vrot.slane %v3509_v56, 1  ;;  %v7394_v27 = vpack.c.bf16 %v3509_v56, %v3509_v56  ;;  %v7748_v10 = vpop.f32.mrf.mxu1 }
 0x5cb   : > { %v3510_v37 = vmax.f32 %v3488_v30, 0.0  ;;  %v3428_v11 = vadd.f32 %v7747_v22, %v9340_v28 }
 0x5cc   : > { %v3528_v41 = vsel %vm556_vm2, %v3516_v44, %v3517_v5  ;;  %v3552_v61 = vsel %vm581_vm3, %v3540_v20, %v3541_v8  ;;  %3637 = vst [vmem:[#allocation2 + $0x1c] sm:$0xf] %v7394_v27  ;;  %v7749_v4 = vpop.f32.mrf.mxu1 }
 0x5cd   : > { %v3533_v62 = vsel %vm8825_vm4, 0.0, %v3528_v41  ;;  %v3556_v34 = vsel %vm8829_vm5, 0.0, %v3552_v61  ;;  %v3518_v14 = vrot.slane %v3510_v37, 7  ;;  %v3542_v15 = vrot.slane %v3510_v37, 1 }
 0x5ce   : > { %v7386_v54 = vpack.c.bf16 %v3533_v62, %v3533_v62  ;;  %v7401_v18 = vpack.c.bf16 %v3556_v34, %v3556_v34  ;;  %v7395_v6 = vpack.c.bf16 %v3510_v37, %v3510_v37  ;;  %v3493_v19 = vadd.f32 %v3492_v7, %v3428_v11  ;;  %v7751_v63 = vpop.f32.mrf.mxu1 }
 0x5cf   : > { %v3527_v13 = vsel %vm556_vm2, %v3517_v5, %v3518_v14  ;;  %v3551_v23 = vsel %vm581_vm3, %v3541_v8, %v3542_v15  ;;  %v7750_v2 = vadd.f32 %v7749_v4, %v7748_v10 }
 0x5d0   : > { %3597 = vst [vmem:[#allocation2 + $0x18] sm:$0xf] %v7386_v54  ;;  %3676 = vst [vmem:[#allocation2 + $0x14] sm:$0xf] %v7401_v18  ;;  %v7387_v25 = vpack.c.bf16 %v3527_v13, %v3527_v13  ;;  %v7402_v50 = vpack.c.bf16 %v3551_v23, %v3551_v23  ;;  %v3511_v3 = vmax.f32 %v3493_v19, 0.0  ;;  %v7752_v43 = vpop.f32.mrf.mxu1 }
 0x5d1   : > { %3638 = vst [vmem:[#allocation2 + $0x28] sm:$0xf] %v7395_v6  ;;  %v3431_v44 = vadd.f32 %v7750_v2, %v9340_v28  ;;  %v7753_v20 = vadd.f32 %v7752_v43, %v7751_v63 }
 0x5d2   : > { %3598 = vst [vmem:[#allocation2 + $0x24] sm:$0xf] %v7387_v25  ;;  %3677 = vst [vmem:[#allocation2 + $0x20] sm:$0xf] %v7402_v50  ;;  %v3519_v40 = vrot.slane %v3511_v3, 7  ;;  %v3543_v47 = vrot.slane %v3511_v3, 1  ;;  %v7396_v24 = vpack.c.bf16 %v3511_v3, %v3511_v3  ;;  %v7754_v55 = vpop.f32.mrf.mxu1 }
 0x5d3   : > { %v3496_v57 = vadd.f32 %v3495_v45, %v3431_v44  ;;  %v3436_v58 = vadd.f32 %v7753_v20, %v9340_v28 }
 0x5d4   : > { %v3526_v49 = vsel %vm556_vm2, %v3518_v14, %v3519_v40  ;;  %v3550_v36 = vsel %vm581_vm3, %v3542_v15, %v3543_v47  ;;  %3639 = vst [vmem:[#allocation2 + $0x34] sm:$0xf] %v7396_v24  ;;  %v7755_v56 = vpop.f32.mrf.mxu1 }
 0x5d5   : > { %v3535_v0 = vsel %vm8884_vm6, 0.0, %v3526_v49  ;;  %v3558_v30 = vsel %vm8889_vm7, 0.0, %v3550_v36  ;;  %v3512_v22 = vmax.f32 %v3496_v57, 0.0  ;;  %v3501_v7 = vadd.f32 %v9351_v21, %v3436_v58  ;;  %v8496_v49 = vld [vmem:[#allocation2 + $0x4] ss:$12 sps:$4 sm:$0xff]  }
 0x5d6   : > { %v7388_v5 = vpack.c.bf16 %v3535_v0, %v3535_v0  ;;  %v7403_v8 = vpack.c.bf16 %v3558_v30, %v3558_v30  ;;  %v7756_v27 = vadd.f32 %v7755_v56, %v7754_v55  ;;  %3996 = vmatprep.mubr.bf16.mxu1 %v8496_v49 }
 0x5d7   : > { %v3520_v10 = vrot.slane %v3512_v22, 7  ;;  %v3544_v37 = vrot.slane %v3512_v22, 1  ;;  %v7397_v11 = vpack.c.bf16 %v3512_v22, %v3512_v22  ;;  %v3513_v41 = vmax.f32 %v3501_v7, 0.0  ;;  %v8483_v4 = vld [vmem:[#allocation2 + $0x8] ss:$12 sps:$4 sm:$0xff]  }
 0x5d8   : > { %3599 = vst [vmem:[#allocation2 + $0x30] sm:$0xf] %v7388_v5  ;;  %3678 = vst [vmem:[#allocation2 + $0x2c] sm:$0xf] %v7403_v8  ;;  %v3439_v61 = vadd.f32 %v7756_v27, %v9340_v28  ;;  %8175 = vmatprep.mubr.bf16.mxu0 %v8483_v4  ;;  %v8500_v56 = vld [vmem:[#allocation2 + $0x1c] ss:$12 sps:$4 sm:$0xff]  }
 0x5d9   : > { %v3525_v62 = vsel %vm556_vm2, %v3519_v40, %v3520_v10  ;;  %v3549_v34 = vsel %vm581_vm3, %v3543_v47, %v3544_v37  ;;  %3640 = vst [vmem:[#allocation2 + $0x40] sm:$0xf] %v7397_v11  ;;  %v3521_v21 = vrot.slane %v3513_v41, 7  ;;  %v3545_v14 = vrot.slane %v3513_v41, 1  ;;  %v8502_v0 = vld [vmem:[#allocation2 + $0x18] ss:$12 sps:$4 sm:$0xff]  }
 0x5da   : > { %v7389_v15 = vpack.c.bf16 %v3525_v62, %v3525_v62  ;;  %v7404_v54 = vpack.c.bf16 %v3549_v34, %v3549_v34  ;;  %v7398_v18 = vpack.c.bf16 %v3513_v41, %v3513_v41  ;;  %v3504_v6 = vadd.f32 %v8158_v17, %v3439_v61  ;;  %v8509_v8 = vld [vmem:[#allocation4 + $0x538] sm:$0xff]   ;;  %v8510_v27 = vld [vmem:[#allocation4 + $0x530] sm:$0xff]  }
 0x5db   : > { %v3524_v19 = vsel %vm556_vm2, %v3520_v10, %v3521_v21  ;;  %v3548_v28 = vsel %vm581_vm3, %v3544_v37, %v3545_v14  ;;  %8183 = vmatprep.subr.bf16.mxu0 %v8509_v8  ;;  %v8511_v10 = vld [vmem:[#allocation4 + $0x528] sm:$0xff]   ;;  %v8513_v37 = vld [vmem:[#allocation4 + $0x520] sm:$0xff]   ;;  %v8512_v11 = vld [vmem:[#allocation4 + $0x4f8] sm:$0xff]  }
 0x5dc   : > { %3600 = vst [vmem:[#allocation2 + $0x3c] sm:$0xf] %v7389_v15  ;;  %3679 = vst [vmem:[#allocation2 + $0x38] sm:$0xf] %v7404_v54  ;;  %v3537_v63 = vsel %vm8908_vm10, 0.0, %v3524_v19  ;;  %v3560_v13 = vsel %vm8912_vm11, 0.0, %v3548_v28  ;;  %7821 = vmatprep.subr.bf16.mxu1 %v8512_v11 }
 0x5dd   : > { %3641 = vst [vmem:[#allocation2 + $0x4c] sm:$0xf] %v7398_v18  ;;  %v3514_v23 = vmax.f32 %v3504_v6, 0.0  ;;  %v7390_v2 = vpack.c.bf16 %v3537_v63, %v3537_v63  ;;  %v7405_v25 = vpack.c.bf16 %v3560_v13, %v3560_v13  ;;  %v8514_v41 = vld [vmem:[#allocation4 + $0x4b8] sm:$0xff]   ;;  %v8515_v4 = vld [vmem:[#allocation4 + $0x4f0] sm:$0xff]   ;;  %v8522_v15 = vld [vmem:[#allocation4 + $0x508] sm:$0xff]  }
 0x5de   : > { %v8516_v61 = vld [vmem:[#allocation4 + $0x518] sm:$0xff]   ;;  %v8517_v62 = vld [vmem:[#allocation4 + $0x4b0] sm:$0xff]   ;;  %v8521_v54 = vld [vmem:[#allocation4 + $0x4e0] sm:$0xff]  }
 0x5df   : > { %v3522_v17 = vrot.slane %v3514_v23, 7  ;;  %v3546_v50 = vrot.slane %v3514_v23, 1  ;;  %v7399_v3 = vpack.c.bf16 %v3514_v23, %v3514_v23  ;;  %3601 = vst [vmem:[#allocation2 + $0x48] sm:$0xf] %v7390_v2  ;;  %3680 = vst [vmem:[#allocation2 + $0x44] sm:$0xf] %v7405_v25 }
 0x5e0   : > { %v8489_v43 = vld [vmem:[#allocation2 + $0x20] ss:$12 sps:$4 sm:$0xff]   ;;  %v8519_v34 = vld [vmem:[#allocation4 + $0x510] sm:$0xff]  }
 0x5e1   : > { %v3523_v44 = vsel %vm556_vm2, %v3521_v21, %v3522_v17  ;;  %v3530_v20 = vsel %vm556_vm2, %v3522_v17, %v3515_v29  ;;  %v3547_v45 = vsel %vm581_vm3, %v3545_v14, %v3546_v50  ;;  %v3554_v40 = vsel %vm581_vm3, %v3546_v50, %v3539_v31  ;;  %3642 = vst [vmem:[#allocation2 + $0x58] sm:$0xf] %v7399_v3  ;;  %v8503_v30 = vld [vmem:[#allocation2 + $0x34] ss:$12 sps:$4 sm:$0xff]   ;;  %v8518_v21 = vld [vmem:[#allocation4 + $0x4e8] sm:$0xff]  }
 0x5e2   : > { %v3531_v47 = vsel %vm8893_vm8, 0.0, %v3530_v20  ;;  %v3562_v24 = vsel %vm8903_vm9, 0.0, %v3554_v40  ;;  %v7391_v55 = vpack.c.bf16 %v3523_v44, %v3523_v44  ;;  %v7406_v57 = vpack.c.bf16 %v3547_v45, %v3547_v45  ;;  %8176 = vmatmul.mubr.bf16.vlgmr.msra.gmra.mxu0 %v8489_v43  ;;  %v8520_v14 = vld [vmem:[#allocation4 + $0x4a8] sm:$0xff]   ;;  %v8524_v18 = vld [vmem:[#allocation4 + $0x4a0] sm:$0xff]   ;;  %v8525_v19 = vld [vmem:[#allocation4 + $0x4d8] sm:$0xff]  }
 0x5e3   : > { %v7384_v58 = vpack.c.bf16 %v3531_v47, %v3531_v47  ;;  %v7407_v29 = vpack.c.bf16 %v3562_v24, %v3562_v24  ;;  %v8505_v22 = vld [vmem:[#allocation2 + $0x30] ss:$12 sps:$4 sm:$0xff]   ;;  %8184 = vmatpush3.bf16.msra.mxu0 %v8509_v8  ;;  %v8526_v6 = vld [vmem:[#allocation4 + $0x500] sm:$0xff]  }
 0x5e4   : > { %3602 = vst [vmem:[#allocation2 + $0x54] sm:$0xf] %v7391_v55  ;;  %3681 = vst [vmem:[#allocation2 + $0x50] sm:$0xf] %v7406_v57  ;;  %8185 = vmatprep.subr.bf16.mxu0 %v8510_v27  ;;  %v8527_v28 = vld [vmem:[#allocation4 + $0x498] sm:$0xff]   ;;  %v8528_v63 = vld [vmem:[#allocation4 + $0x4d0] sm:$0xff]  }
 0x5e5   : > { %3595 = vst [vmem:[#allocation2] sm:$0xf] %v7384_v58  ;;  %3682 = vst [vmem:[#allocation2 + $0x5c] sm:$0xf] %v7407_v29  ;;  %v8530_v13 = vld [vmem:[#allocation4 + $0x490] sm:$0xff]   ;;  %v8531_v23 = vld [vmem:[#allocation4 + $0x4c8] sm:$0xff]  }
 0x5e6   : > { %v8494_v16 = vld [vmem:[#allocation2 + $0x38] ss:$12 sps:$4 sm:$0xff]   ;;  %v8532_v2 = vld [vmem:[#allocation4 + $0x488] sm:$0xff]  }
 0x5e7   : > { %8179 = vmatprep.mubr.bf16.mxu0 %v8494_v16  ;;  %8186 = vmatpush3.bf16.msra.mxu0 %v8510_v27  ;;  %v8533_v25 = vld [vmem:[#allocation4 + $0x4c0] sm:$0xff]  }
 0x5e8   : > { %v8506_v7 = vld [vmem:[#allocation2 + $0x4c] ss:$12 sps:$4 sm:$0xff]   ;;  %8187 = vmatprep.subr.bf16.mxu0 %v8511_v10  ;;  %v8535_v17 = vld [vmem:[#allocation4 + $0x480] sm:$0xff]  }
 0x5e9   : > { %v9418_v44 = vld [vmem:[%s9845_s4 + $0x5] ss:$0 sm:$0xff] }
 0x5eb   : > { %v8508_v5 = vld [vmem:[#allocation2 + $0x48] ss:$12 sps:$4 sm:$0xff]   ;;  %8188 = vmatpush3.bf16.msra.mxu0 %v8511_v10 }
 0x5ec   : > { %v8498_v31 = vld [vmem:[#allocation2 + $0x50] ss:$12 sps:$4 sm:$0xff]   ;;  %v8499_v36 = vld [vmem:[#allocation2] ss:$12 sps:$4 sm:$0xff]   ;;  %8189 = vmatprep.subr.bf16.mxu0 %v8513_v37 }
 0x5ed   : > { %8180 = vmatmul.mubr.bf16.gmra.mxu0 %v8498_v31  ;;  %3997 = vmatmul.mubr.bf16.vlgmr.msra.gmra.mxu1 %v8499_v36 }
 0x5ee   : > { %4004 = vmatprep.mubr.bf16.mxu1 %v8500_v56  ;;  %7822 = vmatpush3.bf16.msra.mxu1 %v8514_v41 }
 0x5ef   : > { %8190 = vmatpush3.bf16.msra.mxu0 %v8513_v37  ;;  %7823 = vmatprep.subr.bf16.mxu1 %v8515_v4 }
 0x5f0   : > { %8191 = vmatprep.subr.bf16.mxu0 %v8516_v61 }
 0x5f2   : > { %7824 = vmatpush3.bf16.msra.mxu1 %v8517_v62 }
 0x5f3   : > { %8192 = vmatpush3.bf16.msra.mxu0 %v8516_v61  ;;  %7825 = vmatprep.subr.bf16.mxu1 %v8518_v21 }
 0x5f4   : > { %8193 = vmatprep.subr.bf16.mxu0 %v8519_v34 }
 0x5f5   : > { %4005 = vmatmul.mubr.bf16.gmra.mxu1 %v8502_v0 }
 0x5f6   : > { %4012 = vmatprep.mubr.bf16.mxu1 %v8503_v30  ;;  %7826 = vmatpush3.bf16.msra.mxu1 %v8520_v14 }
 0x5f7   : > { %8194 = vmatpush3.bf16.msra.mxu0 %v8519_v34  ;;  %7827 = vmatprep.subr.bf16.mxu1 %v8521_v54 }
 0x5f8   : > { %8195 = vmatprep.subr.bf16.mxu0 %v8522_v15 }
 0x5fa   : > { %7828 = vmatpush3.bf16.msra.mxu1 %v8524_v18 }
 0x5fb   : > { %8196 = vmatpush3.bf16.msra.mxu0 %v8522_v15  ;;  %7829 = vmatprep.subr.bf16.mxu1 %v8525_v19 }
 0x5fc   : > { %8197 = vmatprep.subr.bf16.mxu0 %v8526_v6 }
 0x5fd   : > { %4013 = vmatmul.mubr.bf16.gmra.mxu1 %v8505_v22 }
 0x5fe   : > { %4020 = vmatprep.mubr.bf16.mxu1 %v8506_v7  ;;  %7830 = vmatpush3.bf16.msra.mxu1 %v8527_v28 }
 0x5ff   : > { %8198 = vmatpush3.bf16.msra.mxu0 %v8526_v6  ;;  %7831 = vmatprep.subr.bf16.mxu1 %v8528_v63 }
 0x602   : > { %7832 = vmatpush3.bf16.msra.mxu1 %v8530_v13 }
 0x603   : > { %7833 = vmatprep.subr.bf16.mxu1 %v8531_v23 }
 0x605   : > { %4021 = vmatmul.mubr.bf16.gmra.mxu1 %v8508_v5 }
 0x606   : > { %7834 = vmatpush3.bf16.msra.mxu1 %v8532_v2 }
 0x607   : > { %7835 = vmatprep.subr.bf16.mxu1 %v8533_v25 }
 0x60a   : > { %7836 = vmatpush3.bf16.msra.mxu1 %v8535_v17 }
 0x6a2   : > { %v8177_v50 = vpop.f32.mrf.mxu0 }
 0x6a4   : > { %v4063_v43 = vpop.f32.mrf.mxu0 }
 0x6a6   : > { %v8178_v24 = vpop.f32.mrf.mxu0 }
 0x6a8   : > { %v4066_v31 = vpop.f32.mrf.mxu0 }
 0x6ad   : > { %v7785_v3 = vpop.f32.mrf.mxu1  ;;  %v9429_v27 = vpop.f32.mrf.mxu0 }
 0x6af   : > { %v7786_v20 = vpop.f32.mrf.mxu1  ;;  %v4079_v62 = vpop.f32.mrf.mxu0 }
 0x6b0   : > { %v7787_v45 = vadd.f32 %v7786_v20, %v7785_v3 }
 0x6b1   : > { %v7788_v40 = vpop.f32.mrf.mxu1  ;;  %v9452_v17 = vpop.f32.mrf.mxu0 }
 0x6b2   : > { %v3999_v47 = vadd.f32 %v7787_v45, %v9418_v44 }
 0x6b3   : > { %v7789_v55 = vpop.f32.mrf.mxu1 }
 0x6b4   : > { %v4064_v57 = vadd.f32 %v4063_v43, %v3999_v47  ;;  %v7790_v58 = vadd.f32 %v7789_v55, %v7788_v40 }
 0x6b5   : > { %v7791_v29 = vpop.f32.mrf.mxu1 }
 0x6b6   : > { %v4094_v16 = vmul.f32 0.3, %v4064_v57  ;;  %v4002_v49 = vadd.f32 %v7790_v58, %v9418_v44 }
 0x6b7   : > { %v7792_v36 = vpop.f32.mrf.mxu1 }
 0x6b8   : > { %v9423_v56 = vadd.f32 %v4094_v16, %v9232_v33  ;;  %v4067_v0 = vadd.f32 %v4066_v31, %v4002_v49  ;;  %v7793_v30 = vadd.f32 %v7792_v36, %v7791_v29  ;;  %v4082_v49 = vpop.f32.mrf.mxu0 }
 0x6b9   : > { %v7794_v22 = vpop.f32.mrf.mxu1 }
 0x6ba   : > { %v9426_v7 = vmax.f32 %v9423_v56, 0.0  ;;  %v4095_v5 = vmul.f32 0.3, %v4067_v0  ;;  %v4007_v8 = vadd.f32 %v7793_v30, %v9418_v44 }
 0x6bb   : > { %v7795_v10 = vpop.f32.mrf.mxu1 }
 0x6bc   : > { %v7416_v37 = vpack.c.bf16 %v9426_v7, %v9426_v7  ;;  %v9434_v11 = vadd.f32 %v4095_v5, %v9243_v1  ;;  %v4072_v33 = vadd.f32 %v8177_v50, %v4007_v8  ;;  %v7796_v41 = vadd.f32 %v7795_v10, %v7794_v22 }
 0x6bd   : > { %v7797_v61 = vpop.f32.mrf.mxu1  ;;  %v4118_v34 = vrot.slane %v9426_v7, 7  ;;  %v4142_v21 = vrot.slane %v9426_v7, 1 }
 0x6be   : > { %4238 = vst [vmem:[#allocation2 + $0x4] sm:$0xf] %v7416_v37  ;;  %v4111_v4 = vmax.f32 %v9434_v11, 0.0  ;;  %v4096_v14 = vmul.f32 0.3, %v4072_v33  ;;  %v4010_v15 = vadd.f32 %v7796_v41, %v9418_v44 }
 0x6bf   : > { %v7798_v54 = vpop.f32.mrf.mxu1 }
 0x6c0   : > { %v4119_v18 = vrot.slane %v4111_v4, 7  ;;  %v4143_v6 = vrot.slane %v4111_v4, 1  ;;  %v7417_v19 = vpack.c.bf16 %v4111_v4, %v4111_v4  ;;  %v7799_v1 = vadd.f32 %v7798_v54, %v7797_v61 }
 0x6c1   : > { %v9441_v28 = vadd.f32 %v4096_v14, %v9250_v26  ;;  %v4075_v63 = vadd.f32 %v8178_v24, %v4010_v15  ;;  %v7800_v13 = vpop.f32.mrf.mxu1 }
 0x6c2   : > { %v4132_v23 = vsel %vm556_vm2, %v4118_v34, %v4119_v18  ;;  %v4156_v2 = vsel %vm581_vm3, %v4142_v21, %v4143_v6  ;;  %4239 = vst [vmem:[#allocation2 + $0x10] sm:$0xf] %v7417_v19  ;;  %v4015_v25 = vadd.f32 %v7799_v1, %v9418_v44 }
 0x6c3   : > { %v7409_v50 = vpack.c.bf16 %v4132_v23, %v4132_v23  ;;  %v7424_v26 = vpack.c.bf16 %v4156_v2, %v4156_v2  ;;  %v4112_v3 = vmax.f32 %v9441_v28, 0.0  ;;  %v4097_v43 = vmul.f32 0.3, %v4075_v63  ;;  %v7801_v20 = vpop.f32.mrf.mxu1 }
 0x6c4   : > { %v4080_v45 = vadd.f32 %v4079_v62, %v4015_v25  ;;  %v7802_v40 = vadd.f32 %v7801_v20, %v7800_v13 }
 0x6c5   : > { %4199 = vst [vmem:[#allocation2 + $0xc] sm:$0xf] %v7409_v50  ;;  %4278 = vst [vmem:[#allocation2 + $0x8] sm:$0xf] %v7424_v26  ;;  %v4120_v47 = vrot.slane %v4112_v3, 7  ;;  %v4144_v24 = vrot.slane %v4112_v3, 1  ;;  %v7418_v55 = vpack.c.bf16 %v4112_v3, %v4112_v3  ;;  %v9456_v57 = vadd.f32 %v4097_v43, %v9265_v42  ;;  %v7803_v58 = vpop.f32.mrf.mxu1 }
 0x6c6   : > { %v4098_v29 = vmul.f32 0.3, %v4080_v45  ;;  %v4018_v16 = vadd.f32 %v7802_v40, %v9418_v44 }
 0x6c7   : > { %v4131_v31 = vsel %vm556_vm2, %v4119_v18, %v4120_v47  ;;  %v4155_v36 = vsel %vm581_vm3, %v4143_v6, %v4144_v24  ;;  %4240 = vst [vmem:[#allocation2 + $0x1c] sm:$0xf] %v7418_v55  ;;  %v4113_v0 = vmax.f32 %v9456_v57, 0.0  ;;  %v7804_v30 = vpop.f32.mrf.mxu1 }
 0x6c8   : > { %v4136_v22 = vsel %vm8825_vm4, 0.0, %v4131_v31  ;;  %v4159_v42 = vsel %vm8829_vm5, 0.0, %v4155_v36  ;;  %v9469_v5 = vadd.f32 %v4098_v29, %v9278_v59  ;;  %v4083_v8 = vadd.f32 %v4082_v49, %v4018_v16 }
 0x6c9   : > { %v7410_v10 = vpack.c.bf16 %v4136_v22, %v4136_v22  ;;  %v7425_v37 = vpack.c.bf16 %v4159_v42, %v4159_v42  ;;  %v4121_v33 = vrot.slane %v4113_v0, 7  ;;  %v4145_v41 = vrot.slane %v4113_v0, 1  ;;  %v7806_v61 = vpop.f32.mrf.mxu1 }
 0x6ca   : > { %v7419_v4 = vpack.c.bf16 %v4113_v0, %v4113_v0  ;;  %v4114_v62 = vmax.f32 %v9469_v5, 0.0  ;;  %v4099_v14 = vmul.f32 0.3, %v4083_v8  ;;  %v7805_v15 = vadd.f32 %v7804_v30, %v7803_v58 }
 0x6cb   : > { %4200 = vst [vmem:[#allocation2 + $0x18] sm:$0xf] %v7410_v10  ;;  %4279 = vst [vmem:[#allocation2 + $0x14] sm:$0xf] %v7425_v37  ;;  %v4130_v54 = vsel %vm556_vm2, %v4120_v47, %v4121_v33  ;;  %v4154_v59 = vsel %vm581_vm3, %v4144_v24, %v4145_v41  ;;  %v7807_v18 = vpop.f32.mrf.mxu1 }
 0x6cc   : > { %v7411_v6 = vpack.c.bf16 %v4130_v54, %v4130_v54  ;;  %v7426_v19 = vpack.c.bf16 %v4154_v59, %v4154_v59  ;;  %4241 = vst [vmem:[#allocation2 + $0x28] sm:$0xf] %v7419_v4  ;;  %v4122_v1 = vrot.slane %v4114_v62, 7  ;;  %v4146_v63 = vrot.slane %v4114_v62, 1 }
 0x6cd   : > { %v7420_v13 = vpack.c.bf16 %v4114_v62, %v4114_v62  ;;  %v9477_v23 = vadd.f32 %v4099_v14, %v9286_v9  ;;  %v4023_v2 = vadd.f32 %v7805_v15, %v9418_v44  ;;  %v7808_v25 = vadd.f32 %v7807_v18, %v7806_v61 }
 0x6ce   : > { %4201 = vst [vmem:[#allocation2 + $0x24] sm:$0xf] %v7411_v6  ;;  %4280 = vst [vmem:[#allocation2 + $0x20] sm:$0xf] %v7426_v19  ;;  %v4129_v50 = vsel %vm556_vm2, %v4121_v33, %v4122_v1  ;;  %v4153_v26 = vsel %vm581_vm3, %v4145_v41, %v4146_v63 }
 0x6cf   : > { %v4138_v3 = vsel %vm8884_vm6, 0.0, %v4129_v50  ;;  %v4161_v43 = vsel %vm8889_vm7, 0.0, %v4153_v26  ;;  %4242 = vst [vmem:[#allocation2 + $0x34] sm:$0xf] %v7420_v13  ;;  %v4115_v9 = vmax.f32 %v9477_v23, 0.0  ;;  %v4088_v20 = vadd.f32 %v9429_v27, %v4023_v2 }
 0x6d0   : > { %v7412_v45 = vpack.c.bf16 %v4138_v3, %v4138_v3  ;;  %v7427_v40 = vpack.c.bf16 %v4161_v43, %v4161_v43  ;;  %v4026_v47 = vadd.f32 %v7808_v25, %v9418_v44 }
 0x6d1   : > { %v4123_v24 = vrot.slane %v4115_v9, 7  ;;  %v4147_v55 = vrot.slane %v4115_v9, 1  ;;  %v7421_v58 = vpack.c.bf16 %v4115_v9, %v4115_v9  ;;  %v4100_v29 = vmul.f32 0.3, %v4088_v20 }
 0x6d2   : > { %4202 = vst [vmem:[#allocation2 + $0x30] sm:$0xf] %v7412_v45  ;;  %4281 = vst [vmem:[#allocation2 + $0x2c] sm:$0xf] %v7427_v40  ;;  %v4091_v16 = vadd.f32 %v9452_v17, %v4026_v47  ;;  %v8523_v49 = vld [vmem:[#allocation2 + $0x8] ss:$12 sps:$4 sm:$0xff]  }
 0x6d3   : > { %v4128_v31 = vsel %vm556_vm2, %v4122_v1, %v4123_v24  ;;  %v4152_v36 = vsel %vm581_vm3, %v4146_v63, %v4147_v55  ;;  %4243 = vst [vmem:[#allocation2 + $0x40] sm:$0xf] %v7421_v58  ;;  %v9497_v27 = vadd.f32 %v4100_v29, %v9306_v60  ;;  %8199 = vmatprep.mubr.bf16.mxu0 %v8523_v49  ;;  %v8540_v3 = vld [vmem:[#allocation2 + $0x1c] ss:$12 sps:$4 sm:$0xff]  }
 0x6d4   : > { %v7413_v44 = vpack.c.bf16 %v4128_v31, %v4128_v31  ;;  %v7428_v0 = vpack.c.bf16 %v4152_v36, %v4152_v36  ;;  %v4101_v30 = vmul.f32 0.3, %v4091_v16  ;;  %v8549_v47 = vld [vmem:[#allocation4 + $0x5f8] sm:$0xff]   ;;  %v8553_v58 = vld [vmem:[#allocation4 + $0x5e0] sm:$0xff]   ;;  %v8555_v31 = vld [vmem:[#allocation4 + $0x5b0] sm:$0xff]  }
 0x6d5   : > { %v4116_v22 = vmax.f32 %v9497_v27, 0.0  ;;  %v8542_v43 = vld [vmem:[#allocation2 + $0x18] ss:$12 sps:$4 sm:$0xff]   ;;  %8207 = vmatprep.subr.bf16.mxu0 %v8549_v47 }
 0x6d6   : > { %4203 = vst [vmem:[#allocation2 + $0x3c] sm:$0xf] %v7413_v44  ;;  %4282 = vst [vmem:[#allocation2 + $0x38] sm:$0xf] %v7428_v0  ;;  %v9501_v17 = vadd.f32 %v4101_v30, %v9310_v12  ;;  %v8552_v29 = vld [vmem:[#allocation4 + $0x5b8] sm:$0xff]   ;;  %v8557_v36 = vld [vmem:[#allocation4 + $0x570] sm:$0xff]  }
 0x6d7   : > { %v4124_v42 = vrot.slane %v4116_v22, 7  ;;  %v4148_v8 = vrot.slane %v4116_v22, 1  ;;  %v7422_v10 = vpack.c.bf16 %v4116_v22, %v4116_v22  ;;  %v8554_v16 = vld [vmem:[#allocation4 + $0x578] sm:$0xff]   ;;  %7873 = vmatprep.subr.bf16.mxu1 %v8552_v29  ;;  %v8559_v44 = vld [vmem:[#allocation4 + $0x5d0] sm:$0xff]   ;;  %v8558_v0 = vld [vmem:[#allocation4 + $0x5a8] sm:$0xff]  }
 0x6d8   : > { %v4117_v37 = vmax.f32 %v9501_v17, 0.0  ;;  %v8556_v49 = vld [vmem:[#allocation4 + $0x5d8] sm:$0xff]   ;;  %v8560_v30 = vld [vmem:[#allocation4 + $0x568] sm:$0xff]  }
 0x6d9   : > { %v4127_v60 = vsel %vm556_vm2, %v4123_v24, %v4124_v42  ;;  %v4151_v33 = vsel %vm581_vm3, %v4147_v55, %v4148_v8  ;;  %4244 = vst [vmem:[#allocation2 + $0x4c] sm:$0xf] %v7422_v10  ;;  %v8529_v41 = vld [vmem:[#allocation2 + $0x20] ss:$12 sps:$4 sm:$0xff]   ;;  %v8550_v24 = vld [vmem:[#allocation4 + $0x5f0] sm:$0xff]  }
 0x6da   : > { %v4140_v61 = vsel %vm8908_vm10, 0.0, %v4127_v60  ;;  %v4163_v12 = vsel %vm8912_vm11, 0.0, %v4151_v33  ;;  %v4125_v4 = vrot.slane %v4117_v37, 7  ;;  %v4149_v62 = vrot.slane %v4117_v37, 1  ;;  %8200 = vmatmul.mubr.bf16.vlgmr.msra.gmra.mxu0 %v8529_v41  ;;  %v8543_v9 = vld [vmem:[#allocation2 + $0x34] ss:$12 sps:$4 sm:$0xff]  }
 0x6db   : > { %v7414_v14 = vpack.c.bf16 %v4140_v61, %v4140_v61  ;;  %v7429_v15 = vpack.c.bf16 %v4163_v12, %v4163_v12  ;;  %v7423_v54 = vpack.c.bf16 %v4117_v37, %v4117_v37  ;;  %8208 = vmatpush3.bf16.msra.mxu0 %v8549_v47  ;;  %v8551_v55 = vld [vmem:[#allocation4 + $0x5e8] sm:$0xff]   ;;  %v8566_v10 = vld [vmem:[#allocation4 + $0x5c0] sm:$0xff]   ;;  %v8565_v37 = vld [vmem:[#allocation4 + $0x598] sm:$0xff]  }
 0x6dc   : > { %v4126_v59 = vsel %vm556_vm2, %v4124_v42, %v4125_v4  ;;  %v4133_v18 = vsel %vm556_vm2, %v4125_v4, %v4118_v34  ;;  %v4150_v6 = vsel %vm581_vm3, %v4148_v8, %v4149_v62  ;;  %v4157_v19 = vsel %vm581_vm3, %v4149_v62, %v4142_v21  ;;  %v8536_v21 = vld [vmem:[#allocation2 + $0x4] ss:$12 sps:$4 sm:$0xff]   ;;  %8209 = vmatprep.subr.bf16.mxu0 %v8550_v24  ;;  %v8567_v60 = vld [vmem:[#allocation4 + $0x558] sm:$0xff]  }
 0x6dd   : > { %4204 = vst [vmem:[#allocation2 + $0x48] sm:$0xf] %v7414_v14  ;;  %4283 = vst [vmem:[#allocation2 + $0x44] sm:$0xf] %v7429_v15  ;;  %v4134_v1 = vsel %vm8893_vm8, 0.0, %v4133_v18  ;;  %v4165_v63 = vsel %vm8903_vm9, 0.0, %v4157_v19  ;;  %v7415_v13 = vpack.c.bf16 %v4126_v59, %v4126_v59  ;;  %v7430_v2 = vpack.c.bf16 %v4150_v6, %v4150_v6  ;;  %4599 = vmatprep.mubr.bf16.mxu1 %v8536_v21 }
 0x6de   : > { %4245 = vst [vmem:[#allocation2 + $0x58] sm:$0xf] %v7423_v54  ;;  %v7408_v34 = vpack.c.bf16 %v4134_v1, %v4134_v1  ;;  %v7431_v25 = vpack.c.bf16 %v4165_v63, %v4165_v63  ;;  %v8545_v20 = vld [vmem:[#allocation2 + $0x30] ss:$12 sps:$4 sm:$0xff]   ;;  %v8561_v42 = vld [vmem:[#allocation4 + $0x5a0] sm:$0xff]  }
 0x6df   : > { %4205 = vst [vmem:[#allocation2 + $0x54] sm:$0xf] %v7415_v13  ;;  %4284 = vst [vmem:[#allocation2 + $0x50] sm:$0xf] %v7430_v2  ;;  %8210 = vmatpush3.bf16.msra.mxu0 %v8550_v24  ;;  %v8562_v22 = vld [vmem:[#allocation4 + $0x5c8] sm:$0xff]   ;;  %v8564_v8 = vld [vmem:[#allocation4 + $0x560] sm:$0xff]  }
 0x6e0   : > { %4198 = vst [vmem:[#allocation2] sm:$0xf] %v7408_v34  ;;  %4285 = vst [vmem:[#allocation2 + $0x5c] sm:$0xf] %v7431_v25  ;;  %8211 = vmatprep.subr.bf16.mxu0 %v8551_v55  ;;  %v8568_v33 = vld [vmem:[#allocation4 + $0x590] sm:$0xff]   ;;  %v8571_v61 = vld [vmem:[#allocation4 + $0x588] sm:$0xff]  }
 0x6e1   : > { %v8570_v41 = vld [vmem:[#allocation4 + $0x550] sm:$0xff]   ;;  %v8572_v12 = vld [vmem:[#allocation4 + $0x548] sm:$0xff]   ;;  %v8573_v4 = vld [vmem:[#allocation4 + $0x580] sm:$0xff]  }
 0x6e2   : > { %v8575_v62 = vld [vmem:[#allocation4 + $0x540] sm:$0xff]  }
 0x6e3   : > { %8212 = vmatpush3.bf16.msra.mxu0 %v8551_v55  ;;  %v9531_v59 = vld [vmem:[%s9845_s4 + $0x6] ss:$0 sm:$0xff] }
 0x6e4   : > { %v8534_v7 = vld [vmem:[#allocation2 + $0x38] ss:$12 sps:$4 sm:$0xff]   ;;  %8213 = vmatprep.subr.bf16.mxu0 %v8553_v58 }
 0x6e5   : > { %8203 = vmatprep.mubr.bf16.mxu0 %v8534_v7  ;;  %v8546_v45 = vld [vmem:[#allocation2 + $0x4c] ss:$12 sps:$4 sm:$0xff]  }
 0x6e6   : > { %v8548_v40 = vld [vmem:[#allocation2 + $0x48] ss:$12 sps:$4 sm:$0xff]  }
 0x6e7   : > { %v8538_v50 = vld [vmem:[#allocation2 + $0x50] ss:$12 sps:$4 sm:$0xff]   ;;  %v8539_v26 = vld [vmem:[#allocation2] ss:$12 sps:$4 sm:$0xff]   ;;  %8214 = vmatpush3.bf16.msra.mxu0 %v8553_v58 }
 0x6e8   : > { %8204 = vmatmul.mubr.bf16.gmra.mxu0 %v8538_v50  ;;  %4600 = vmatmul.mubr.bf16.vlgmr.msra.gmra.mxu1 %v8539_v26 }
 0x6e9   : > { %4607 = vmatprep.mubr.bf16.mxu1 %v8540_v3  ;;  %7874 = vmatpush3.bf16.msra.mxu1 %v8554_v16 }
 0x6ea   : > { %8215 = vmatprep.subr.bf16.mxu0 %v8556_v49  ;;  %7875 = vmatprep.subr.bf16.mxu1 %v8555_v31 }
 0x6eb   : > { %8216 = vmatpush3.bf16.msra.mxu0 %v8556_v49 }
 0x6ec   : > { %8217 = vmatprep.subr.bf16.mxu0 %v8559_v44 }
 0x6ed   : > { %7876 = vmatpush3.bf16.msra.mxu1 %v8557_v36 }
 0x6ee   : > { %7877 = vmatprep.subr.bf16.mxu1 %v8558_v0 }
 0x6ef   : > { %8218 = vmatpush3.bf16.msra.mxu0 %v8559_v44 }
 0x6f0   : > { %4608 = vmatmul.mubr.bf16.gmra.mxu1 %v8542_v43  ;;  %8219 = vmatprep.subr.bf16.mxu0 %v8562_v22 }
 0x6f1   : > { %4615 = vmatprep.mubr.bf16.mxu1 %v8543_v9  ;;  %7878 = vmatpush3.bf16.msra.mxu1 %v8560_v30 }
 0x6f2   : > { %7879 = vmatprep.subr.bf16.mxu1 %v8561_v42 }
 0x6f3   : > { %8220 = vmatpush3.bf16.msra.mxu0 %v8562_v22 }
 0x6f4   : > { %8221 = vmatprep.subr.bf16.mxu0 %v8566_v10 }
 0x6f5   : > { %7880 = vmatpush3.bf16.msra.mxu1 %v8564_v8 }
 0x6f6   : > { %7881 = vmatprep.subr.bf16.mxu1 %v8565_v37 }
 0x6f7   : > { %8222 = vmatpush3.bf16.msra.mxu0 %v8566_v10 }
 0x6f8   : > { %4616 = vmatmul.mubr.bf16.gmra.mxu1 %v8545_v20 }
 0x6f9   : > { %4623 = vmatprep.mubr.bf16.mxu1 %v8546_v45  ;;  %7882 = vmatpush3.bf16.msra.mxu1 %v8567_v60 }
 0x6fa   : > { %7883 = vmatprep.subr.bf16.mxu1 %v8568_v33 }
 0x6fd   : > { %7884 = vmatpush3.bf16.msra.mxu1 %v8570_v41 }
 0x6fe   : > { %7885 = vmatprep.subr.bf16.mxu1 %v8571_v61 }
 0x700   : > { %4624 = vmatmul.mubr.bf16.gmra.mxu1 %v8548_v40 }
 0x701   : > { %7886 = vmatpush3.bf16.msra.mxu1 %v8572_v12 }
 0x702   : > { %7887 = vmatprep.subr.bf16.mxu1 %v8573_v4 }
 0x705   : > { %7888 = vmatpush3.bf16.msra.mxu1 %v8575_v62 }
 0x79a   : > { %v8201_v14 = vpop.f32.mrf.mxu0 }
 0x79c   : > { %v4666_v54 = vpop.f32.mrf.mxu0 }
 0x79e   : > { %v8202_v63 = vpop.f32.mrf.mxu0 }
 0x7a0   : > { %v4669_v50 = vpop.f32.mrf.mxu0 }
 0x7a8   : > { %v7837_v15 = vpop.f32.mrf.mxu1  ;;  %v9542_v31 = vpop.f32.mrf.mxu0 }
 0x7aa   : > { %v7838_v18 = vpop.f32.mrf.mxu1  ;;  %v4682_v41 = vpop.f32.mrf.mxu0 }
 0x7ab   : > { %v7839_v6 = vadd.f32 %v7838_v18, %v7837_v15 }
 0x7ac   : > { %v7840_v19 = vpop.f32.mrf.mxu1 }
 0x7ad   : > { %v4602_v1 = vadd.f32 %v7839_v6, %v9531_v59 }
 0x7ae   : > { %v7841_v13 = vpop.f32.mrf.mxu1 }
 0x7af   : > { %v4667_v2 = vadd.f32 %v4666_v54, %v4602_v1  ;;  %v7842_v34 = vadd.f32 %v7841_v13, %v7840_v19 }
 0x7b0   : > { %v7843_v25 = vpop.f32.mrf.mxu1 }
 0x7b1   : > { %v9534_v7 = vmax.f32 %v4667_v2, 0.0  ;;  %v4605_v21 = vadd.f32 %v7842_v34, %v9531_v59  ;;  %v8206_v2 = vpop.f32.mrf.mxu0 }
 0x7b2   : > { %v7844_v26 = vpop.f32.mrf.mxu1 }
 0x7b3   : > { %v7440_v3 = vpack.c.bf16 %v9534_v7, %v9534_v7  ;;  %v4670_v43 = vadd.f32 %v4669_v50, %v4605_v21  ;;  %v7845_v9 = vadd.f32 %v7844_v26, %v7843_v25  ;;  %v4705_v40 = vrot.slane %v9534_v7, 7 }
 0x7b4   : > { %v7846_v20 = vpop.f32.mrf.mxu1  ;;  %v4729_v47 = vrot.slane %v9534_v7, 1 }
 0x7b5   : > { %4825 = vst [vmem:[#allocation2 + $0x4] sm:$0xf] %v7440_v3  ;;  %v4698_v45 = vmax.f32 %v4670_v43, 0.0  ;;  %v4610_v24 = vadd.f32 %v7845_v9, %v9531_v59 }
 0x7b6   : > { %v7847_v55 = vpop.f32.mrf.mxu1 }
 0x7b7   : > { %v4706_v58 = vrot.slane %v4698_v45, 7  ;;  %v4730_v29 = vrot.slane %v4698_v45, 1  ;;  %v7441_v16 = vpack.c.bf16 %v4698_v45, %v4698_v45  ;;  %v7848_v49 = vadd.f32 %v7847_v55, %v7846_v20 }
 0x7b8   : > { %v4675_v36 = vadd.f32 %v8201_v14, %v4610_v24  ;;  %v7849_v44 = vpop.f32.mrf.mxu1 }
 0x7b9   : > { %v4719_v0 = vsel %vm556_vm2, %v4705_v40, %v4706_v58  ;;  %v4743_v30 = vsel %vm581_vm3, %v4729_v47, %v4730_v29  ;;  %4826 = vst [vmem:[#allocation2 + $0x10] sm:$0xf] %v7441_v16  ;;  %v4613_v22 = vadd.f32 %v7848_v49, %v9531_v59  ;;  %v4685_v16 = vpop.f32.mrf.mxu0 }
 0x7ba   : > { %v7433_v42 = vpack.c.bf16 %v4719_v0, %v4719_v0  ;;  %v7448_v8 = vpack.c.bf16 %v4743_v30, %v4743_v30  ;;  %v4699_v10 = vmax.f32 %v4675_v36, 0.0  ;;  %v7850_v37 = vpop.f32.mrf.mxu1 }
 0x7bb   : > { %v4678_v60 = vadd.f32 %v8202_v63, %v4613_v22  ;;  %v7851_v33 = vadd.f32 %v7850_v37, %v7849_v44 }
 0x7bc   : > { %4786 = vst [vmem:[#allocation2 + $0xc] sm:$0xf] %v7433_v42  ;;  %4865 = vst [vmem:[#allocation2 + $0x8] sm:$0xf] %v7448_v8  ;;  %v4707_v61 = vrot.slane %v4699_v10, 7  ;;  %v4731_v12 = vrot.slane %v4699_v10, 1  ;;  %v7442_v4 = vpack.c.bf16 %v4699_v10, %v4699_v10  ;;  %v7852_v62 = vpop.f32.mrf.mxu1 }
 0x7bd   : > { %v4700_v14 = vmax.f32 %v4678_v60, 0.0  ;;  %v4618_v15 = vadd.f32 %v7851_v33, %v9531_v59 }
 0x7be   : > { %v4718_v54 = vsel %vm556_vm2, %v4706_v58, %v4707_v61  ;;  %v4742_v18 = vsel %vm581_vm3, %v4730_v29, %v4731_v12  ;;  %4827 = vst [vmem:[#allocation2 + $0x1c] sm:$0xf] %v7442_v4  ;;  %v7853_v6 = vpop.f32.mrf.mxu1 }
 0x7bf   : > { %v4723_v19 = vsel %vm8825_vm4, 0.0, %v4718_v54  ;;  %v4746_v1 = vsel %vm8829_vm5, 0.0, %v4742_v18  ;;  %v4708_v63 = vrot.slane %v4700_v14, 7  ;;  %v4732_v13 = vrot.slane %v4700_v14, 1 }
 0x7c0   : > { %v7434_v34 = vpack.c.bf16 %v4723_v19, %v4723_v19  ;;  %v7449_v25 = vpack.c.bf16 %v4746_v1, %v4746_v1  ;;  %v7443_v21 = vpack.c.bf16 %v4700_v14, %v4700_v14  ;;  %v4683_v50 = vadd.f32 %v4682_v41, %v4618_v15  ;;  %v7855_v26 = vpop.f32.mrf.mxu1 }
 0x7c1   : > { %v4717_v3 = vsel %vm556_vm2, %v4707_v61, %v4708_v63  ;;  %v4741_v43 = vsel %vm581_vm3, %v4731_v12, %v4732_v13  ;;  %v7854_v9 = vadd.f32 %v7853_v6, %v7852_v62 }
 0x7c2   : > { %4787 = vst [vmem:[#allocation2 + $0x18] sm:$0xf] %v7434_v34  ;;  %4866 = vst [vmem:[#allocation2 + $0x14] sm:$0xf] %v7449_v25  ;;  %v7435_v20 = vpack.c.bf16 %v4717_v3, %v4717_v3  ;;  %v7450_v45 = vpack.c.bf16 %v4741_v43, %v4741_v43  ;;  %v4701_v24 = vmax.f32 %v4683_v50, 0.0  ;;  %v7856_v55 = vpop.f32.mrf.mxu1 }
 0x7c3   : > { %4828 = vst [vmem:[#allocation2 + $0x28] sm:$0xf] %v7443_v21  ;;  %v4621_v58 = vadd.f32 %v7854_v9, %v9531_v59  ;;  %v7857_v29 = vadd.f32 %v7856_v55, %v7855_v26 }
 0x7c4   : > { %4788 = vst [vmem:[#allocation2 + $0x24] sm:$0xf] %v7435_v20  ;;  %4867 = vst [vmem:[#allocation2 + $0x20] sm:$0xf] %v7450_v45  ;;  %v4709_v49 = vrot.slane %v4701_v24, 7  ;;  %v4733_v36 = vrot.slane %v4701_v24, 1  ;;  %v7444_v44 = vpack.c.bf16 %v4701_v24, %v4701_v24  ;;  %v7858_v0 = vpop.f32.mrf.mxu1 }
 0x7c5   : > { %v4686_v30 = vadd.f32 %v4685_v16, %v4621_v58  ;;  %v4626_v22 = vadd.f32 %v7857_v29, %v9531_v59 }
 0x7c6   : > { %v4716_v42 = vsel %vm556_vm2, %v4708_v63, %v4709_v49  ;;  %v4740_v8 = vsel %vm581_vm3, %v4732_v13, %v4733_v36  ;;  %4829 = vst [vmem:[#allocation2 + $0x34] sm:$0xf] %v7444_v44  ;;  %v7859_v10 = vpop.f32.mrf.mxu1 }
 0x7c7   : > { %v4725_v37 = vsel %vm8884_vm6, 0.0, %v4716_v42  ;;  %v4748_v60 = vsel %vm8889_vm7, 0.0, %v4740_v8  ;;  %v4702_v33 = vmax.f32 %v4686_v30, 0.0  ;;  %v4691_v41 = vadd.f32 %v9542_v31, %v4626_v22  ;;  %v8576_v42 = vld [vmem:[#allocation2 + $0x4] ss:$12 sps:$4 sm:$0xff]  }
 0x7c8   : > { %v7436_v61 = vpack.c.bf16 %v4725_v37, %v4725_v37  ;;  %v7451_v12 = vpack.c.bf16 %v4748_v60, %v4748_v60  ;;  %v7860_v4 = vadd.f32 %v7859_v10, %v7858_v0  ;;  %5186 = vmatprep.mubr.bf16.mxu1 %v8576_v42 }
 0x7c9   : > { %v4710_v62 = vrot.slane %v4702_v33, 7  ;;  %v4734_v14 = vrot.slane %v4702_v33, 1  ;;  %v7445_v15 = vpack.c.bf16 %v4702_v33, %v4702_v33  ;;  %v4703_v54 = vmax.f32 %v4691_v41, 0.0  ;;  %v8563_v6 = vld [vmem:[#allocation2 + $0x8] ss:$12 sps:$4 sm:$0xff]  }
 0x7ca   : > { %4789 = vst [vmem:[#allocation2 + $0x30] sm:$0xf] %v7436_v61  ;;  %4868 = vst [vmem:[#allocation2 + $0x2c] sm:$0xf] %v7451_v12  ;;  %v4629_v18 = vadd.f32 %v7860_v4, %v9531_v59  ;;  %8223 = vmatprep.mubr.bf16.mxu0 %v8563_v6  ;;  %v8580_v10 = vld [vmem:[#allocation2 + $0x1c] ss:$12 sps:$4 sm:$0xff]  }
 0x7cb   : > { %v4715_v19 = vsel %vm556_vm2, %v4709_v49, %v4710_v62  ;;  %v4739_v1 = vsel %vm581_vm3, %v4733_v36, %v4734_v14  ;;  %4830 = vst [vmem:[#allocation2 + $0x40] sm:$0xf] %v7445_v15  ;;  %v4711_v31 = vrot.slane %v4703_v54, 7  ;;  %v4735_v63 = vrot.slane %v4703_v54, 1  ;;  %v8582_v37 = vld [vmem:[#allocation2 + $0x18] ss:$12 sps:$4 sm:$0xff]  }
 0x7cc   : > { %v7437_v13 = vpack.c.bf16 %v4715_v19, %v4715_v19  ;;  %v7452_v34 = vpack.c.bf16 %v4739_v1, %v4739_v1  ;;  %v7446_v25 = vpack.c.bf16 %v4703_v54, %v4703_v54  ;;  %v4694_v21 = vadd.f32 %v8206_v2, %v4629_v18  ;;  %v8589_v12 = vld [vmem:[#allocation4 + $0x6b8] sm:$0xff]   ;;  %v8590_v4 = vld [vmem:[#allocation4 + $0x6b0] sm:$0xff]  }
 0x7cd   : > { %v4714_v50 = vsel %vm556_vm2, %v4710_v62, %v4711_v31  ;;  %v4738_v59 = vsel %vm581_vm3, %v4734_v14, %v4735_v63  ;;  %8231 = vmatprep.subr.bf16.mxu0 %v8589_v12  ;;  %v8591_v62 = vld [vmem:[#allocation4 + $0x6a8] sm:$0xff]   ;;  %v8593_v14 = vld [vmem:[#allocation4 + $0x6a0] sm:$0xff]   ;;  %v8592_v15 = vld [vmem:[#allocation4 + $0x678] sm:$0xff]  }
 0x7ce   : > { %4790 = vst [vmem:[#allocation2 + $0x3c] sm:$0xf] %v7437_v13  ;;  %4869 = vst [vmem:[#allocation2 + $0x38] sm:$0xf] %v7452_v34  ;;  %v4727_v26 = vsel %vm8908_vm10, 0.0, %v4714_v50  ;;  %v4750_v3 = vsel %vm8912_vm11, 0.0, %v4738_v59  ;;  %7925 = vmatprep.subr.bf16.mxu1 %v8592_v15 }
 0x7cf   : > { %4831 = vst [vmem:[#allocation2 + $0x4c] sm:$0xf] %v7446_v25  ;;  %v4704_v43 = vmax.f32 %v4694_v21, 0.0  ;;  %v7438_v9 = vpack.c.bf16 %v4727_v26, %v4727_v26  ;;  %v7453_v20 = vpack.c.bf16 %v4750_v3, %v4750_v3  ;;  %v8594_v54 = vld [vmem:[#allocation4 + $0x638] sm:$0xff]   ;;  %v8595_v6 = vld [vmem:[#allocation4 + $0x670] sm:$0xff]   ;;  %v8602_v13 = vld [vmem:[#allocation4 + $0x688] sm:$0xff]  }
 0x7d0   : > { %v8596_v18 = vld [vmem:[#allocation4 + $0x698] sm:$0xff]   ;;  %v8597_v19 = vld [vmem:[#allocation4 + $0x630] sm:$0xff]   ;;  %v8601_v34 = vld [vmem:[#allocation4 + $0x660] sm:$0xff]  }
 0x7d1   : > { %v4712_v2 = vrot.slane %v4704_v43, 7  ;;  %v4736_v45 = vrot.slane %v4704_v43, 1  ;;  %v7447_v24 = vpack.c.bf16 %v4704_v43, %v4704_v43  ;;  %4791 = vst [vmem:[#allocation2 + $0x48] sm:$0xf] %v7438_v9  ;;  %4870 = vst [vmem:[#allocation2 + $0x44] sm:$0xf] %v7453_v20 }
 0x7d2   : > { %v8569_v55 = vld [vmem:[#allocation2 + $0x20] ss:$12 sps:$4 sm:$0xff]   ;;  %v8599_v1 = vld [vmem:[#allocation4 + $0x690] sm:$0xff]  }
 0x7d3   : > { %v4713_v58 = vsel %vm556_vm2, %v4711_v31, %v4712_v2  ;;  %v4720_v29 = vsel %vm556_vm2, %v4712_v2, %v4705_v40  ;;  %v4737_v16 = vsel %vm581_vm3, %v4735_v63, %v4736_v45  ;;  %v4744_v49 = vsel %vm581_vm3, %v4736_v45, %v4729_v47  ;;  %4832 = vst [vmem:[#allocation2 + $0x58] sm:$0xf] %v7447_v24  ;;  %v8583_v60 = vld [vmem:[#allocation2 + $0x34] ss:$12 sps:$4 sm:$0xff]   ;;  %v8598_v31 = vld [vmem:[#allocation4 + $0x668] sm:$0xff]  }
 0x7d4   : > { %v4721_v36 = vsel %vm8893_vm8, 0.0, %v4720_v29  ;;  %v4752_v44 = vsel %vm8903_vm9, 0.0, %v4744_v49  ;;  %v7439_v0 = vpack.c.bf16 %v4713_v58, %v4713_v58  ;;  %v7454_v30 = vpack.c.bf16 %v4737_v16, %v4737_v16  ;;  %8224 = vmatmul.mubr.bf16.vlgmr.msra.gmra.mxu0 %v8569_v55  ;;  %v8600_v63 = vld [vmem:[#allocation4 + $0x628] sm:$0xff]   ;;  %v8604_v25 = vld [vmem:[#allocation4 + $0x620] sm:$0xff]   ;;  %v8605_v50 = vld [vmem:[#allocation4 + $0x658] sm:$0xff]  }
 0x7d5   : > { %v7432_v22 = vpack.c.bf16 %v4721_v36, %v4721_v36  ;;  %v7455_v40 = vpack.c.bf16 %v4752_v44, %v4752_v44  ;;  %v8585_v33 = vld [vmem:[#allocation2 + $0x30] ss:$12 sps:$4 sm:$0xff]   ;;  %8232 = vmatpush3.bf16.msra.mxu0 %v8589_v12  ;;  %v8606_v21 = vld [vmem:[#allocation4 + $0x680] sm:$0xff]  }
 0x7d6   : > { %4792 = vst [vmem:[#allocation2 + $0x54] sm:$0xf] %v7439_v0  ;;  %4871 = vst [vmem:[#allocation2 + $0x50] sm:$0xf] %v7454_v30  ;;  %8233 = vmatprep.subr.bf16.mxu0 %v8590_v4  ;;  %v8607_v59 = vld [vmem:[#allocation4 + $0x618] sm:$0xff]   ;;  %v8608_v26 = vld [vmem:[#allocation4 + $0x650] sm:$0xff]  }
 0x7d7   : > { %4785 = vst [vmem:[#allocation2] sm:$0xf] %v7432_v22  ;;  %4872 = vst [vmem:[#allocation2 + $0x5c] sm:$0xf] %v7455_v40  ;;  %v8610_v3 = vld [vmem:[#allocation4 + $0x610] sm:$0xff]   ;;  %v8611_v43 = vld [vmem:[#allocation4 + $0x648] sm:$0xff]  }
 0x7d8   : > { %v8574_v7 = vld [vmem:[#allocation2 + $0x38] ss:$12 sps:$4 sm:$0xff]   ;;  %v8612_v9 = vld [vmem:[#allocation4 + $0x608] sm:$0xff]  }
 0x7d9   : > { %8227 = vmatprep.mubr.bf16.mxu0 %v8574_v7  ;;  %8234 = vmatpush3.bf16.msra.mxu0 %v8590_v4  ;;  %v8613_v20 = vld [vmem:[#allocation4 + $0x640] sm:$0xff]  }
 0x7da   : > { %v8586_v41 = vld [vmem:[#allocation2 + $0x4c] ss:$12 sps:$4 sm:$0xff]   ;;  %8235 = vmatprep.subr.bf16.mxu0 %v8591_v62  ;;  %v8615_v2 = vld [vmem:[#allocation4 + $0x600] sm:$0xff]  }
 0x7db   : > { %v9609_v58 = vld [vmem:[%s9845_s4 + $0x7] ss:$0 sm:$0xff] }
 0x7dd   : > { %v8588_v61 = vld [vmem:[#allocation2 + $0x48] ss:$12 sps:$4 sm:$0xff]   ;;  %8236 = vmatpush3.bf16.msra.mxu0 %v8591_v62 }
 0x7de   : > { %v8578_v47 = vld [vmem:[#allocation2 + $0x50] ss:$12 sps:$4 sm:$0xff]   ;;  %v8579_v8 = vld [vmem:[#allocation2] ss:$12 sps:$4 sm:$0xff]   ;;  %8237 = vmatprep.subr.bf16.mxu0 %v8593_v14 }
 0x7df   : > { %8228 = vmatmul.mubr.bf16.gmra.mxu0 %v8578_v47  ;;  %5187 = vmatmul.mubr.bf16.vlgmr.msra.gmra.mxu1 %v8579_v8 }
 0x7e0   : > { %5194 = vmatprep.mubr.bf16.mxu1 %v8580_v10  ;;  %7926 = vmatpush3.bf16.msra.mxu1 %v8594_v54 }
 0x7e1   : > { %8238 = vmatpush3.bf16.msra.mxu0 %v8593_v14  ;;  %7927 = vmatprep.subr.bf16.mxu1 %v8595_v6 }
 0x7e2   : > { %8239 = vmatprep.subr.bf16.mxu0 %v8596_v18 }
 0x7e4   : > { %7928 = vmatpush3.bf16.msra.mxu1 %v8597_v19 }
 0x7e5   : > { %8240 = vmatpush3.bf16.msra.mxu0 %v8596_v18  ;;  %7929 = vmatprep.subr.bf16.mxu1 %v8598_v31 }
 0x7e6   : > { %8241 = vmatprep.subr.bf16.mxu0 %v8599_v1 }
 0x7e7   : > { %5195 = vmatmul.mubr.bf16.gmra.mxu1 %v8582_v37 }
 0x7e8   : > { %5202 = vmatprep.mubr.bf16.mxu1 %v8583_v60  ;;  %7930 = vmatpush3.bf16.msra.mxu1 %v8600_v63 }
 0x7e9   : > { %8242 = vmatpush3.bf16.msra.mxu0 %v8599_v1  ;;  %7931 = vmatprep.subr.bf16.mxu1 %v8601_v34 }
 0x7ea   : > { %8243 = vmatprep.subr.bf16.mxu0 %v8602_v13 }
 0x7ec   : > { %7932 = vmatpush3.bf16.msra.mxu1 %v8604_v25 }
 0x7ed   : > { %8244 = vmatpush3.bf16.msra.mxu0 %v8602_v13  ;;  %7933 = vmatprep.subr.bf16.mxu1 %v8605_v50 }
 0x7ee   : > { %8245 = vmatprep.subr.bf16.mxu0 %v8606_v21 }
 0x7ef   : > { %5203 = vmatmul.mubr.bf16.gmra.mxu1 %v8585_v33 }
 0x7f0   : > { %5210 = vmatprep.mubr.bf16.mxu1 %v8586_v41  ;;  %7934 = vmatpush3.bf16.msra.mxu1 %v8607_v59 }
 0x7f1   : > { %8246 = vmatpush3.bf16.msra.mxu0 %v8606_v21  ;;  %7935 = vmatprep.subr.bf16.mxu1 %v8608_v26 }
 0x7f4   : > { %7936 = vmatpush3.bf16.msra.mxu1 %v8610_v3 }
 0x7f5   : > { %7937 = vmatprep.subr.bf16.mxu1 %v8611_v43 }
 0x7f7   : > { %5211 = vmatmul.mubr.bf16.gmra.mxu1 %v8588_v61 }
 0x7f8   : > { %7938 = vmatpush3.bf16.msra.mxu1 %v8612_v9 }
 0x7f9   : > { %7939 = vmatprep.subr.bf16.mxu1 %v8613_v20 }
 0x7fc   : > { %7940 = vmatpush3.bf16.msra.mxu1 %v8615_v2 }
 0x894   : > { %v8225_v45 = vpop.f32.mrf.mxu0 }
 0x896   : > { %v5253_v55 = vpop.f32.mrf.mxu0 }
 0x898   : > { %v8226_v44 = vpop.f32.mrf.mxu0 }
 0x89a   : > { %v5256_v47 = vpop.f32.mrf.mxu0 }
 0x89f   : > { %v7889_v24 = vpop.f32.mrf.mxu1  ;;  %v9620_v4 = vpop.f32.mrf.mxu0 }
 0x8a1   : > { %v7890_v29 = vpop.f32.mrf.mxu1  ;;  %v5269_v19 = vpop.f32.mrf.mxu0 }
 0x8a2   : > { %v7891_v16 = vadd.f32 %v7890_v29, %v7889_v24 }
 0x8a3   : > { %v7892_v49 = vpop.f32.mrf.mxu1  ;;  %v9643_v2 = vpop.f32.mrf.mxu0 }
 0x8a4   : > { %v5189_v36 = vadd.f32 %v7891_v16, %v9609_v58 }
 0x8a5   : > { %v7893_v0 = vpop.f32.mrf.mxu1 }
 0x8a6   : > { %v5254_v30 = vadd.f32 %v5253_v55, %v5189_v36  ;;  %v7894_v22 = vadd.f32 %v7893_v0, %v7892_v49 }
 0x8a7   : > { %v7895_v40 = vpop.f32.mrf.mxu1 }
 0x8a8   : > { %v5284_v7 = vmul.f32 0.3, %v5254_v30  ;;  %v5192_v42 = vadd.f32 %v7894_v22, %v9609_v58 }
 0x8a9   : > { %v7896_v8 = vpop.f32.mrf.mxu1 }
 0x8aa   : > { %v9614_v10 = vadd.f32 %v5284_v7, %v9423_v56  ;;  %v5257_v37 = vadd.f32 %v5256_v47, %v5192_v42  ;;  %v7897_v60 = vadd.f32 %v7896_v8, %v7895_v40  ;;  %v5272_v42 = vpop.f32.mrf.mxu0 }
 0x8ab   : > { %v7898_v33 = vpop.f32.mrf.mxu1 }
 0x8ac   : > { %v9617_v41 = vmax.f32 %v9614_v10, 0.0  ;;  %v5285_v61 = vmul.f32 0.3, %v5257_v37  ;;  %v5197_v12 = vadd.f32 %v7897_v60, %v9609_v58 }
 0x8ad   : > { %v7899_v62 = vpop.f32.mrf.mxu1 }
 0x8ae   : > { %v7464_v14 = vpack.c.bf16 %v9617_v41, %v9617_v41  ;;  %v9625_v15 = vadd.f32 %v5285_v61, %v9434_v11  ;;  %v5262_v56 = vadd.f32 %v8225_v45, %v5197_v12  ;;  %v7900_v54 = vadd.f32 %v7899_v62, %v7898_v33 }
 0x8af   : > { %v7901_v18 = vpop.f32.mrf.mxu1  ;;  %v5308_v1 = vrot.slane %v9617_v41, 7  ;;  %v5332_v31 = vrot.slane %v9617_v41, 1 }
 0x8b0   : > { %5428 = vst [vmem:[#allocation2 + $0x4] sm:$0xf] %v7464_v14  ;;  %v5301_v6 = vmax.f32 %v9625_v15, 0.0  ;;  %v5286_v63 = vmul.f32 0.3, %v5262_v56  ;;  %v5200_v13 = vadd.f32 %v7900_v54, %v9609_v58 }
 0x8b1   : > { %v7902_v34 = vpop.f32.mrf.mxu1 }
 0x8b2   : > { %v5309_v25 = vrot.slane %v5301_v6, 7  ;;  %v5333_v21 = vrot.slane %v5301_v6, 1  ;;  %v7465_v50 = vpack.c.bf16 %v5301_v6, %v5301_v6  ;;  %v7903_v11 = vadd.f32 %v7902_v34, %v7901_v18 }
 0x8b3   : > { %v9632_v59 = vadd.f32 %v5286_v63, %v9441_v28  ;;  %v5265_v26 = vadd.f32 %v8226_v44, %v5200_v13  ;;  %v7904_v3 = vpop.f32.mrf.mxu1 }
 0x8b4   : > { %v5322_v43 = vsel %vm556_vm2, %v5308_v1, %v5309_v25  ;;  %v5346_v9 = vsel %vm581_vm3, %v5332_v31, %v5333_v21  ;;  %5429 = vst [vmem:[#allocation2 + $0x10] sm:$0xf] %v7465_v50  ;;  %v5205_v20 = vadd.f32 %v7903_v11, %v9609_v58 }
 0x8b5   : > { %v7457_v45 = vpack.c.bf16 %v5322_v43, %v5322_v43  ;;  %v7472_v28 = vpack.c.bf16 %v5346_v9, %v5346_v9  ;;  %v5302_v24 = vmax.f32 %v9632_v59, 0.0  ;;  %v5287_v55 = vmul.f32 0.3, %v5265_v26  ;;  %v7905_v29 = vpop.f32.mrf.mxu1 }
 0x8b6   : > { %v5270_v16 = vadd.f32 %v5269_v19, %v5205_v20  ;;  %v7906_v49 = vadd.f32 %v7905_v29, %v7904_v3 }
 0x8b7   : > { %5389 = vst [vmem:[#allocation2 + $0xc] sm:$0xf] %v7457_v45  ;;  %5468 = vst [vmem:[#allocation2 + $0x8] sm:$0xf] %v7472_v28  ;;  %v5310_v36 = vrot.slane %v5302_v24, 7  ;;  %v5334_v44 = vrot.slane %v5302_v24, 1  ;;  %v7466_v0 = vpack.c.bf16 %v5302_v24, %v5302_v24  ;;  %v9647_v30 = vadd.f32 %v5287_v55, %v9456_v57  ;;  %v7907_v22 = vpop.f32.mrf.mxu1 }
 0x8b8   : > { %v5288_v40 = vmul.f32 0.3, %v5270_v16  ;;  %v5208_v7 = vadd.f32 %v7906_v49, %v9609_v58 }
 0x8b9   : > { %v5321_v47 = vsel %vm556_vm2, %v5309_v25, %v5310_v36  ;;  %v5345_v8 = vsel %vm581_vm3, %v5333_v21, %v5334_v44  ;;  %5430 = vst [vmem:[#allocation2 + $0x1c] sm:$0xf] %v7466_v0  ;;  %v5303_v37 = vmax.f32 %v9647_v30, 0.0  ;;  %v7908_v60 = vpop.f32.mrf.mxu1 }
 0x8ba   : > { %v5326_v33 = vsel %vm8825_vm4, 0.0, %v5321_v47  ;;  %v5349_v57 = vsel %vm8829_vm5, 0.0, %v5345_v8  ;;  %v9660_v61 = vadd.f32 %v5288_v40, %v9469_v5  ;;  %v5273_v12 = vadd.f32 %v5272_v42, %v5208_v7 }
 0x8bb   : > { %v7458_v62 = vpack.c.bf16 %v5326_v33, %v5326_v33  ;;  %v7473_v14 = vpack.c.bf16 %v5349_v57, %v5349_v57  ;;  %v5311_v56 = vrot.slane %v5303_v37, 7  ;;  %v5335_v54 = vrot.slane %v5303_v37, 1  ;;  %v7910_v18 = vpop.f32.mrf.mxu1 }
 0x8bc   : > { %v7467_v6 = vpack.c.bf16 %v5303_v37, %v5303_v37  ;;  %v5304_v19 = vmax.f32 %v9660_v61, 0.0  ;;  %v5289_v63 = vmul.f32 0.3, %v5273_v12  ;;  %v7909_v13 = vadd.f32 %v7908_v60, %v7907_v22 }
 0x8bd   : > { %5390 = vst [vmem:[#allocation2 + $0x18] sm:$0xf] %v7458_v62  ;;  %5469 = vst [vmem:[#allocation2 + $0x14] sm:$0xf] %v7473_v14  ;;  %v5320_v34 = vsel %vm556_vm2, %v5310_v36, %v5311_v56  ;;  %v5344_v5 = vsel %vm581_vm3, %v5334_v44, %v5335_v54  ;;  %v7911_v25 = vpop.f32.mrf.mxu1 }
 0x8be   : > { %v7459_v21 = vpack.c.bf16 %v5320_v34, %v5320_v34  ;;  %v7474_v50 = vpack.c.bf16 %v5344_v5, %v5344_v5  ;;  %5431 = vst [vmem:[#allocation2 + $0x28] sm:$0xf] %v7467_v6  ;;  %v5312_v11 = vrot.slane %v5304_v19, 7  ;;  %v5336_v26 = vrot.slane %v5304_v19, 1 }
 0x8bf   : > { %v7468_v3 = vpack.c.bf16 %v5304_v19, %v5304_v19  ;;  %v9668_v43 = vadd.f32 %v5289_v63, %v9477_v23  ;;  %v5213_v9 = vadd.f32 %v7909_v13, %v9609_v58  ;;  %v7912_v20 = vadd.f32 %v7911_v25, %v7910_v18 }
 0x8c0   : > { %5391 = vst [vmem:[#allocation2 + $0x24] sm:$0xf] %v7459_v21  ;;  %5470 = vst [vmem:[#allocation2 + $0x20] sm:$0xf] %v7474_v50  ;;  %v5319_v45 = vsel %vm556_vm2, %v5311_v56, %v5312_v11  ;;  %v5343_v28 = vsel %vm581_vm3, %v5335_v54, %v5336_v26 }
 0x8c1   : > { %v5328_v24 = vsel %vm8884_vm6, 0.0, %v5319_v45  ;;  %v5351_v55 = vsel %vm8889_vm7, 0.0, %v5343_v28  ;;  %5432 = vst [vmem:[#allocation2 + $0x34] sm:$0xf] %v7468_v3  ;;  %v5305_v23 = vmax.f32 %v9668_v43, 0.0  ;;  %v5278_v29 = vadd.f32 %v9620_v4, %v5213_v9 }
 0x8c2   : > { %v7460_v16 = vpack.c.bf16 %v5328_v24, %v5328_v24  ;;  %v7475_v49 = vpack.c.bf16 %v5351_v55, %v5351_v55  ;;  %v5216_v36 = vadd.f32 %v7912_v20, %v9609_v58  ;;  %v8618_v45 = vld [vmem:[#allocation2 + $0x4] ss:$12 sps:$4 sm:$0xff]  }
 0x8c3   : > { %v5313_v44 = vrot.slane %v5305_v23, 7  ;;  %v5337_v0 = vrot.slane %v5305_v23, 1  ;;  %v7469_v22 = vpack.c.bf16 %v5305_v23, %v5305_v23  ;;  %v5290_v40 = vmul.f32 0.3, %v5278_v29  ;;  %5789 = vmatprep.mubr.bf16.mxu1 %v8618_v45 }
 0x8c4   : > { %5392 = vst [vmem:[#allocation2 + $0x30] sm:$0xf] %v7460_v16  ;;  %5471 = vst [vmem:[#allocation2 + $0x2c] sm:$0xf] %v7475_v49  ;;  %v5281_v7 = vadd.f32 %v9643_v2, %v5216_v36  ;;  %v8603_v42 = vld [vmem:[#allocation2 + $0x8] ss:$12 sps:$4 sm:$0xff]  }
 0x8c5   : > { %v5318_v47 = vsel %vm556_vm2, %v5312_v11, %v5313_v44  ;;  %v5342_v8 = vsel %vm581_vm3, %v5336_v26, %v5337_v0  ;;  %5433 = vst [vmem:[#allocation2 + $0x40] sm:$0xf] %v7469_v22  ;;  %v9688_v4 = vadd.f32 %v5290_v40, %v9497_v27  ;;  %8247 = vmatprep.mubr.bf16.mxu0 %v8603_v42  ;;  %v8620_v24 = vld [vmem:[#allocation2 + $0x1c] ss:$12 sps:$4 sm:$0xff]  }
 0x8c6   : > { %v7461_v58 = vpack.c.bf16 %v5318_v47, %v5318_v47  ;;  %v7476_v37 = vpack.c.bf16 %v5342_v8, %v5342_v8  ;;  %v5291_v60 = vmul.f32 0.3, %v5281_v7  ;;  %v8629_v36 = vld [vmem:[#allocation4 + $0x778] sm:$0xff]   ;;  %v8633_v22 = vld [vmem:[#allocation4 + $0x760] sm:$0xff]   ;;  %v8635_v47 = vld [vmem:[#allocation4 + $0x730] sm:$0xff]  }
 0x8c7   : > { %v5306_v33 = vmax.f32 %v9688_v4, 0.0  ;;  %v8622_v55 = vld [vmem:[#allocation2 + $0x18] ss:$12 sps:$4 sm:$0xff]   ;;  %8255 = vmatprep.subr.bf16.mxu0 %v8629_v36 }
 0x8c8   : > { %5393 = vst [vmem:[#allocation2 + $0x3c] sm:$0xf] %v7461_v58  ;;  %5472 = vst [vmem:[#allocation2 + $0x38] sm:$0xf] %v7476_v37  ;;  %v9692_v2 = vadd.f32 %v5291_v60, %v9501_v17  ;;  %v8632_v40 = vld [vmem:[#allocation4 + $0x738] sm:$0xff]   ;;  %v8637_v8 = vld [vmem:[#allocation4 + $0x6f0] sm:$0xff]  }
 0x8c9   : > { %v5314_v57 = vrot.slane %v5306_v33, 7  ;;  %v5338_v12 = vrot.slane %v5306_v33, 1  ;;  %v7470_v62 = vpack.c.bf16 %v5306_v33, %v5306_v33  ;;  %v8634_v7 = vld [vmem:[#allocation4 + $0x6f8] sm:$0xff]   ;;  %7977 = vmatprep.subr.bf16.mxu1 %v8632_v40  ;;  %v8639_v58 = vld [vmem:[#allocation4 + $0x750] sm:$0xff]   ;;  %v8638_v37 = vld [vmem:[#allocation4 + $0x728] sm:$0xff]  }
 0x8ca   : > { %v5307_v14 = vmax.f32 %v9692_v2, 0.0  ;;  %v8636_v42 = vld [vmem:[#allocation4 + $0x758] sm:$0xff]   ;;  %v8640_v60 = vld [vmem:[#allocation4 + $0x6e8] sm:$0xff]  }
 0x8cb   : > { %v5317_v27 = vsel %vm556_vm2, %v5313_v44, %v5314_v57  ;;  %v5341_v56 = vsel %vm581_vm3, %v5337_v0, %v5338_v12  ;;  %5434 = vst [vmem:[#allocation2 + $0x4c] sm:$0xf] %v7470_v62  ;;  %v8609_v54 = vld [vmem:[#allocation2 + $0x20] ss:$12 sps:$4 sm:$0xff]   ;;  %v8630_v44 = vld [vmem:[#allocation4 + $0x770] sm:$0xff]  }
 0x8cc   : > { %v5330_v18 = vsel %vm8908_vm10, 0.0, %v5317_v27  ;;  %v5353_v17 = vsel %vm8912_vm11, 0.0, %v5341_v56  ;;  %v5315_v6 = vrot.slane %v5307_v14, 7  ;;  %v5339_v19 = vrot.slane %v5307_v14, 1  ;;  %8248 = vmatmul.mubr.bf16.vlgmr.msra.gmra.mxu0 %v8609_v54  ;;  %v8623_v23 = vld [vmem:[#allocation2 + $0x34] ss:$12 sps:$4 sm:$0xff]  }
 0x8cd   : > { %v7462_v63 = vpack.c.bf16 %v5330_v18, %v5330_v18  ;;  %v7477_v13 = vpack.c.bf16 %v5353_v17, %v5353_v17  ;;  %v7471_v34 = vpack.c.bf16 %v5307_v14, %v5307_v14  ;;  %8256 = vmatpush3.bf16.msra.mxu0 %v8629_v36  ;;  %v8631_v0 = vld [vmem:[#allocation4 + $0x768] sm:$0xff]   ;;  %v8646_v62 = vld [vmem:[#allocation4 + $0x740] sm:$0xff]   ;;  %v8645_v14 = vld [vmem:[#allocation4 + $0x718] sm:$0xff]  }
 0x8ce   : > { %v5316_v5 = vsel %vm556_vm2, %v5314_v57, %v5315_v6  ;;  %v5323_v25 = vsel %vm556_vm2, %v5315_v6, %v5308_v1  ;;  %v5340_v21 = vsel %vm581_vm3, %v5338_v12, %v5339_v19  ;;  %v5347_v50 = vsel %vm581_vm3, %v5339_v19, %v5332_v31  ;;  %8257 = vmatprep.subr.bf16.mxu0 %v8630_v44  ;;  %v8642_v33 = vld [vmem:[#allocation4 + $0x748] sm:$0xff]   ;;  %v8641_v57 = vld [vmem:[#allocation4 + $0x720] sm:$0xff]   ;;  %v8647_v27 = vld [vmem:[#allocation4 + $0x6d8] sm:$0xff]  }
 0x8cf   : > { %5394 = vst [vmem:[#allocation2 + $0x48] sm:$0xf] %v7462_v63  ;;  %5473 = vst [vmem:[#allocation2 + $0x44] sm:$0xf] %v7477_v13  ;;  %v5324_v11 = vsel %vm8893_vm8, 0.0, %v5323_v25  ;;  %v5355_v26 = vsel %vm8903_vm9, 0.0, %v5347_v50  ;;  %v7463_v3 = vpack.c.bf16 %v5316_v5, %v5316_v5  ;;  %v7478_v9 = vpack.c.bf16 %v5340_v21, %v5340_v21 }
 0x8d0   : > { %5435 = vst [vmem:[#allocation2 + $0x58] sm:$0xf] %v7471_v34  ;;  %v7456_v1 = vpack.c.bf16 %v5324_v11, %v5324_v11  ;;  %v7479_v20 = vpack.c.bf16 %v5355_v26, %v5355_v26  ;;  %v8625_v29 = vld [vmem:[#allocation2 + $0x30] ss:$12 sps:$4 sm:$0xff]   ;;  %v8644_v12 = vld [vmem:[#allocation4 + $0x6e0] sm:$0xff]  }
 0x8d1   : > { %5395 = vst [vmem:[#allocation2 + $0x54] sm:$0xf] %v7463_v3  ;;  %5474 = vst [vmem:[#allocation2 + $0x50] sm:$0xf] %v7478_v9  ;;  %8258 = vmatpush3.bf16.msra.mxu0 %v8630_v44  ;;  %v8648_v56 = vld [vmem:[#allocation4 + $0x710] sm:$0xff]   ;;  %v8651_v18 = vld [vmem:[#allocation4 + $0x708] sm:$0xff]  }
 0x8d2   : > { %5388 = vst [vmem:[#allocation2] sm:$0xf] %v7456_v1  ;;  %5475 = vst [vmem:[#allocation2 + $0x5c] sm:$0xf] %v7479_v20  ;;  %8259 = vmatprep.subr.bf16.mxu0 %v8631_v0  ;;  %v8650_v54 = vld [vmem:[#allocation4 + $0x6d0] sm:$0xff]   ;;  %v8652_v17 = vld [vmem:[#allocation4 + $0x6c8] sm:$0xff]  }
 0x8d3   : > { %v8653_v6 = vld [vmem:[#allocation4 + $0x700] sm:$0xff]  }
 0x8d4   : > { %v8655_v19 = vld [vmem:[#allocation4 + $0x6c0] sm:$0xff]  }
 0x8d5   : > { %8260 = vmatpush3.bf16.msra.mxu0 %v8631_v0  ;;  %v9722_v5 = vld [vmem:[%s9845_s4 + $0x8] ss:$0 sm:$0xff] }
 0x8d6   : > { %v8614_v41 = vld [vmem:[#allocation2 + $0x38] ss:$12 sps:$4 sm:$0xff]   ;;  %8261 = vmatprep.subr.bf16.mxu0 %v8633_v22 }
 0x8d7   : > { %8251 = vmatprep.mubr.bf16.mxu0 %v8614_v41  ;;  %v8626_v16 = vld [vmem:[#allocation2 + $0x4c] ss:$12 sps:$4 sm:$0xff]  }
 0x8d8   : > { %v8628_v49 = vld [vmem:[#allocation2 + $0x48] ss:$12 sps:$4 sm:$0xff]  }
 0x8d9   : > { %v8616_v31 = vld [vmem:[#allocation2] ss:$12 sps:$4 sm:$0xff]   ;;  %v8619_v28 = vld [vmem:[#allocation2 + $0x50] ss:$12 sps:$4 sm:$0xff]   ;;  %8262 = vmatpush3.bf16.msra.mxu0 %v8633_v22 }
 0x8da   : > { %8252 = vmatmul.mubr.bf16.gmra.mxu0 %v8619_v28  ;;  %5790 = vmatmul.mubr.bf16.vlgmr.msra.gmra.mxu1 %v8616_v31 }
 0x8db   : > { %5797 = vmatprep.mubr.bf16.mxu1 %v8620_v24  ;;  %7978 = vmatpush3.bf16.msra.mxu1 %v8634_v7 }
 0x8dc   : > { %8263 = vmatprep.subr.bf16.mxu0 %v8636_v42  ;;  %7979 = vmatprep.subr.bf16.mxu1 %v8635_v47 }
 0x8dd   : > { %8264 = vmatpush3.bf16.msra.mxu0 %v8636_v42 }
 0x8de   : > { %8265 = vmatprep.subr.bf16.mxu0 %v8639_v58 }
 0x8df   : > { %7980 = vmatpush3.bf16.msra.mxu1 %v8637_v8 }
 0x8e0   : > { %7981 = vmatprep.subr.bf16.mxu1 %v8638_v37 }
 0x8e1   : > { %8266 = vmatpush3.bf16.msra.mxu0 %v8639_v58 }
 0x8e2   : > { %5798 = vmatmul.mubr.bf16.gmra.mxu1 %v8622_v55  ;;  %8267 = vmatprep.subr.bf16.mxu0 %v8642_v33 }
 0x8e3   : > { %5805 = vmatprep.mubr.bf16.mxu1 %v8623_v23  ;;  %7982 = vmatpush3.bf16.msra.mxu1 %v8640_v60 }
 0x8e4   : > { %7983 = vmatprep.subr.bf16.mxu1 %v8641_v57 }
 0x8e5   : > { %8268 = vmatpush3.bf16.msra.mxu0 %v8642_v33 }
 0x8e6   : > { %8269 = vmatprep.subr.bf16.mxu0 %v8646_v62 }
 0x8e7   : > { %7984 = vmatpush3.bf16.msra.mxu1 %v8644_v12 }
 0x8e8   : > { %7985 = vmatprep.subr.bf16.mxu1 %v8645_v14 }
 0x8e9   : > { %8270 = vmatpush3.bf16.msra.mxu0 %v8646_v62 }
 0x8ea   : > { %5806 = vmatmul.mubr.bf16.gmra.mxu1 %v8625_v29 }
 0x8eb   : > { %5813 = vmatprep.mubr.bf16.mxu1 %v8626_v16  ;;  %7986 = vmatpush3.bf16.msra.mxu1 %v8647_v27 }
 0x8ec   : > { %7987 = vmatprep.subr.bf16.mxu1 %v8648_v56 }
 0x8ef   : > { %7988 = vmatpush3.bf16.msra.mxu1 %v8650_v54 }
 0x8f0   : > { %7989 = vmatprep.subr.bf16.mxu1 %v8651_v18 }
 0x8f2   : > { %5814 = vmatmul.mubr.bf16.gmra.mxu1 %v8628_v49 }
 0x8f3   : > { %7990 = vmatpush3.bf16.msra.mxu1 %v8652_v17 }
 0x8f4   : > { %7991 = vmatprep.subr.bf16.mxu1 %v8653_v6 }
 0x8f7   : > { %7992 = vmatpush3.bf16.msra.mxu1 %v8655_v19 }
 0x98c   : > { %v8249_v63 = vpop.f32.mrf.mxu0 }
 0x98e   : > { %v5856_v34 = vpop.f32.mrf.mxu0 }
 0x990   : > { %v8250_v26 = vpop.f32.mrf.mxu0 }
 0x992   : > { %v5859_v45 = vpop.f32.mrf.mxu0 }
 0x99a   : > { %v7941_v13 = vpop.f32.mrf.mxu1  ;;  %v9733_v47 = vpop.f32.mrf.mxu0 }
 0x99c   : > { %v7942_v25 = vpop.f32.mrf.mxu1  ;;  %v5872_v54 = vpop.f32.mrf.mxu0 }
 0x99d   : > { %v7943_v21 = vadd.f32 %v7942_v25, %v7941_v13 }
 0x99e   : > { %v7944_v50 = vpop.f32.mrf.mxu1 }
 0x99f   : > { %v5792_v11 = vadd.f32 %v7943_v21, %v9722_v5 }
 0x9a0   : > { %v7945_v3 = vpop.f32.mrf.mxu1 }
 0x9a1   : > { %v5857_v9 = vadd.f32 %v5856_v34, %v5792_v11  ;;  %v7946_v1 = vadd.f32 %v7945_v3, %v7944_v50 }
 0x9a2   : > { %v7947_v20 = vpop.f32.mrf.mxu1 }
 0x9a3   : > { %v9725_v41 = vmax.f32 %v5857_v9, 0.0  ;;  %v5795_v31 = vadd.f32 %v7946_v1, %v9722_v5  ;;  %v8254_v9 = vpop.f32.mrf.mxu0 }
 0x9a4   : > { %v7948_v28 = vpop.f32.mrf.mxu1 }
 0x9a5   : > { %v7488_v24 = vpack.c.bf16 %v9725_v41, %v9725_v41  ;;  %v5860_v55 = vadd.f32 %v5859_v45, %v5795_v31  ;;  %v7949_v23 = vadd.f32 %v7948_v28, %v7947_v20  ;;  %v5895_v49 = vrot.slane %v9725_v41, 7 }
 0x9a6   : > { %v7950_v29 = vpop.f32.mrf.mxu1  ;;  %v5919_v36 = vrot.slane %v9725_v41, 1 }
 0x9a7   : > { %6015 = vst [vmem:[#allocation2 + $0x4] sm:$0xf] %v7488_v24  ;;  %v5888_v16 = vmax.f32 %v5860_v55, 0.0  ;;  %v5800_v44 = vadd.f32 %v7949_v23, %v9722_v5 }
 0x9a8   : > { %v7951_v0 = vpop.f32.mrf.mxu1 }
 0x9a9   : > { %v5896_v22 = vrot.slane %v5888_v16, 7  ;;  %v5920_v40 = vrot.slane %v5888_v16, 1  ;;  %v7489_v7 = vpack.c.bf16 %v5888_v16, %v5888_v16  ;;  %v7952_v42 = vadd.f32 %v7951_v0, %v7950_v29 }
 0x9aa   : > { %v5865_v8 = vadd.f32 %v8249_v63, %v5800_v44  ;;  %v7953_v58 = vpop.f32.mrf.mxu1 }
 0x9ab   : > { %v5909_v37 = vsel %vm556_vm2, %v5895_v49, %v5896_v22  ;;  %v5933_v60 = vsel %vm581_vm3, %v5919_v36, %v5920_v40  ;;  %6016 = vst [vmem:[#allocation2 + $0x10] sm:$0xf] %v7489_v7  ;;  %v5803_v33 = vadd.f32 %v7952_v42, %v9722_v5 }
 0x9ac   : > { %v7481_v57 = vpack.c.bf16 %v5909_v37, %v5909_v37  ;;  %v7496_v12 = vpack.c.bf16 %v5933_v60, %v5933_v60  ;;  %v5889_v62 = vmax.f32 %v5865_v8, 0.0  ;;  %v7954_v14 = vpop.f32.mrf.mxu1 }
 0x9ad   : > { %v5868_v27 = vadd.f32 %v8250_v26, %v5803_v33  ;;  %v7955_v56 = vadd.f32 %v7954_v14, %v7953_v58 }
 0x9ae   : > { %5976 = vst [vmem:[#allocation2 + $0xc] sm:$0xf] %v7481_v57  ;;  %6055 = vst [vmem:[#allocation2 + $0x8] sm:$0xf] %v7496_v12  ;;  %v5897_v18 = vrot.slane %v5889_v62, 7  ;;  %v5921_v17 = vrot.slane %v5889_v62, 1  ;;  %v7490_v6 = vpack.c.bf16 %v5889_v62, %v5889_v62  ;;  %v7956_v19 = vpop.f32.mrf.mxu1 }
 0x9af   : > { %v5890_v63 = vmax.f32 %v5868_v27, 0.0  ;;  %v5808_v13 = vadd.f32 %v7955_v56, %v9722_v5 }
 0x9b0   : > { %v5908_v34 = vsel %vm556_vm2, %v5896_v22, %v5897_v18  ;;  %v5932_v25 = vsel %vm581_vm3, %v5920_v40, %v5921_v17  ;;  %6017 = vst [vmem:[#allocation2 + $0x1c] sm:$0xf] %v7490_v6  ;;  %v7957_v21 = vpop.f32.mrf.mxu1  ;;  %v5875_v22 = vpop.f32.mrf.mxu0 }
 0x9b1   : > { %v5913_v50 = vsel %vm8825_vm4, 0.0, %v5908_v34  ;;  %v5936_v11 = vsel %vm8829_vm5, 0.0, %v5932_v25  ;;  %v5898_v26 = vrot.slane %v5890_v63, 7  ;;  %v5922_v3 = vrot.slane %v5890_v63, 1 }
 0x9b2   : > { %v7482_v1 = vpack.c.bf16 %v5913_v50, %v5913_v50  ;;  %v7497_v20 = vpack.c.bf16 %v5936_v11, %v5936_v11  ;;  %v7491_v31 = vpack.c.bf16 %v5890_v63, %v5890_v63  ;;  %v5873_v45 = vadd.f32 %v5872_v54, %v5808_v13  ;;  %v7959_v28 = vpop.f32.mrf.mxu1 }
 0x9b3   : > { %v5907_v24 = vsel %vm556_vm2, %v5897_v18, %v5898_v26  ;;  %v5931_v55 = vsel %vm581_vm3, %v5921_v17, %v5922_v3  ;;  %v7958_v23 = vadd.f32 %v7957_v21, %v7956_v19 }
 0x9b4   : > { %5977 = vst [vmem:[#allocation2 + $0x18] sm:$0xf] %v7482_v1  ;;  %6056 = vst [vmem:[#allocation2 + $0x14] sm:$0xf] %v7497_v20  ;;  %v7483_v51 = vpack.c.bf16 %v5907_v24, %v5907_v24  ;;  %v7498_v52 = vpack.c.bf16 %v5931_v55, %v5931_v55  ;;  %v5891_v29 = vmax.f32 %v5873_v45, 0.0  ;;  %v7960_v16 = vpop.f32.mrf.mxu1 }
 0x9b5   : > { %6018 = vst [vmem:[#allocation2 + $0x28] sm:$0xf] %v7491_v31  ;;  %v5811_v44 = vadd.f32 %v7958_v23, %v9722_v5  ;;  %v7961_v0 = vadd.f32 %v7960_v16, %v7959_v28 }
 0x9b6   : > { %5978 = vst [vmem:[#allocation2 + $0x24] sm:$0xf] %v7483_v51  ;;  %6057 = vst [vmem:[#allocation2 + $0x20] sm:$0xf] %v7498_v52  ;;  %v5899_v40 = vrot.slane %v5891_v29, 7  ;;  %v5923_v7 = vrot.slane %v5891_v29, 1  ;;  %v7492_v42 = vpack.c.bf16 %v5891_v29, %v5891_v29  ;;  %v7962_v8 = vpop.f32.mrf.mxu1 }
 0x9b7   : > { %v5876_v58 = vadd.f32 %v5875_v22, %v5811_v44  ;;  %v5816_v37 = vadd.f32 %v7961_v0, %v9722_v5 }
 0x9b8   : > { %v5906_v60 = vsel %vm556_vm2, %v5898_v26, %v5899_v40  ;;  %v5930_v33 = vsel %vm581_vm3, %v5922_v3, %v5923_v7  ;;  %6019 = vst [vmem:[#allocation2 + $0x34] sm:$0xf] %v7492_v42  ;;  %v7963_v57 = vpop.f32.mrf.mxu1 }
 0x9b9   : > { %v5915_v12 = vsel %vm8884_vm6, 0.0, %v5906_v60  ;;  %v5938_v62 = vsel %vm8889_vm7, 0.0, %v5930_v33  ;;  %v5892_v14 = vmax.f32 %v5876_v58, 0.0  ;;  %v5881_v27 = vadd.f32 %v9733_v47, %v5816_v37 }
 0x9ba   : > { %v7484_v56 = vpack.c.bf16 %v5915_v12, %v5915_v12  ;;  %v7499_v54 = vpack.c.bf16 %v5938_v62, %v5938_v62  ;;  %v7964_v18 = vadd.f32 %v7963_v57, %v7962_v8  ;;  %v9800_v57 = vld [vmem:[%s9845_s4 + $0x9] ss:$0 sm:$0xff] }
 0x9bb   : > { %v5900_v17 = vrot.slane %v5892_v14, 7  ;;  %v5924_v6 = vrot.slane %v5892_v14, 1  ;;  %v7493_v19 = vpack.c.bf16 %v5892_v14, %v5892_v14  ;;  %v5893_v63 = vmax.f32 %v5881_v27, 0.0  ;;  %v8643_v34 = vld [vmem:[#allocation2 + $0x8] ss:$12 sps:$4 sm:$0xff]  }
 0x9bc   : > { %5979 = vst [vmem:[#allocation2 + $0x30] sm:$0xf] %v7484_v56  ;;  %6058 = vst [vmem:[#allocation2 + $0x2c] sm:$0xf] %v7499_v54  ;;  %v5819_v13 = vadd.f32 %v7964_v18, %v9722_v5  ;;  %8271 = vmatprep.mubr.bf16.mxu0 %v8643_v34  ;;  %v8662_v39 = vld [vmem:[#allocation2 + $0x1c] ss:$12 sps:$4 sm:$0xff]  }
 0x9bd   : > { %v5905_v35 = vsel %vm556_vm2, %v5899_v40, %v5900_v17  ;;  %v5929_v38 = vsel %vm581_vm3, %v5923_v7, %v5924_v6  ;;  %6020 = vst [vmem:[#allocation2 + $0x40] sm:$0xf] %v7493_v19  ;;  %v5901_v47 = vrot.slane %v5893_v63, 7  ;;  %v5925_v25 = vrot.slane %v5893_v63, 1  ;;  %v8660_v46 = vld [vmem:[#allocation2 + $0x18] ss:$12 sps:$4 sm:$0xff]  }
 0x9be   : > { %v7485_v21 = vpack.c.bf16 %v5905_v35, %v5905_v35  ;;  %v7500_v50 = vpack.c.bf16 %v5929_v38, %v5929_v38  ;;  %v7494_v11 = vpack.c.bf16 %v5893_v63, %v5893_v63  ;;  %v5884_v26 = vadd.f32 %v8254_v9, %v5819_v13  ;;  %v6490_v35 = vld [vmem:[%s9846_s5] sm:$0xff] }
 0x9bf   : > { %v5904_v3 = vsel %vm556_vm2, %v5900_v17, %v5901_v47  ;;  %v5928_v5 = vsel %vm581_vm3, %v5924_v6, %v5925_v25 }
 0x9c0   : > { %5980 = vst [vmem:[#allocation2 + $0x3c] sm:$0xf] %v7485_v21  ;;  %6059 = vst [vmem:[#allocation2 + $0x38] sm:$0xf] %v7500_v50  ;;  %v5917_v1 = vsel %vm8908_vm10, 0.0, %v5904_v3  ;;  %v5940_v20 = vsel %vm8912_vm11, 0.0, %v5928_v5 }
 0x9c1   : > { %6021 = vst [vmem:[#allocation2 + $0x4c] sm:$0xf] %v7494_v11  ;;  %v5894_v31 = vmax.f32 %v5884_v26, 0.0  ;;  %v7486_v45 = vpack.c.bf16 %v5917_v1, %v5917_v1  ;;  %v7501_v28 = vpack.c.bf16 %v5940_v20, %v5940_v20  ;;  %v6491_v1 = vld [vmem:[%s9846_s5 + $0x8] sm:$0xff] }
 0x9c3   : > { %v5902_v9 = vrot.slane %v5894_v31, 7  ;;  %v5926_v24 = vrot.slane %v5894_v31, 1  ;;  %v7495_v55 = vpack.c.bf16 %v5894_v31, %v5894_v31  ;;  %5981 = vst [vmem:[#allocation2 + $0x48] sm:$0xf] %v7486_v45  ;;  %6060 = vst [vmem:[#allocation2 + $0x44] sm:$0xf] %v7501_v28 }
 0x9c4   : > { %v8649_v23 = vld [vmem:[#allocation2 + $0x20] ss:$12 sps:$4 sm:$0xff]  }
 0x9c5   : > { %v5903_v51 = vsel %vm556_vm2, %v5901_v47, %v5902_v9  ;;  %v5910_v48 = vsel %vm556_vm2, %v5902_v9, %v5895_v49  ;;  %v5927_v53 = vsel %vm581_vm3, %v5925_v25, %v5926_v24  ;;  %v5934_v52 = vsel %vm581_vm3, %v5926_v24, %v5919_v36  ;;  %6022 = vst [vmem:[#allocation2 + $0x58] sm:$0xf] %v7495_v55  ;;  %v8658_v36 = vld [vmem:[#allocation2 + $0x4] ss:$12 sps:$4 sm:$0xff]   ;;  %v8665_v7 = vld [vmem:[#allocation2 + $0x34] ss:$12 sps:$4 sm:$0xff]  }
 0x9c6   : > { %v5911_v29 = vsel %vm8893_vm8, 0.0, %v5910_v48  ;;  %v5942_v16 = vsel %vm8903_vm9, 0.0, %v5934_v52  ;;  %v7487_v44 = vpack.c.bf16 %v5903_v51, %v5903_v51  ;;  %v7502_v0 = vpack.c.bf16 %v5927_v53, %v5927_v53  ;;  %8272 = vmatmul.mubr.bf16.vlgmr.msra.gmra.mxu0 %v8649_v23  ;;  %6376 = vmatprep.mubr.bf16.mxu1 %v8658_v36 }
 0x9c7   : > { %v7480_v22 = vpack.c.bf16 %v5911_v29, %v5911_v29  ;;  %v7503_v49 = vpack.c.bf16 %v5942_v16, %v5942_v16  ;;  %v8663_v42 = vld [vmem:[#allocation2 + $0x30] ss:$12 sps:$4 sm:$0xff]  }
 0x9c8   : > { %5982 = vst [vmem:[#allocation2 + $0x54] sm:$0xf] %v7487_v44  ;;  %6061 = vst [vmem:[#allocation2 + $0x50] sm:$0xf] %v7502_v0 }
 0x9c9   : > { %5975 = vst [vmem:[#allocation2] sm:$0xf] %v7480_v22  ;;  %6062 = vst [vmem:[#allocation2 + $0x5c] sm:$0xf] %v7503_v49 }
 0x9ca   : > { %v8654_v41 = vld [vmem:[#allocation2 + $0x38] ss:$12 sps:$4 sm:$0xff]  }
 0x9cb   : > { %8275 = vmatprep.mubr.bf16.mxu0 %v8654_v41 }
 0x9cc   : > { %v8668_v8 = vld [vmem:[#allocation2 + $0x4c] ss:$12 sps:$4 sm:$0xff]  }
 0x9cf   : > { %v8666_v58 = vld [vmem:[#allocation2 + $0x48] ss:$12 sps:$4 sm:$0xff]  }
 0x9d0   : > { %v8656_v32 = vld [vmem:[#allocation2] ss:$12 sps:$4 sm:$0xff]   ;;  %v8659_v40 = vld [vmem:[#allocation2 + $0x50] ss:$12 sps:$4 sm:$0xff]  }
 0x9d1   : > { %8276 = vmatmul.mubr.bf16.gmra.mxu0 %v8659_v40  ;;  %6377 = vmatmul.mubr.bf16.vlgmr.msra.gmra.mxu1 %v8656_v32 }
 0x9d2   : > { %6384 = vmatprep.mubr.bf16.mxu1 %v8662_v39 }
 0x9d9   : > { %6385 = vmatmul.mubr.bf16.gmra.mxu1 %v8660_v46 }
 0x9da   : > { %6392 = vmatprep.mubr.bf16.mxu1 %v8665_v7 }
 0x9e1   : > { %6393 = vmatmul.mubr.bf16.gmra.mxu1 %v8663_v42 }
 0x9e2   : > { %6400 = vmatprep.mubr.bf16.mxu1 %v8668_v8 }
 0x9e9   : > { %6401 = vmatmul.mubr.bf16.gmra.mxu1 %v8666_v58 }
 0xa86   : > { %v8273_v37 = vpop.f32.mrf.mxu0 }
 0xa88   : > { %v6443_v33 = vpop.f32.mrf.mxu0 }
 0xa8a   : > { %v8274_v56 = vpop.f32.mrf.mxu0 }
 0xa8c   : > { %v6446_v13 = vpop.f32.mrf.mxu0 }
 0xa91   : > { %v7993_v60 = vpop.f32.mrf.mxu1  ;;  %v8277_v3 = vpop.f32.mrf.mxu0 }
 0xa93   : > { %v7994_v12 = vpop.f32.mrf.mxu1  ;;  %v6459_v55 = vpop.f32.mrf.mxu0 }
 0xa94   : > { %v7995_v62 = vadd.f32 %v7994_v12, %v7993_v60 }
 0xa95   : > { %v7996_v14 = vpop.f32.mrf.mxu1  ;;  %v8278_v0 = vpop.f32.mrf.mxu0 }
 0xa96   : > { %v6379_v27 = vadd.f32 %v7995_v62, %v9800_v57 }
 0xa97   : > { %v7997_v54 = vpop.f32.mrf.mxu1  ;;  %v6462_v46 = vpop.f32.mrf.mxu0 }
 0xa98   : > { %v7998_v18 = vadd.f32 %v7997_v54, %v7996_v14  ;;  %v6444_v17 = vadd.f32 %v6443_v33, %v6379_v27 }
 0xa99   : > { %v7999_v6 = vpop.f32.mrf.mxu1 }
 0xa9a   : > { %v6382_v19 = vadd.f32 %v7998_v18, %v9800_v57  ;;  %v6474_v63 = vmul.f32 0.3, %v6444_v17 }
 0xa9b   : > { %v8000_v34 = vpop.f32.mrf.mxu1 }
 0xa9c   : > { %v6447_v38 = vadd.f32 %v6446_v13, %v6382_v19  ;;  %v8001_v47 = vadd.f32 %v8000_v34, %v7999_v6  ;;  %v6482_v25 = vadd.f32 %v6474_v63, %v9614_v10 }
 0xa9d   : > { %v8002_v21 = vpop.f32.mrf.mxu1 }
 0xa9e   : > { %v6475_v50 = vmul.f32 0.3, %v6447_v38  ;;  %v6387_v11 = vadd.f32 %v8001_v47, %v9800_v57  ;;  %v6493_v26 = vmul.f32 %v6490_v35, %v6482_v25 }
 0xa9f   : > { %v8003_v5 = vpop.f32.mrf.mxu1 }
 0xaa0   : > { %v8004_v20 = vadd.f32 %v8003_v5, %v8002_v21  ;;  %6495 = vadd.xlane.f32.xlu0 %v6493_v26  ;;  %v6483_v31 = vadd.f32 %v6475_v50, %v9625_v15  ;;  %v6452_v45 = vadd.f32 %v8273_v37, %v6387_v11 }
 0xaa1   : > { %v8005_v28 = vpop.f32.mrf.mxu1 }
 0xaa2   : > { %v6390_v9 = vadd.f32 %v8004_v20, %v9800_v57  ;;  %v6494_v10 = vmul.f32 %v6491_v1, %v6483_v31  ;;  %v6476_v24 = vmul.f32 0.3, %v6452_v45 }
 0xaa3   : > { %v8006_v23 = vpop.f32.mrf.mxu1 }
 0xaa4   : > { %v6455_v51 = vadd.f32 %v8274_v56, %v6390_v9  ;;  %v8007_v48 = vadd.f32 %v8006_v23, %v8005_v28  ;;  %6497 = vadd.xlane.f32.xlu0 %v6494_v10  ;;  %v6484_v53 = vadd.f32 %v6476_v24, %v9632_v59 }
 0xaa5   : > { %v8008_v52 = vpop.f32.mrf.mxu1 }
 0xaa6   : > { %v6477_v29 = vmul.f32 0.3, %v6455_v51  ;;  %v6395_v16 = vadd.f32 %v8007_v48, %v9800_v57  ;;  %v6509_v44 = vmul.f32 %v6490_v35, %v6484_v53 }
 0xaa7   : > { %v8009_v15 = vpop.f32.mrf.mxu1 }
 0xaa8   : > { %v6460_v22 = vadd.f32 %v6459_v55, %v6395_v16  ;;  %v8010_v49 = vadd.f32 %v8009_v15, %v8008_v52  ;;  %6511 = vadd.xlane.f32.xlu1 %v6509_v44  ;;  %v6485_v41 = vadd.f32 %v6477_v29, %v9647_v30 }
 0xaa9   : > { %v8011_v32 = vpop.f32.mrf.mxu1 }
 0xaaa   : > { %v6478_v36 = vmul.f32 0.3, %v6460_v22  ;;  %v6398_v40 = vadd.f32 %v8010_v49, %v9800_v57  ;;  %v6510_v39 = vmul.f32 %v6491_v1, %v6485_v41 }
 0xaab   : > { %v8012_v7 = vpop.f32.mrf.mxu1 }
 0xaac   : > { %v6463_v59 = vadd.f32 %v6462_v46, %v6398_v40  ;;  %v8013_v42 = vadd.f32 %v8012_v7, %v8011_v32  ;;  %6513 = vadd.xlane.f32.xlu1 %v6510_v39  ;;  %v6486_v8 = vadd.f32 %v6478_v36, %v9660_v61 }
 0xaad   : > { %v8014_v58 = vpop.f32.mrf.mxu1 }
 0xaae   : > { %v6479_v37 = vmul.f32 0.3, %v6463_v59  ;;  %v6403_v60 = vadd.f32 %v8013_v42, %v9800_v57  ;;  %v6525_v33 = vmul.f32 %v6490_v35, %v6486_v8 }
 0xaaf   : > { %v8015_v12 = vpop.f32.mrf.mxu1 }
 0xab0   : > { %v6468_v62 = vadd.f32 %v8277_v3, %v6403_v60  ;;  %v8016_v30 = vadd.f32 %v8015_v12, %v8014_v58  ;;  %6527 = vadd.xlane.f32.xlu0 %v6525_v33  ;;  %v6487_v14 = vadd.f32 %v6479_v37, %v9668_v43  ;;  %v6492_v3 = vld [vmem:[#allocation3] sm:$0x1] }
 0xab2   : > { %v6480_v27 = vmul.f32 0.3, %v6468_v62  ;;  %v6406_v56 = vadd.f32 %v8016_v30, %v9800_v57  ;;  %v6526_v54 = vmul.f32 %v6491_v1, %v6487_v14 }
 0xab4   : > { %v6471_v18 = vadd.f32 %v8278_v0, %v6406_v56  ;;  %6529 = vadd.xlane.f32.xlu1 %v6526_v54  ;;  %v6488_v17 = vadd.f32 %v6480_v27, %v9688_v4 }
 0xab6   : > { %v6481_v61 = vmul.f32 0.3, %v6471_v18  ;;  %v6541_v6 = vmul.f32 %v6490_v35, %v6488_v17 }
 0xab8   : > { %6543 = vadd.xlane.f32.xlu0 %v6541_v6  ;;  %v6489_v19 = vadd.f32 %v6481_v61, %v9692_v2 }
 0xaba   : > { %v6542_v63 = vmul.f32 %v6491_v1, %v6489_v19 }
 0xabc   : > { %6545 = vadd.xlane.f32.xlu1 %v6542_v63 }
 0xb29   : > { %v6496_v13 = vpop.xlane.xlu0 %6495 }
 0xb2d   : > { %v6498_v34 = vpop.xlane.xlu0 %6497 }
 0xb2e   : > { %v6499_v38 = vadd.f32 %v6498_v34, %v6496_v13 }
 0xb30   : > { %v6500_v43 = vrot.slane %v6499_v38, 4 }
 0xb31   : > { %v6512_v47 = vpop.xlane.xlu1 %6511 }
 0xb32   : > { %v6501_v25 = vadd.f32 %v6500_v43, %v6499_v38 }
 0xb34   : > { %v6502_v57 = vrot.slane %v6501_v25, 2 }
 0xb35   : > { %v6514_v21 = vpop.xlane.xlu1 %6513 }
 0xb36   : > { %v6503_v50 = vadd.f32 %v6502_v57, %v6501_v25  ;;  %v6515_v11 = vadd.f32 %v6514_v21, %v6512_v47 }
 0xb38   : > { %v6504_v26 = vrot.slane %v6503_v50, 1  ;;  %v6516_v4 = vrot.slane %v6515_v11, 4 }
 0xb39   : > { %v6528_v20 = vpop.xlane.xlu0 %6527 }
 0xb3a   : > { %v6505_v35 = vadd.f32 %v6504_v26, %v6503_v50  ;;  %v6517_v5 = vadd.f32 %v6516_v4, %v6515_v11 }
 0xb3c   : > { %v6506_v2 = vadd.f32 %v6505_v35, %v6492_v3  ;;  %v6518_v1 = vrot.slane %v6517_v5, 2 }
 0xb3d   : > { %v6530_v31 = vpop.xlane.xlu1 %6529 }
 0xb3e   : > { %6508 = vst.msk [vmem:[%s9828_s27] sm:$0x1] %vm6507_vm12, %v6506_v2  ;;  %v6519_v45 = vadd.f32 %v6518_v1, %v6517_v5  ;;  %v6531_v28 = vadd.f32 %v6530_v31, %v6528_v20 }
 0xb40   : > { %v6520_v9 = vrot.slane %v6519_v45, 1  ;;  %v6532_v10 = vrot.slane %v6531_v28, 4 }
 0xb41   : > { %v6544_v48 = vpop.xlane.xlu0 %6543 }
 0xb42   : > { %v6521_v24 = vadd.f32 %v6520_v9, %v6519_v45  ;;  %v6533_v55 = vadd.f32 %v6532_v10, %v6531_v28 }
 0xb44   : > { %v6522_v23 = vadd.f32 %v6521_v24, %v6492_v3  ;;  %v6534_v51 = vrot.slane %v6533_v55, 2 }
 0xb45   : > { %v6546_v53 = vpop.xlane.xlu1 %6545 }
 0xb46   : > { %7258 = vst.msk [vmem:[%s9828_s27 + $0x1] sm:$0x1] %vm6507_vm12, %v6522_v23  ;;  %v6535_v52 = vadd.f32 %v6534_v51, %v6533_v55  ;;  %v6547_v29 = vadd.f32 %v6546_v53, %v6544_v48 }
 0xb48   : > { %v6536_v16 = vrot.slane %v6535_v52, 1  ;;  %v6548_v44 = vrot.slane %v6547_v29, 4 }
 0xb4a   : > { %v6537_v0 = vadd.f32 %v6536_v16, %v6535_v52  ;;  %v6549_v15 = vadd.f32 %v6548_v44, %v6547_v29 }
 0xb4c   : > { %v6538_v22 = vadd.f32 %v6537_v0, %v6492_v3  ;;  %v6550_v49 = vrot.slane %v6549_v15, 2 }
 0xb4e   : > { %7259 = vst.msk [vmem:[%s9828_s27 + $0x2] sm:$0x1] %vm6507_vm12, %v6538_v22  ;;  %v6551_v41 = vadd.f32 %v6550_v49, %v6549_v15 }
 0xb50   : > { %v6552_v32 = vrot.slane %v6551_v41, 1 }
 0xb52   : > { %v6553_v36 = vadd.f32 %v6552_v32, %v6551_v41 }
 0xb54   : > { %v6554_v40 = vadd.f32 %v6553_v36, %v6492_v3 }
 0xb56   : > { %7260 = vst.msk [vmem:[%s9828_s27 + $0x3] sm:$0x1] %vm6507_vm12, %v6554_v40 }
 0xb57 PF: > { %s20_s26 = sadd.s32 1, %s8705_s26  }
 0xb58   : > { %p17_p1 = scmp.ge.s32.totalorder %s20_s26, 4  }
 0xb5a   :  { %19 = sbr.rel (!%p17_p1) target bundleno = 4 (0x4), region = 104 }
 0xb5f   :  { %6577 = vsyncpa [#allocation5], 1 }
 0xb60   :  { %6579 = vsyncpa [#allocation5 + $0x1], 1 }

</bundles_post_ra>
